<compile_context>
chip_gen: v5e
topology: v5e:2x2
jax: 0.10.0
libtpu: 0.0.40
codegen_flags: <defaults>
</compile_context>

<pallas_src>
import math

import jax
import jax.numpy as jnp
from jax.experimental import pallas as pl
from jax.experimental.pallas import tpu as pltpu

_LANE = 128
_MIB = 1024 * 1024


def _round_up(x, m):
    return ((x + m - 1) // m) * m


def _gelu_dtype_for_device():
    """bf16 elementwise math only on chips with native bf16 VALUs (v6e/v7x)."""
    try:
        kind = jax.devices()[0].device_kind.lower()
    except Exception:
        return jnp.float32
    if "v6" in kind or "v7" in kind:
        return jnp.bfloat16
    return jnp.float32


def _pick_tm(n_tokens):
    """Token tile: aim for >=4 grid steps, 128..1024 rows, MXU-row aligned."""
    tm = _round_up(max(1, -(-n_tokens // 4)), _LANE)
    tm = max(_LANE, min(tm, 1024))
    if tm >= 256:
        tm = _round_up(tm, 256)  # full MXU row packs on v6e/v7x
    return tm


def _make_mlp_kernel(chunk_bounds, gelu_dtype, approximate_gelu):
    """fc1 -> GELU -> fc2 over static hidden-dim slabs (MXU/VPU interleave)."""

    def kernel(x_ref, w1_ref, b1_ref, w2_ref, b2_ref, o_ref):
        # x_ref:  (tm, Cin_p)      token tile (compute dtype, e.g. bf16)
        # w1_ref: (Cin_p, Chid_p)  VMEM-resident across the grid
        # b1_ref: (1, Chid_p)      f32
        # w2_ref: (Chid_p, Cout_p) VMEM-resident across the grid
        # b2_ref: (1, Cout_p)      f32
        # o_ref:  (tm, Cout_p)
        x = x_ref[...]
        acc = jnp.zeros((x.shape[0], o_ref.shape[1]), jnp.float32)
        for lo, hi in chunk_bounds:  # static python loop, static ref slices
            h = jnp.dot(x, w1_ref[:, lo:hi], preferred_element_type=jnp.float32)
            h = h + b1_ref[:, lo:hi]
            # tanh GELU -> EUP slot (free alongside MXU/VALU); exact erf would
            # make the kernel VALU-bound at EdgeNeXt channel widths.
            h = jax.nn.gelu(h.astype(gelu_dtype), approximate=approximate_gelu)
            h = h.astype(w2_ref.dtype)  # bf16 operand for the 2nd MXU pass
            acc = acc + jnp.dot(h, w2_ref[lo:hi, :],
                                preferred_element_type=jnp.float32)
        o_ref[...] = (acc + b2_ref[...]).astype(o_ref.dtype)

    return kernel


def mlp_pallas(x, w1, b1, w2, b2, *, tm=None, hidden_chunk=512,
               compute_dtype=jnp.bfloat16, out_dtype=None,
               gelu_dtype=None, approximate_gelu=True):
    """timm-style Mlp: GELU(x @ w1 + b1) @ w2 + b2 over the last axis.

    Weights are stored transposed vs PyTorch: w1 (C_in, C_hid), w2 (C_hid, C_out).
    Returns (..., C_out) in `out_dtype` (defaults to x.dtype).
    """
    if out_dtype is None:
        out_dtype = x.dtype  # pass jnp.bfloat16 on v5e to halve writeback
    if gelu_dtype is None:
        gelu_dtype = _gelu_dtype_for_device()

    orig_shape = x.shape
    C_in = orig_shape[-1]
    C_hid = w1.shape[1]
    C_out = w2.shape[1]
    N = int(math.prod(orig_shape[:-1]))

    if tm is None:
        tm = _pick_tm(N)
    else:
        tm = max(_LANE, _round_up(int(tm), _LANE))

    Cin_p = _round_up(C_in, _LANE)
    Chid_p = _round_up(C_hid, _LANE)
    Cout_p = _round_up(C_out, _LANE)
    Np = _round_up(max(N, 1), tm)
    grid = (Np // tm,)

    # Hidden-dim slab bounds (static; every slab width is a multiple of 128).
    chunk = min(Chid_p, max(_LANE, _round_up(int(hidden_chunk), _LANE)))
    chunk_bounds = tuple((lo, min(lo + chunk, Chid_p))
                         for lo in range(0, Chid_p, chunk))

    # ---- wrapper-side padding / casting (only when actually needed) --------
    # Zero padding is an exact no-op through the MLP (GELU(0)=0; zero weight
    # rows/cols contribute nothing); the padding is sliced off at the end.
    # TODO(synk): in a full EdgeNeXt stage, keep activations persistently in
    # this lane-padded bf16 layout so the pad/astype/slice HBM passes happen
    # once per stage rather than once per MLP call.
    x2d = x.reshape(N, C_in).astype(compute_dtype)
    if (Np, Cin_p) != (N, C_in):
        x2d = jnp.pad(x2d, ((0, Np - N), (0, Cin_p - C_in)))
    w1p = w1.astype(compute_dtype)
    if (Cin_p, Chid_p) != (C_in, C_hid):
        w1p = jnp.pad(w1p, ((0, Cin_p - C_in), (0, Chid_p - C_hid)))
    w2p = w2.astype(compute_dtype)
    if (Chid_p, Cout_p) != (C_hid, C_out):
        w2p = jnp.pad(w2p, ((0, Chid_p - C_hid), (0, Cout_p - C_out)))
    b1p = jnp.pad(b1.astype(jnp.float32), (0, Chid_p - C_hid)).reshape(1, Chid_p)
    b2p = jnp.pad(b2.astype(jnp.float32), (0, Cout_p - C_out)).reshape(1, Cout_p)

    kernel = _make_mlp_kernel(chunk_bounds, gelu_dtype, approximate_gelu)

    def build(single_buffer_weights):
        # Weights/biases use a constant index_map -> fetched once, resident in
        # VMEM for the whole token grid.  With a constant index_map the second
        # pipeline buffer is pure waste, so request single buffering.
        if single_buffer_weights:
            resident = dict(pipeline_mode=pl.Buffered(1))
            w_bufs = 1
        else:
            resident = {}
            w_bufs = 2

        csz = jnp.dtype(compute_dtype).itemsize
        osz = jnp.dtype(out_dtype).itemsize
        vmem_bytes = (
            2 * tm * Cin_p * csz                                  # x tiles (2x)
            + 2 * tm * Cout_p * osz                               # out tiles (2x)
            + w_bufs * (Cin_p * Chid_p + Chid_p * Cout_p) * csz   # weights
            + w_bufs * (Chid_p + Cout_p) * 4                      # biases (f32)
            + 3 * tm * chunk * 4                                  # f32 slab + temps
            + tm * Cout_p * 4                                     # f32 accumulator
        )
        vmem_limit = int(max(vmem_bytes + 8 * _MIB, 24 * _MIB))

        return pl.pallas_call(
            kernel,
            out_shape=jax.ShapeDtypeStruct((Np, Cout_p), out_dtype),
            grid_spec=pltpu.PrefetchScalarGridSpec(
                num_scalar_prefetch=0,
                grid=grid,
                in_specs=[
                    pl.BlockSpec((tm, Cin_p), lambda i: (i, 0)),
                    pl.BlockSpec((Cin_p, Chid_p), lambda i: (0, 0), **resident),
                    pl.BlockSpec((1, Chid_p), lambda i: (0, 0), **resident),
                    pl.BlockSpec((Chid_p, Cout_p), lambda i: (0, 0), **resident),
                    pl.BlockSpec((1, Cout_p), lambda i: (0, 0), **resident),
                ],
                out_specs=pl.BlockSpec((tm, Cout_p), lambda i: (i, 0)),
            ),
            compiler_params=pltpu.CompilerParams(
                # Independent token tiles -> megacore sharding on v7x.
                dimension_semantics=("parallel",),
                vmem_limit_bytes=vmem_limit,
            ),
        )

    args = (x2d, w1p, b1p, w2p, b2p)
    try:
        out = build(single_buffer_weights=True)(*args)
    except Exception:
        # Older Pallas builds may reject buffer_count=1; fall back to default
        # double buffering (identical semantics, slightly more VMEM).
        out = build(single_buffer_weights=False)(*args)

    out = out[:N, :C_out]
    return out.reshape(orig_shape[:-1] + (C_out,))


def init_mlp_params(key, in_features, hidden_features, out_features):
    """Deterministic synthetic params (PyTorch nn.Linear-like init)."""
    k1, k2, k3, k4 = jax.random.split(key, 4)
    lim1 = 1.0 / (in_features ** 0.5)
    lim2 = 1.0 / (hidden_features ** 0.5)
    # Stored transposed vs PyTorch: (in, out).
    w1 = jax.random.uniform(k1, (in_features, hidden_features),
                            minval=-lim1, maxval=lim1, dtype=jnp.float32)
    b1 = jax.random.uniform(k2, (hidden_features,),
                            minval=-lim1, maxval=lim1, dtype=jnp.float32)
    w2 = jax.random.uniform(k3, (hidden_features, out_features),
                            minval=-lim2, maxval=lim2, dtype=jnp.float32)
    b2 = jax.random.uniform(k4, (out_features,),
                            minval=-lim2, maxval=lim2, dtype=jnp.float32)
    return w1, b1, w2, b2


def mlp_reference_f32(x, w1, b1, w2, b2):
    """Full-precision exact-erf reference (PyTorch nn.GELU semantics)."""
    xf = x.astype(jnp.float32)
    h = xf @ w1.astype(jnp.float32) + b1.astype(jnp.float32)
    h = jax.nn.gelu(h, approximate=False)
    o = h @ w2.astype(jnp.float32) + b2.astype(jnp.float32)
    return o.astype(x.dtype)


if __name__ == "__main__":
    # Small EdgeNeXt-like shapes: B=2, 16x16 spatial (NHWC tokens), dim=96,
    # hidden = 4*dim.  Channels (96) are deliberately not a multiple of 128 to
    # exercise lane padding; 512 tokens with auto tm=128 gives a 4-step grid
    # (pipelining / megacore path); hidden_chunk=256 exercises the multi-slab
    # hidden-dim loop (Chid_p=512 -> 2 slabs).
    B, H, W = 2, 16, 16
    C_in = 96
    C_hid = 4 * C_in
    C_out = C_in

    key = jax.random.PRNGKey(0)
    kx, kp = jax.random.split(key)
    x = jax.random.normal(kx, (B, H, W, C_in), dtype=jnp.float32)
    w1, b1, w2, b2 = init_mlp_params(kp, C_in, C_hid, C_out)

    y = mlp_pallas(x, w1, b1, w2, b2, hidden_chunk=256)
    y = jax.block_until_ready(y)
    assert y.shape == (B, H, W, C_out)

    # Compare against the f32 exact-erf reference.  The kernel uses bf16
    # operands + (tanh) GELU with f32 MXU accumulation, so allow a modest,
    # documented tolerance.
    y_ref = mlp_reference_f32(x.reshape(-1, C_in), w1, b1, w2, b2)
    y_ref = y_ref.reshape(B, H, W, C_out)
    assert jnp.allclose(y, y_ref, atol=3e-2, rtol=3e-2), "mismatch vs reference"

    print("KERNEL_OK")
</pallas_src>

<mosaic_0001>
module attributes {stable_mosaic.version = 11 : i64} {
  func.func @kernel(%arg0: i32, %arg1: memref<128x128xbf16, #tpu.memory_space<vmem>>, %arg2: memref<128x384xbf16, #tpu.memory_space<vmem>>, %arg3: memref<1x384xf32, #tpu.memory_space<vmem>>, %arg4: memref<384x128xbf16, #tpu.memory_space<vmem>>, %arg5: memref<1x128xf32, #tpu.memory_space<vmem>>, %arg6: memref<128x128xf32, #tpu.memory_space<vmem>>) attributes {dimension_semantics = [#tpu.dimension_semantics<parallel>], iteration_bounds = array<i64: 4>, scalar_prefetch = 0 : i64, scratch_operands = 0 : i64, tpu.core_type = #tpu.core_type<tc>, window_params = [{transform_indices = @transform_0, window_bounds = array<i64: 128, 128>}, {pipeline_mode = #tpu.pipeline_mode<synchronous>, transform_indices = @transform_1, window_bounds = array<i64: 128, 384>}, {pipeline_mode = #tpu.pipeline_mode<synchronous>, transform_indices = @transform_2, window_bounds = array<i64: 1, 384>}, {pipeline_mode = #tpu.pipeline_mode<synchronous>, transform_indices = @transform_3, window_bounds = array<i64: 384, 128>}, {pipeline_mode = #tpu.pipeline_mode<synchronous>, transform_indices = @transform_4, window_bounds = array<i64: 1, 128>}, {transform_indices = @transform_5, window_bounds = array<i64: 128, 128>}]} {
    %c0 = arith.constant 0 : index
    %c0_0 = arith.constant 0 : index
    %0 = vector.load %arg1[%c0, %c0_0] : memref<128x128xbf16, #tpu.memory_space<vmem>>, vector<128x128xbf16>
    %cst = arith.constant 0.000000e+00 : f32
    %1 = vector.broadcast %cst : f32 to vector<128x128xf32>
    %c0_1 = arith.constant 0 : index
    %c0_2 = arith.constant 0 : index
    %2 = vector.load %arg2[%c0_1, %c0_2] : memref<128x384xbf16, #tpu.memory_space<vmem>>, vector<128x256xbf16>
    %cst_3 = arith.constant dense<0.000000e+00> : vector<128x256xf32>
    %3 = tpu.matmul %0, %2, %cst_3 {dimension_numbers = #tpu.dot_dimension_numbers<[1], [0], [0], [1], [0, 0, 1, 1], [], []>} : vector<128x128xbf16>, vector<128x256xbf16>, vector<128x256xf32> -> vector<128x256xf32>
    %c0_4 = arith.constant 0 : index
    %c0_5 = arith.constant 0 : index
    %4 = vector.load %arg3[%c0_4, %c0_5] : memref<1x384xf32, #tpu.memory_space<vmem>>, vector<1x256xf32>
    %5 = vector.broadcast %4 : vector<1x256xf32> to vector<128x256xf32>
    %6 = arith.addf %3, %5 : vector<128x256xf32>
    %7 = arith.mulf %6, %6 : vector<128x256xf32>
    %8 = arith.mulf %6, %7 : vector<128x256xf32>
    %cst_6 = arith.constant 4.471500e-02 : f32
    %9 = vector.broadcast %cst_6 : f32 to vector<128x256xf32>
    %10 = arith.mulf %9, %8 : vector<128x256xf32>
    %11 = arith.addf %6, %10 : vector<128x256xf32>
    %cst_7 = arith.constant 0.797884583 : f32
    %12 = vector.broadcast %cst_7 : f32 to vector<128x256xf32>
    %13 = arith.mulf %12, %11 : vector<128x256xf32>
    %14 = math.tanh %13 : vector<128x256xf32>
    %cst_8 = arith.constant 1.000000e+00 : f32
    %15 = vector.broadcast %cst_8 : f32 to vector<128x256xf32>
    %16 = arith.addf %15, %14 : vector<128x256xf32>
    %cst_9 = arith.constant 5.000000e-01 : f32
    %17 = vector.broadcast %cst_9 : f32 to vector<128x256xf32>
    %18 = arith.mulf %17, %16 : vector<128x256xf32>
    %19 = arith.mulf %6, %18 : vector<128x256xf32>
    %20 = arith.truncf %19 : vector<128x256xf32> to vector<128x256xbf16>
    %c0_10 = arith.constant 0 : index
    %c0_11 = arith.constant 0 : index
    %21 = vector.load %arg4[%c0_10, %c0_11] : memref<384x128xbf16, #tpu.memory_space<vmem>>, vector<256x128xbf16>
    %cst_12 = arith.constant dense<0.000000e+00> : vector<128x128xf32>
    %22 = tpu.matmul %20, %21, %cst_12 {dimension_numbers = #tpu.dot_dimension_numbers<[1], [0], [0], [1], [0, 0, 1, 1], [], []>} : vector<128x256xbf16>, vector<256x128xbf16>, vector<128x128xf32> -> vector<128x128xf32>
    %23 = arith.addf %1, %22 : vector<128x128xf32>
    %c0_13 = arith.constant 0 : index
    %c256 = arith.constant 256 : index
    %24 = vector.load %arg2[%c0_13, %c256] : memref<128x384xbf16, #tpu.memory_space<vmem>>, vector<128x128xbf16>
    %cst_14 = arith.constant dense<0.000000e+00> : vector<128x128xf32>
    %25 = tpu.matmul %0, %24, %cst_14 {dimension_numbers = #tpu.dot_dimension_numbers<[1], [0], [0], [1], [0, 0, 1, 1], [], []>} : vector<128x128xbf16>, vector<128x128xbf16>, vector<128x128xf32> -> vector<128x128xf32>
    %c0_15 = arith.constant 0 : index
    %c256_16 = arith.constant 256 : index
    %26 = vector.load %arg3[%c0_15, %c256_16] : memref<1x384xf32, #tpu.memory_space<vmem>>, vector<1x128xf32>
    %27 = vector.broadcast %26 : vector<1x128xf32> to vector<128x128xf32>
    %28 = arith.addf %25, %27 : vector<128x128xf32>
    %29 = arith.mulf %28, %28 : vector<128x128xf32>
    %30 = arith.mulf %28, %29 : vector<128x128xf32>
    %cst_17 = arith.constant 4.471500e-02 : f32
    %31 = vector.broadcast %cst_17 : f32 to vector<128x128xf32>
    %32 = arith.mulf %31, %30 : vector<128x128xf32>
    %33 = arith.addf %28, %32 : vector<128x128xf32>
    %cst_18 = arith.constant 0.797884583 : f32
    %34 = vector.broadcast %cst_18 : f32 to vector<128x128xf32>
    %35 = arith.mulf %34, %33 : vector<128x128xf32>
    %36 = math.tanh %35 : vector<128x128xf32>
    %cst_19 = arith.constant 1.000000e+00 : f32
    %37 = vector.broadcast %cst_19 : f32 to vector<128x128xf32>
    %38 = arith.addf %37, %36 : vector<128x128xf32>
    %cst_20 = arith.constant 5.000000e-01 : f32
    %39 = vector.broadcast %cst_20 : f32 to vector<128x128xf32>
    %40 = arith.mulf %39, %38 : vector<128x128xf32>
    %41 = arith.mulf %28, %40 : vector<128x128xf32>
    %42 = arith.truncf %41 : vector<128x128xf32> to vector<128x128xbf16>
    %c256_21 = arith.constant 256 : index
    %c0_22 = arith.constant 0 : index
    %43 = vector.load %arg4[%c256_21, %c0_22] : memref<384x128xbf16, #tpu.memory_space<vmem>>, vector<128x128xbf16>
    %cst_23 = arith.constant dense<0.000000e+00> : vector<128x128xf32>
    %44 = tpu.matmul %42, %43, %cst_23 {dimension_numbers = #tpu.dot_dimension_numbers<[1], [0], [0], [1], [0, 0, 1, 1], [], []>} : vector<128x128xbf16>, vector<128x128xbf16>, vector<128x128xf32> -> vector<128x128xf32>
    %45 = arith.addf %23, %44 : vector<128x128xf32>
    %c0_24 = arith.constant 0 : index
    %c0_25 = arith.constant 0 : index
    %46 = vector.load %arg5[%c0_24, %c0_25] : memref<1x128xf32, #tpu.memory_space<vmem>>, vector<1x128xf32>
    %47 = vector.broadcast %46 : vector<1x128xf32> to vector<128x128xf32>
    %48 = arith.addf %45, %47 : vector<128x128xf32>
    %c0_26 = arith.constant 0 : index
    %c0_27 = arith.constant 0 : index
    %49 = vector.load %arg6[%c0_26, %c0_27] : memref<128x128xf32, #tpu.memory_space<vmem>>, vector<128x128xf32>
    tpu.vector_store %arg6[%c0_26, %c0_27], %48 {strides = array<i32>} : memref<128x128xf32, #tpu.memory_space<vmem>>, vector<128x128xf32>,
    return
  }
  func.func @transform_0(%arg0: i32) -> (i32, i32) {
    %c0_i32 = arith.constant 0 : i32
    %c0_i32_0 = arith.constant 0 : i32
    return %arg0, %c0_i32 : i32, i32
  }
  func.func @transform_1(%arg0: i32) -> (i32, i32) {
    %c0_i32 = arith.constant 0 : i32
    %c0_i32_0 = arith.constant 0 : i32
    %c0_i32_1 = arith.constant 0 : i32
    return %c0_i32, %c0_i32_0 : i32, i32
  }
  func.func @transform_2(%arg0: i32) -> (i32, i32) {
    %c0_i32 = arith.constant 0 : i32
    %c0_i32_0 = arith.constant 0 : i32
    %c0_i32_1 = arith.constant 0 : i32
    return %c0_i32, %c0_i32_0 : i32, i32
  }
  func.func @transform_3(%arg0: i32) -> (i32, i32) {
    %c0_i32 = arith.constant 0 : i32
    %c0_i32_0 = arith.constant 0 : i32
    %c0_i32_1 = arith.constant 0 : i32
    return %c0_i32, %c0_i32_0 : i32, i32
  }
  func.func @transform_4(%arg0: i32) -> (i32, i32) {
    %c0_i32 = arith.constant 0 : i32
    %c0_i32_0 = arith.constant 0 : i32
    %c0_i32_1 = arith.constant 0 : i32
    return %c0_i32, %c0_i32_0 : i32, i32
  }
  func.func @transform_5(%arg0: i32) -> (i32, i32) {
    %c0_i32 = arith.constant 0 : i32
    %c0_i32_0 = arith.constant 0 : i32
    return %arg0, %c0_i32 : i32, i32
  }
}

module attributes {stable_mosaic.version = 11 : i64} {
  func.func @kernel(%arg0: i32, %arg1: memref<128x128xbf16, #tpu.memory_space<vmem>>, %arg2: memref<128x384xbf16, #tpu.memory_space<vmem>>, %arg3: memref<1x384xf32, #tpu.memory_space<vmem>>, %arg4: memref<384x128xbf16, #tpu.memory_space<vmem>>, %arg5: memref<1x128xf32, #tpu.memory_space<vmem>>, %arg6: memref<128x128xf32, #tpu.memory_space<vmem>>) attributes {dimension_semantics = [#tpu.dimension_semantics<parallel>], iteration_bounds = array<i64: 4>, scalar_prefetch = 0 : i64, scratch_operands = 0 : i64, tpu.core_type = #tpu.core_type<tc>, window_params = [{transform_indices = @transform_0, window_bounds = array<i64: 128, 128>}, {pipeline_mode = #tpu.pipeline_mode<synchronous>, transform_indices = @transform_1, window_bounds = array<i64: 128, 384>}, {pipeline_mode = #tpu.pipeline_mode<synchronous>, transform_indices = @transform_2, window_bounds = array<i64: 1, 384>}, {pipeline_mode = #tpu.pipeline_mode<synchronous>, transform_indices = @transform_3, window_bounds = array<i64: 384, 128>}, {pipeline_mode = #tpu.pipeline_mode<synchronous>, transform_indices = @transform_4, window_bounds = array<i64: 1, 128>}, {transform_indices = @transform_5, window_bounds = array<i64: 128, 128>}]} {
    %c0 = arith.constant 0 : index
    %c0_0 = arith.constant 0 : index
    %0 = vector.load %arg1[%c0, %c0_0] : memref<128x128xbf16, #tpu.memory_space<vmem>>, vector<128x128xbf16>
    %cst = arith.constant 0.000000e+00 : f32
    %1 = vector.broadcast %cst : f32 to vector<128x128xf32>
    %c0_1 = arith.constant 0 : index
    %c0_2 = arith.constant 0 : index
    %2 = vector.load %arg2[%c0_1, %c0_2] : memref<128x384xbf16, #tpu.memory_space<vmem>>, vector<128x256xbf16>
    %cst_3 = arith.constant dense<0.000000e+00> : vector<128x256xf32>
    %3 = tpu.matmul %0, %2, %cst_3 {dimension_numbers = #tpu.dot_dimension_numbers<[1], [0], [0], [1], [0, 0, 1, 1], [], []>} : vector<128x128xbf16>, vector<128x256xbf16>, vector<128x256xf32> -> vector<128x256xf32>
    %c0_4 = arith.constant 0 : index
    %c0_5 = arith.constant 0 : index
    %4 = vector.load %arg3[%c0_4, %c0_5] : memref<1x384xf32, #tpu.memory_space<vmem>>, vector<1x256xf32>
    %5 = vector.broadcast %4 : vector<1x256xf32> to vector<128x256xf32>
    %6 = arith.addf %3, %5 : vector<128x256xf32>
    %7 = arith.mulf %6, %6 : vector<128x256xf32>
    %8 = arith.mulf %6, %7 : vector<128x256xf32>
    %cst_6 = arith.constant 4.471500e-02 : f32
    %9 = vector.broadcast %cst_6 : f32 to vector<128x256xf32>
    %10 = arith.mulf %9, %8 : vector<128x256xf32>
    %11 = arith.addf %6, %10 : vector<128x256xf32>
    %cst_7 = arith.constant 0.797884583 : f32
    %12 = vector.broadcast %cst_7 : f32 to vector<128x256xf32>
    %13 = arith.mulf %12, %11 : vector<128x256xf32>
    %14 = math.tanh %13 : vector<128x256xf32>
    %cst_8 = arith.constant 1.000000e+00 : f32
    %15 = vector.broadcast %cst_8 : f32 to vector<128x256xf32>
    %16 = arith.addf %15, %14 : vector<128x256xf32>
    %cst_9 = arith.constant 5.000000e-01 : f32
    %17 = vector.broadcast %cst_9 : f32 to vector<128x256xf32>
    %18 = arith.mulf %17, %16 : vector<128x256xf32>
    %19 = arith.mulf %6, %18 : vector<128x256xf32>
    %20 = arith.truncf %19 : vector<128x256xf32> to vector<128x256xbf16>
    %c0_10 = arith.constant 0 : index
    %c0_11 = arith.constant 0 : index
    %21 = vector.load %arg4[%c0_10, %c0_11] : memref<384x128xbf16, #tpu.memory_space<vmem>>, vector<256x128xbf16>
    %cst_12 = arith.constant dense<0.000000e+00> : vector<128x128xf32>
    %22 = tpu.matmul %20, %21, %cst_12 {dimension_numbers = #tpu.dot_dimension_numbers<[1], [0], [0], [1], [0, 0, 1, 1], [], []>} : vector<128x256xbf16>, vector<256x128xbf16>, vector<128x128xf32> -> vector<128x128xf32>
    %23 = arith.addf %1, %22 : vector<128x128xf32>
    %c0_13 = arith.constant 0 : index
    %c256 = arith.constant 256 : index
    %24 = vector.load %arg2[%c0_13, %c256] : memref<128x384xbf16, #tpu.memory_space<vmem>>, vector<128x128xbf16>
    %cst_14 = arith.constant dense<0.000000e+00> : vector<128x128xf32>
    %25 = tpu.matmul %0, %24, %cst_14 {dimension_numbers = #tpu.dot_dimension_numbers<[1], [0], [0], [1], [0, 0, 1, 1], [], []>} : vector<128x128xbf16>, vector<128x128xbf16>, vector<128x128xf32> -> vector<128x128xf32>
    %c0_15 = arith.constant 0 : index
    %c256_16 = arith.constant 256 : index
    %26 = vector.load %arg3[%c0_15, %c256_16] : memref<1x384xf32, #tpu.memory_space<vmem>>, vector<1x128xf32>
    %27 = vector.broadcast %26 : vector<1x128xf32> to vector<128x128xf32>
    %28 = arith.addf %25, %27 : vector<128x128xf32>
    %29 = arith.mulf %28, %28 : vector<128x128xf32>
    %30 = arith.mulf %28, %29 : vector<128x128xf32>
    %cst_17 = arith.constant 4.471500e-02 : f32
    %31 = vector.broadcast %cst_17 : f32 to vector<128x128xf32>
    %32 = arith.mulf %31, %30 : vector<128x128xf32>
    %33 = arith.addf %28, %32 : vector<128x128xf32>
    %cst_18 = arith.constant 0.797884583 : f32
    %34 = vector.broadcast %cst_18 : f32 to vector<128x128xf32>
    %35 = arith.mulf %34, %33 : vector<128x128xf32>
    %36 = math.tanh %35 : vector<128x128xf32>
    %cst_19 = arith.constant 1.000000e+00 : f32
    %37 = vector.broadcast %cst_19 : f32 to vector<128x128xf32>
    %38 = arith.addf %37, %36 : vector<128x128xf32>
    %cst_20 = arith.constant 5.000000e-01 : f32
    %39 = vector.broadcast %cst_20 : f32 to vector<128x128xf32>
    %40 = arith.mulf %39, %38 : vector<128x128xf32>
    %41 = arith.mulf %28, %40 : vector<128x128xf32>
    %42 = arith.truncf %41 : vector<128x128xf32> to vector<128x128xbf16>
    %c256_21 = arith.constant 256 : index
    %c0_22 = arith.constant 0 : index
    %43 = vector.load %arg4[%c256_21, %c0_22] : memref<384x128xbf16, #tpu.memory_space<vmem>>, vector<128x128xbf16>
    %cst_23 = arith.constant dense<0.000000e+00> : vector<128x128xf32>
    %44 = tpu.matmul %42, %43, %cst_23 {dimension_numbers = #tpu.dot_dimension_numbers<[1], [0], [0], [1], [0, 0, 1, 1], [], []>} : vector<128x128xbf16>, vector<128x128xbf16>, vector<128x128xf32> -> vector<128x128xf32>
    %45 = arith.addf %23, %44 : vector<128x128xf32>
    %c0_24 = arith.constant 0 : index
    %c0_25 = arith.constant 0 : index
    %46 = vector.load %arg5[%c0_24, %c0_25] : memref<1x128xf32, #tpu.memory_space<vmem>>, vector<1x128xf32>
    %47 = vector.broadcast %46 : vector<1x128xf32> to vector<128x128xf32>
    %48 = arith.addf %45, %47 : vector<128x128xf32>
    %c0_26 = arith.constant 0 : index
    %c0_27 = arith.constant 0 : index
    %49 = vector.load %arg6[%c0_26, %c0_27] : memref<128x128xf32, #tpu.memory_space<vmem>>, vector<128x128xf32>
    tpu.vector_store %arg6[%c0_26, %c0_27], %48 {strides = array<i32>} : memref<128x128xf32, #tpu.memory_space<vmem>>, vector<128x128xf32>,
    return
  }
  func.func @transform_0(%arg0: i32) -> (i32, i32) {
    %c0_i32 = arith.constant 0 : i32
    %c0_i32_0 = arith.constant 0 : i32
    return %arg0, %c0_i32 : i32, i32
  }
  func.func @transform_1(%arg0: i32) -> (i32, i32) {
    %c0_i32 = arith.constant 0 : i32
    %c0_i32_0 = arith.constant 0 : i32
    %c0_i32_1 = arith.constant 0 : i32
    return %c0_i32, %c0_i32_0 : i32, i32
  }
  func.func @transform_2(%arg0: i32) -> (i32, i32) {
    %c0_i32 = arith.constant 0 : i32
    %c0_i32_0 = arith.constant 0 : i32
    %c0_i32_1 = arith.constant 0 : i32
    return %c0_i32, %c0_i32_0 : i32, i32
  }
  func.func @transform_3(%arg0: i32) -> (i32, i32) {
    %c0_i32 = arith.constant 0 : i32
    %c0_i32_0 = arith.constant 0 : i32
    %c0_i32_1 = arith.constant 0 : i32
    return %c0_i32, %c0_i32_0 : i32, i32
  }
  func.func @transform_4(%arg0: i32) -> (i32, i32) {
    %c0_i32 = arith.constant 0 : i32
    %c0_i32_0 = arith.constant 0 : i32
    %c0_i32_1 = arith.constant 0 : i32
    return %c0_i32, %c0_i32_0 : i32, i32
  }
  func.func @transform_5(%arg0: i32) -> (i32, i32) {
    %c0_i32 = arith.constant 0 : i32
    %c0_i32_0 = arith.constant 0 : i32
    return %arg0, %c0_i32 : i32, i32
  }
}

</mosaic_0001>

<bundles_post_ra>
// kernel: tpu_custom_call.1
= control target key start
LH: loop header
LB: loop body
LE: loop exit
PB: predicated region body
PF: predicated region fallthrough
CT: control target
= control target key end

     0   :  { %10 = vsyncpa [#allocation3], 0  ;;  %s2974_s0 = inlined_call_operand.hbm [shape: bf16[512,128], index: 0, kind: input, shape index: {}]   ;;  %s2975_s1 = inlined_call_operand.hbm [shape: bf16[128,384], index: 1, kind: input, shape index: {}]   ;;  %s2976_s2 = inlined_call_operand.hbm [shape: f32[1,384], index: 2, kind: input, shape index: {}]   ;;  %s2977_s3 = inlined_call_operand.hbm [shape: bf16[384,128], index: 3, kind: input, shape index: {}]   ;;  %s2978_s4 = inlined_call_operand.vmem [shape: f32[1,128], index: 4, kind: input, shape index: {}]   ;;  %s2979_s5 = inlined_call_operand.hbm [shape: f32[512,128], index: 5, kind: output, shape index: {}]  }
   0x1   :  { %12 = vsyncpa [#allocation3 + $0x1], 0 }
   0x2   :  { %13 = vsyncpa [#allocation6], 0 }
   0x3   :  { %14 = vsyncpa [#allocation9], 0 }
   0x4   :  { %15 = vsyncpa [#allocation4], 0 }
   0x5   :  { %17 = vsyncpa [#allocation4 + $0x1], 0  ;;  %s2359_s18 = smov 0   ;;  %s2361_s19 = smov 0  }
   0x6   :  { %s2363_s20 = smov 0   ;;  %s2365_s21 = smov 0  }
   0x7 LB: > { %s2380_s22 = sadd.s32 4294967295, %s2318_s21   ;;  %s1625_s23 = sadd.s32 4294967294, %s2318_s21   ;;  %s2318_s21 = sphi %s2365_s21, %s2991_s21   ;;  %s2314_s20 = sphi %s2363_s20, %s2990_s20   ;;  %s2310_s19 = sphi %s2361_s19, %s2989_s19   ;;  %s2306_s18 = sphi %s2359_s18, %s2988_s18  }
   0x8   : > { %p43_p0 = scmp.ne.s32.totalorder %s2310_s19, %s2306_s18  ;;  %p44_p1 = scmp.eq.s32.totalorder %s2380_s22, 0 }
   0x9   : > { %p151_p2 = scmp.eq.s32.totalorder %s2380_s22, 3  ;;  %p157_p3 = scmp.eq.s32.totalorder %s1625_s23, 3 }
   0xa   : > { %p2389_p4 = por %p44_p1, %p43_p0  ;;  %p1626_p5 = scmp.ge.s32.totalorder %s2318_s21, 1 }
   0xb   : > { %p2394_p6 = por %p157_p3, %p43_p0  ;;  %p164_p7 = scmp.lt.s32.totalorder %s2318_s21, 5 }
   0xc   : > { %s175_s28 = sshll.u32 %s2975_s1, 4  ;;  %s2320_s30 = smov [#allocation5]   ;;  %s176_s28 = int_to_ptr.hbm [resolvable:$true] %s175_s28 }
   0xd   : > { %p2402_p8 = pnand %p1626_p5, %p164_p7  ;;  %s177_s6 = sshll.u32 %s2320_s30, 4  ;;  %s178_s6 = int_to_ptr.vmem [resolvable:$true] %s177_s6 }
   0xe   : > { %s190_s10 = sshll.u32 %s2976_s2, 4  ;;  %s2321_s11 = smov 192   ;;  %s191_s10 = int_to_ptr.hbm [resolvable:$true] %s190_s10 }
   0xf   : > { %p1959_p9 = pneg %p2402_p8  ;;  %s2322_s12 = smov 12  }
  0x10   : > { %s2323_s13 = smov [#allocation7]   ;;  %s201_s17 = sshll.u32 %s2977_s3, 4  ;;  %s202_s17 = int_to_ptr.hbm [resolvable:$true] %s201_s17 }
  0x11   : > { %p2410_p10 = pnand %p1959_p9, %p44_p1  ;;  %s192_s14 = sshll.u32 %s2323_s13, 4  ;;  %s193_s14 = int_to_ptr.vmem [resolvable:$true] %s192_s14 }
  0x12   : > { %s2324_s23 = smov [#allocation8]   ;;  %s2980_s27 = smov 64  }
  0x13   : > { %1962 = dma.hbm_to_vmem [thread:$0]  (!%p2410_p10), %s176_s28, 3072, %s178_s6, [#allocation6], %s2321_s11, %s2321_s11, %s2322_s12  }
  0x14   : > { %1965 = dma.hbm_to_vmem [thread:$0]  (!%p2410_p10), %s191_s10, 48, %s193_s14, [#allocation6]  }
  0x15   : > { %s203_s26 = sshll.u32 %s2324_s23, 4  ;;  %s2326_s28 = smov 4   ;;  %s204_s26 = int_to_ptr.vmem [resolvable:$true] %s203_s26 }
  0x16   : > { %1968 = dma.hbm_to_vmem [thread:$0]  (!%p2410_p10), %s202_s17, 3072, %s204_s26, [#allocation9], %s2980_s27, %s2980_s27, %s2326_s28  }
  0x17   : > { %s2430_s30 = sadd.s32 1, %s2318_s21   ;;  %s30_s8 = sadd.s32 1, %s2314_s20 }
  0x18   : > { %s27_s6 = ssub.s32 %s2318_s21, %s2430_s30  ;;  %p37_p12 = scmp.ne.s32.totalorder %s2314_s20, %s2310_s19 }
  0x19   : > { %p28_p11 = scmp.eq.s32.totalorder %s27_s6, 0  ;;  %p38_p13 = scmp.eq.s32.totalorder %s2318_s21, 0 }
  0x1a   : > { %p2443_p0 = por %p151_p2, %p37_p12  ;;  %p1980_p3 = scmp.lt.s32.totalorder %s2318_s21, 4 }
  0x1b   : > { %s2439_s9 = scalar_select %p28_p11, %s2314_s20, %s30_s8  }
  0x1c   : > { %s220_s7 = sand.u32 1, %s2314_s20   ;;  %s1869_s11 = sshll.u32 %s2318_s21, 6 }
  0x1d   : > { %p39_p5 = por %p38_p13, %p37_p12  ;;  %s1631_s12 = sshll.u32 %s220_s7, 6 }
  0x1e   : > { %s229_s15 = scalar_lea.hbm %s2974_s0, %s1869_s11  ;;  %s224_s17 = scalar_lea.vmem [#allocation2], %s1631_s12 }
  0x1f   : > { %s230_s16 = sshll.u32 %s229_s15, 4  ;;  %s232_s23 = sshll.u32 %s224_s17, 4  ;;  %s231_s16 = int_to_ptr.hbm [resolvable:$true] %s230_s16  ;;  %s233_s23 = int_to_ptr.vmem [resolvable:$true] %s232_s23 }
  0x20   : > { %p2453_p7 = pnand %p1980_p3, %p39_p5  ;;  %s221_s6 = scalar_lea.sflag [#allocation3], %s220_s7 }
  0x21   : > { %s2214_s8 = sshra.s32 %s231_s16, 4  ;;  %s2221_s12 = scalar_lea.hbm %s2974_s0, 256  ;;  %s2215_s8 = int_to_ptr.hbm [resolvable:$true] %s2214_s8 }
  0x22   : > { %s2216_s27 = scalar_lea.hbm %s2215_s8, 64  ;;  %p2218_p9 = pneg %p2453_p7 }
  0x23   : > { %p2217_p2 = scmp.ne.s32.totalorder %s2215_s8, %s2216_s27  ;;  %p2222_p12 = scmp.lt.s32.totalorder %s2215_s8, %s2974_s0 }
  0x24   : > { %p2223_p13 = scmp.lt.s32.totalorder %s2221_s12, %s2216_s27 }
  0x25   : > { %p2219_p10 = pnand %p2218_p9, %p2217_p2 }
  0x26   : > { %p2224_p3 = por %p2223_p13, %p2222_p12 }
  0x27   : > { %p2220_p11 = pneg %p2219_p10 }
  0x29   : > { %p2225_p5 = pnand %p2224_p3, %p2220_p11 }
  0x2b   : > { %2228 = shalt.err (!%p2225_p5)
}
  0x2c   : > { %s2987_s7 = smov 64   ;;  %244 = sbr.rel (%p2402_p8) target bundleno = 581 (0x245), region = 40 }
  0x2d   : > { %1972 = dma.hbm_to_vmem [thread:$0]  (!%p2453_p7), %s231_s16, 1024, %s233_s23, %s221_s6, %s2987_s7, %s2987_s7, %s2326_s28  }
  0x2e   : > { %s2473_s17 = sand.u32 (!%p2402_p8), 1, %s2310_s19  }
  0x2f   : > { %s1635_s8 = sshll.u32 (!%p2402_p8), %s2473_s17, 6  ;;  %s247_s27 = scalar_lea.sflag (!%p2402_p8), [#allocation3], %s2473_s17 }
  0x30   : > { %s2477_s11 = scalar_lea.vmem (!%p2402_p8), [#allocation2], %s1635_s8 }
  0x31   : > { %2289 = dma.done.wait (%p2389_p4), %s247_s27, 1024  }
  0x32   : > { %2291 = vsyncadd (%p2389_p4), %s247_s27, 4294966272 }
  0x33   : > { %2293 = dma.done.wait (%p44_p1), [#allocation6], 3120  }
  0x34   : > { %2295 = vsyncadd (%p44_p1), [#allocation6], 4294964176 }
  0x35   : > { %2297 = dma.done.wait (%p44_p1), [#allocation9], 3072  }
  0x36   : > { %2299 = vsyncadd (%p44_p1), [#allocation9], 4294964224  ;;  %v1730_v0 = vld [vmem:[#allocation5 + $0xa8] sm:$0xf]  ;;  %v1893_v1 = vld [vmem:[#allocation5 + $0xb0] sm:$0xf0] }
  0x37   : > { %v1722_v2 = vld [vmem:[#allocation5 + $0x90] sm:$0xf]  ;;  %v1731_v3 = vor.u32 %v1893_v1, %v1730_v0  ;;  %v1891_v4 = vld [vmem:[#allocation5 + $0x98] sm:$0xf0]  ;;  %v1714_v6 = vld [vmem:[#allocation5 + $0x78] sm:$0xf] }
  0x38   : > { %v1723_v5 = vor.u32 %v1891_v4, %v1722_v2  ;;  %v1889_v7 = vld [vmem:[#allocation5 + $0x80] sm:$0xf0]  ;;  %v1706_v9 = vld [vmem:[#allocation5 + $0x60] sm:$0xf]  ;;  %v1892_v10 = vld [vmem:[#allocation5 + $0xac] sm:$0xf] }
  0x39   : > { %461 = vmatpush.bf16.msra.mxu0 %v1731_v3  ;;  %1927 = vmatpush.bf16.msra.mxu2 %v1731_v3  ;;  %v1715_v8 = vor.u32 %v1889_v7, %v1714_v6  ;;  %v1732_v11 = vld [vmem:[#allocation5 + $0xb4] sm:$0xf0]  ;;  %v1887_v12 = vld [vmem:[#allocation5 + $0x68] sm:$0xf0]  ;;  %v1890_v14 = vld [vmem:[#allocation5 + $0x94] sm:$0xf] }
  0x3a   : > { %v1735_v13 = vor.u32 %v1892_v10, %v1732_v11  ;;  %v1724_v15 = vld [vmem:[#allocation5 + $0x9c] sm:$0xf0]  ;;  %v1707_v17 = vor.u32 %v1887_v12, %v1706_v9  ;;  %v1698_v18 = vld [vmem:[#allocation5 + $0x48] sm:$0xf]  ;;  %v1885_v19 = vld [vmem:[#allocation5 + $0x50] sm:$0xf0] }
  0x3b   : > { %v1727_v16 = vor.u32 %v1890_v14, %v1724_v15  ;;  %v1699_v20 = vor.u32 %v1885_v19, %v1698_v18  ;;  %v1690_v21 = vld [vmem:[#allocation5 + $0x30] sm:$0xf]  ;;  %v1883_v22 = vld [vmem:[#allocation5 + $0x38] sm:$0xf0]  ;;  %v1716_v24 = vld [vmem:[#allocation5 + $0x84] sm:$0xf0] }
  0x3c   : > { %510 = vmatpush.bf16.msra.mxu1 %v1735_v13  ;;  %1935 = vmatpush.bf16.msra.mxu3 %v1735_v13  ;;  %v1888_v23 = vld [vmem:[#allocation5 + $0x7c] sm:$0xf]  ;;  %v1886_v26 = vld [vmem:[#allocation5 + $0x64] sm:$0xf]  ;;  %v1691_v27 = vor.u32 %v1883_v22, %v1690_v21  ;;  %v1708_v28 = vld [vmem:[#allocation5 + $0x6c] sm:$0xf0] }
  0x3d   : > { %462 = vmatpush.bf16.msra.mxu0 %v1723_v5  ;;  %1928 = vmatpush.bf16.msra.mxu2 %v1723_v5  ;;  %v1719_v25 = vor.u32 %v1888_v23, %v1716_v24  ;;  %v1682_v29 = vld [vmem:[#allocation5 + $0x18] sm:$0xf]  ;;  %v1881_v30 = vld [vmem:[#allocation5 + $0x20] sm:$0xf0]  ;;  %v1711_v31 = vor.u32 %v1886_v26, %v1708_v28  ;;  %v1884_v32 = vld [vmem:[#allocation5 + $0x4c] sm:$0xf] }
  0x3e   : > { %v1700_v33 = vld [vmem:[#allocation5 + $0x54] sm:$0xf0]  ;;  %v1683_v34 = vor.u32 %v1881_v30, %v1682_v29  ;;  %v1674_v35 = vld [vmem:[#allocation5] sm:$0xf]  ;;  %v1879_v36 = vld [vmem:[#allocation5 + $0x8] sm:$0xf0] }
  0x3f   : > { %v1766_v37 = vld [vmem:[#allocation5 + $0xb0] sm:$0xf]  ;;  %v1703_v38 = vor.u32 %v1884_v32, %v1700_v33  ;;  %v1917_v39 = vld [vmem:[#allocation5 + $0xb8] sm:$0xf0]  ;;  %v1882_v40 = vld [vmem:[#allocation5 + $0x34] sm:$0xf]  ;;  %v1675_v42 = vor.u32 %v1879_v36, %v1674_v35 }
  0x40   : > { %511 = vmatpush.bf16.msra.mxu1 %v1727_v16  ;;  %1936 = vmatpush.bf16.msra.mxu3 %v1727_v16  ;;  %v1692_v41 = vld [vmem:[#allocation5 + $0x3c] sm:$0xf0]  ;;  %v1767_v43 = vor.u32 %v1917_v39, %v1766_v37  ;;  %v1762_v45 = vld [vmem:[#allocation5 + $0x98] sm:$0xf]  ;;  %v1916_v46 = vld [vmem:[#allocation5 + $0xa0] sm:$0xf0] }
  0x41   : > { %463 = vmatpush.bf16.msra.mxu0 %v1715_v8  ;;  %1929 = vmatpush.bf16.msra.mxu2 %v1715_v8  ;;  %v1695_v44 = vor.u32 %v1882_v40, %v1692_v41  ;;  %v2492_v47 = vld [vmem:[%s2477_s11] sm:$0xff]  ;;  %v1763_v49 = vor.u32 %v1916_v46, %v1762_v45  ;;  %v1915_v51 = vld [vmem:[#allocation5 + $0x88] sm:$0xf0]  ;;  %v1880_v52 = vld [vmem:[#allocation5 + $0x1c] sm:$0xf]  ;;  %s1639_s24 = sshll.u32 %s2473_s17, 7 }
  0x42   : > { %v2495_v48 = vld [vmem:[%s2477_s11 + $0x20] sm:$0xff]  ;;  %v1684_v53 = vld [vmem:[#allocation5 + $0x24] sm:$0xf0]  ;;  %v1676_v56 = vld [vmem:[#allocation5 + $0xc] sm:$0xf0]  ;;  %s2908_s16 = scalar_lea.vmem [#allocation10], %s1639_s24 }
  0x43   : > { %v1758_v50 = vld [vmem:[#allocation5 + $0x80] sm:$0xf]  ;;  %v1687_v54 = vor.u32 %v1880_v52, %v1684_v53  ;;  %v1878_v55 = vld [vmem:[#allocation5 + $0x4] sm:$0xf]  ;;  %v1754_v59 = vld [vmem:[#allocation5 + $0x68] sm:$0xf] }
  0x44   : > { %512 = vmatpush.bf16.msra.mxu1 %v1719_v25  ;;  %1937 = vmatpush.bf16.msra.mxu3 %v1719_v25  ;;  %v1759_v57 = vor.u32 %v1915_v51, %v1758_v50  ;;  %v1679_v58 = vor.u32 %v1878_v55, %v1676_v56  ;;  %v1914_v60 = vld [vmem:[#allocation5 + $0x70] sm:$0xf0]  ;;  %v1750_v62 = vld [vmem:[#allocation5 + $0x50] sm:$0xf]  ;;  %v1913_v63 = vld [vmem:[#allocation5 + $0x58] sm:$0xf0] }
  0x45   : > { %464 = vmatpush.bf16.msra.mxu0 %v1707_v17  ;;  %1930 = vmatpush.bf16.msra.mxu2 %v1707_v17  ;;  %v1755_v61 = vor.u32 %v1914_v60, %v1754_v59  ;;  %v1751_v0 = vor.u32 %v1913_v63, %v1750_v62  ;;  %v1746_v1 = vld [vmem:[#allocation5 + $0x38] sm:$0xf]  ;;  %v1912_v2 = vld [vmem:[#allocation5 + $0x40] sm:$0xf0]  ;;  %v1871_v3 = vld [vmem:[%s2477_s11 + $0x8] sm:$0xff]  ;;  %s1926_s23 = sshll.u32 %s2380_s22, 7 }
  0x46   : > { %v2503_v4 = vld [vmem:[%s2477_s11 + $0x28] sm:$0xff]  ;;  %v1747_v5 = vor.u32 %v1912_v2, %v1746_v1  ;;  %v1742_v6 = vld [vmem:[#allocation5 + $0x20] sm:$0xf]  ;;  %v1910_v10 = vld [vmem:[#allocation5 + $0x10] sm:$0xf0]  ;;  %s1519_s13 = scalar_lea.hbm %s2979_s5, %s1926_s23  ;;  %s1520_s12 = sshll.u32 %s2908_s16, 4  ;;  %s1521_s12 = int_to_ptr.vmem [resolvable:$true] %s1520_s12 }
  0x47   : > { %v1911_v7 = vld [vmem:[#allocation5 + $0x28] sm:$0xf0]  ;;  %v1738_v9 = vld [vmem:[#allocation5 + $0x8] sm:$0xf]  ;;  %v1872_v12 = vld [vmem:[%s2477_s11 + $0x10] sm:$0xff]  ;;  %s1522_s14 = sshll.u32 %s1519_s13, 4  ;;  %s1523_s14 = int_to_ptr.hbm [resolvable:$true] %s1522_s14 }
  0x48   : > { %513 = vmatpush.bf16.msra.mxu1 %v1711_v31  ;;  %1938 = vmatpush.bf16.msra.mxu3 %v1711_v31  ;;  %v1743_v8 = vor.u32 %v1911_v7, %v1742_v6  ;;  %v1739_v11 = vor.u32 %v1910_v10, %v1738_v9  ;;  %v2509_v13 = vld [vmem:[%s2477_s11 + $0x30] sm:$0xff]  ;;  %v1873_v14 = vld [vmem:[%s2477_s11 + $0x18] sm:$0xff]  ;;  %v1898_v19 = vld [vmem:[#allocation8 + $0x20] sm:$0xff]  ;;  %s1508_s22 = scalar_lea.sflag [#allocation4], %s2473_s17  ;;  %s2258_s15 = sshra.s32 %s1523_s14, 4  ;;  %s2259_s15 = int_to_ptr.hbm [resolvable:$true] %s2258_s15 }
  0x49   : > { %465 = vmatpush.bf16.msra.mxu0 %v1699_v20  ;;  %1931 = vmatpush.bf16.msra.mxu2 %v1699_v20  ;;  %v2515_v15 = vld [vmem:[%s2477_s11 + $0x38] sm:$0xff]  ;;  %v1899_v18 = vld [vmem:[#allocation8 + $0x28] sm:$0xff]  ;;  %v327_v23 = vld [vmem:[#allocation7] sm:$0x3]  ;;  %s2260_s7 = scalar_lea.hbm %s2259_s15, 128  ;;  %s2264_s11 = scalar_lea.hbm %s2979_s5, 512 }
  0x4a   : > { %v1901_v16 = vld [vmem:[#allocation8 + $0x38] sm:$0xff]  ;;  %v1900_v17 = vld [vmem:[#allocation8 + $0x30] sm:$0xff]  ;;  %v1895_v22 = vld [vmem:[#allocation8 + $0x8] sm:$0xff]  ;;  %v2520_v24 = vperm.slane %v327_v23, 0  ;;  %p2261_p1 = scmp.ne.s32.totalorder %s2259_s15, %s2260_s7  ;;  %p2265_p7 = scmp.lt.s32.totalorder %s2259_s15, %s2979_s5 }
  0x4b   : > { %v1897_v20 = vld [vmem:[#allocation8 + $0x18] sm:$0xff]  ;;  %v1896_v21 = vld [vmem:[#allocation8 + $0x10] sm:$0xff]  ;;  %v1894_v25 = vld [vmem:[#allocation8] sm:$0xff]  ;;  %p2266_p2 = scmp.lt.s32.totalorder %s2264_s11, %s2260_s7 }
  0x4c   : > { %514 = vmatpush.bf16.msra.mxu1 %v1703_v38  ;;  %1939 = vmatpush.bf16.msra.mxu3 %v1703_v38  ;;  %v1909_v41 = vld [vmem:[#allocation8 + $0x78] sm:$0xff]  ;;  %v1908_v50 = vld [vmem:[#allocation8 + $0x70] sm:$0xff]  ;;  %v1907_v1 = vld [vmem:[#allocation8 + $0x68] sm:$0xff]  ;;  %p2262_p4 = pnand %p2261_p1, %p2443_p0 }
  0x4d   : > { %466 = vmatpush.bf16.msra.mxu0 %v1691_v27  ;;  %1932 = vmatpush.bf16.msra.mxu2 %v1691_v27  ;;  %p2267_p9 = por %p2266_p2, %p2265_p7 }
  0x4e   : > { %p2263_p8 = pneg %p2262_p4 }
  0x50   : > { %515 = vmatpush.bf16.msra.mxu1 %v1695_v44  ;;  %1940 = vmatpush.bf16.msra.mxu3 %v1695_v44  ;;  %p2268_p10 = pnand %p2267_p9, %p2263_p8 }
  0x51   : > { %467 = vmatpush.bf16.msra.mxu0 %v1683_v34  ;;  %1933 = vmatpush.bf16.msra.mxu2 %v1683_v34 }
  0x54   : > { %516 = vmatpush.bf16.msra.mxu1 %v1687_v54  ;;  %1941 = vmatpush.bf16.msra.mxu3 %v1687_v54  ;;  %v1925_v54 = vld [vmem:[#allocation8 + $0xb8] sm:$0xff] }
  0x55   : > { %468 = vmatpush.bf16.msra.mxu0 %v1675_v42  ;;  %1934 = vmatpush.bf16.msra.mxu2 %v1675_v42 }
  0x58   : > { %469 = vmatmul.bf16.vlgmr.msra.gmra.mxu0 %v2492_v47  ;;  %489 = vmatmul.bf16.vlgmr.msra.gmra.mxu2 %v2495_v48 }
  0x59   : > { %963 = vmatpush.bf16.msrb.mxu2 %v1767_v43  ;;  %517 = vmatpush.bf16.msra.mxu1 %v1679_v58 }
  0x5a   : > { %1942 = vmatpush.bf16.msra.mxu3 %v1679_v58  ;;  %1373 = vmatpush.bf16.msrb.mxu0 %v1901_v16  ;;  %v1906_v16 = vld [vmem:[#allocation8 + $0x60] sm:$0xff] }
  0x5c   : > { %518 = vmatmul.bf16.vlgmr.msra.gmra.mxu1 %v2492_v47 }
  0x5d   : > { %964 = vmatpush.bf16.msrb.mxu2 %v1763_v49  ;;  %538 = vmatmul.bf16.vlgmr.msra.gmra.mxu3 %v2495_v48  ;;  %v2546_v49 = vperm.slane %v327_v23, 1 }
  0x5e   : > { %1374 = vmatpush.bf16.msrb.mxu0 %v1900_v17  ;;  %1422 = vmatpush.bf16.msrb.mxu1 %v1909_v41 }
  0x5f   : > { %1228 = vmatpush.bf16.msrb.mxu3 %v1925_v54 }
  0x61   : > { %965 = vmatpush.bf16.msrb.mxu2 %v1759_v57 }
  0x62   : > { %1375 = vmatpush.bf16.msrb.mxu0 %v1899_v18  ;;  %1423 = vmatpush.bf16.msrb.mxu1 %v1908_v50 }
  0x65   : > { %966 = vmatpush.bf16.msrb.mxu2 %v1755_v61 }
  0x66   : > { %1376 = vmatpush.bf16.msrb.mxu0 %v1898_v19  ;;  %1424 = vmatpush.bf16.msrb.mxu1 %v1907_v1 }
  0x68   : > { %474 = vmatmul.bf16.gmra.mxu0 %v1871_v3  ;;  %494 = vmatmul.bf16.gmra.mxu2 %v2503_v4 }
  0x69   : > { %967 = vmatpush.bf16.msrb.mxu2 %v1751_v0 }
  0x6a   : > { %1377 = vmatpush.bf16.msrb.mxu0 %v1897_v20  ;;  %1425 = vmatpush.bf16.msrb.mxu1 %v1906_v16 }
  0x6c   : > { %523 = vmatmul.bf16.gmra.mxu1 %v1871_v3 }
  0x6d   : > { %968 = vmatpush.bf16.msrb.mxu2 %v1747_v5  ;;  %543 = vmatmul.bf16.gmra.mxu3 %v2503_v4 }
  0x6e   : > { %1378 = vmatpush.bf16.msrb.mxu0 %v1896_v21  ;;  %v1924_v21 = vld [vmem:[#allocation8 + $0xb0] sm:$0xff] }
  0x6f   : > { %1229 = vmatpush.bf16.msrb.mxu3 %v1924_v21 }
  0x71   : > { %969 = vmatpush.bf16.msrb.mxu2 %v1743_v8 }
  0x72   : > { %1379 = vmatpush.bf16.msrb.mxu0 %v1895_v22 }
  0x75   : > { %970 = vmatpush.bf16.msrb.mxu2 %v1739_v11 }
  0x76   : > { %1380 = vmatpush.bf16.msrb.mxu0 %v1894_v25 }
  0x78   : > { %479 = vmatmul.bf16.gmra.mxu0 %v1872_v12  ;;  %499 = vmatmul.bf16.gmra.mxu2 %v2509_v13 }
  0x7c   : > { %528 = vmatmul.bf16.gmra.mxu1 %v1872_v12 }
  0x7d   : > { %548 = vmatmul.bf16.gmra.mxu3 %v2509_v13 }
  0x88   : > { %484 = vmatmul.bf16.gmra.mxu0 %v1873_v14  ;;  %504 = vmatmul.bf16.gmra.mxu2 %v2515_v15 }
  0x8c   : > { %533 = vmatmul.bf16.gmra.mxu1 %v1873_v14 }
  0x8d   : > { %553 = vmatmul.bf16.gmra.mxu3 %v2515_v15 }
  0x98   : > { %971 = vmatmul.bf16.vlgmr.msrb.gmra.mxu2 %v2492_v47 }
  0xa8   : > { %976 = vmatmul.bf16.gmra.mxu2 %v1871_v3 }
  0xb8   : > { %981 = vmatmul.bf16.gmra.mxu2 %v1872_v12 }
  0xc8   : > { %986 = vmatmul.bf16.gmra.mxu2 %v1873_v14 }
  0xd5   : > { %v470_v26 = vpop.f32.mrf.mxu0 }
  0xd6   : > { %v2523_v27 = vadd.f32 %v470_v26, %v2520_v24 }
  0xd8   : > { %v559_v28 = vmul.f32 %v2523_v27, %v2523_v27  ;;  %991 = vmatmul.bf16.gmra.mxu2 %v2495_v48 }
  0xd9   : > { %v519_v37 = vpop.f32.mrf.mxu1 }
  0xda   : > { %v591_v29 = vmul.f32 %v559_v28, %v2523_v27  ;;  %v2555_v57 = vadd.f32 %v519_v37, %v2546_v49 }
  0xdb   : > { %v490_v30 = vpop.f32.mrf.mxu2 }
  0xdc   : > { %v623_v31 = vmul.f32 0.044715, %v591_v29  ;;  %v2530_v32 = vadd.f32 %v490_v30, %v2520_v24  ;;  %v560_v63 = vmul.f32 %v2555_v57, %v2555_v57 }
  0xdd   : > { %v472_v33 = vpop.f32.mrf.mxu0 }
  0xde   : > { %v655_v34 = vadd.f32 %v623_v31, %v2523_v27  ;;  %v575_v35 = vmul.f32 %v2530_v32, %v2530_v32  ;;  %v2536_v36 = vadd.f32 %v472_v33, %v2520_v24  ;;  %v592_v7 = vmul.f32 %v560_v63, %v2555_v57 }
  0xe0   : > { %v687_v38 = vmul.f32 0.7978846, %v655_v34  ;;  %v607_v39 = vmul.f32 %v575_v35, %v2530_v32  ;;  %v561_v40 = vmul.f32 %v2536_v36, %v2536_v36  ;;  %v624_v12 = vmul.f32 0.044715, %v592_v7 }
  0xe1   : > { %v521_v55 = vpop.f32.mrf.mxu1 }
  0xe2   : > { %2028 = vtanh.f32 %v687_v38  ;;  %v639_v42 = vmul.f32 0.044715, %v607_v39  ;;  %v593_v43 = vmul.f32 %v561_v40, %v2536_v36  ;;  %v2558_v58 = vadd.f32 %v521_v55, %v2546_v49  ;;  %v1905_v39 = vld [vmem:[#allocation8 + $0x58] sm:$0xff] }
  0xe3   : > { %v492_v44 = vpop.f32.mrf.mxu2  ;;  %v656_v26 = vadd.f32 %v624_v12, %v2555_v57  ;;  %1426 = vmatpush.bf16.msrb.mxu1 %v1905_v39 }
  0xe4   : > { %v671_v45 = vadd.f32 %v639_v42, %v2530_v32  ;;  %v625_v46 = vmul.f32 0.044715, %v593_v43  ;;  %v2544_v47 = vadd.f32 %v492_v44, %v2520_v24  ;;  %v562_v0 = vmul.f32 %v2558_v58, %v2558_v58 }
  0xe5   : > { %v475_v48 = vpop.f32.mrf.mxu0  ;;  %v688_v37 = vmul.f32 0.7978846, %v656_v26 }
  0xe6   : > { %v657_v51 = vadd.f32 %v625_v46, %v2536_v36  ;;  %v577_v52 = vmul.f32 %v2544_v47, %v2544_v47  ;;  %v2552_v53 = vadd.f32 %v475_v48, %v2520_v24  ;;  %v703_v56 = vmul.f32 0.7978846, %v671_v45 }
  0xe7   : > { %v594_v8 = vmul.f32 %v562_v0, %v2558_v58 }
  0xe8   : > { %v2029_v59 = vpop.eup %2028  ;;  %v689_v60 = vmul.f32 0.7978846, %v657_v51  ;;  %v609_v61 = vmul.f32 %v577_v52, %v2544_v47  ;;  %v563_v62 = vmul.f32 %v2552_v53, %v2552_v53  ;;  %996 = vmatmul.bf16.gmra.mxu2 %v2503_v4  ;;  %2030 = vtanh.f32 %v703_v56  ;;  %v1904_v52 = vld [vmem:[#allocation8 + $0x50] sm:$0xff] }
  0xe9   : > { %v751_v6 = vadd.f32 1.0, %v2029_v59  ;;  %v626_v14 = vmul.f32 0.044715, %v594_v8  ;;  %v524_v22 = vpop.f32.mrf.mxu1  ;;  %1427 = vmatpush.bf16.msrb.mxu1 %v1904_v52 }
  0xea   : > { %2032 = vtanh.f32 %v689_v60  ;;  %v641_v2 = vmul.f32 0.044715, %v609_v61  ;;  %v595_v3 = vmul.f32 %v563_v62, %v2552_v53  ;;  %v2600_v60 = vadd.f32 %v524_v22, %v2546_v49  ;;  %v1923_v61 = vld [vmem:[#allocation8 + $0xa8] sm:$0xff] }
  0xeb   : > { %v495_v5 = vpop.f32.mrf.mxu2  ;;  %v783_v25 = vmul.f32 0.5, %v751_v6  ;;  %v658_v28 = vadd.f32 %v626_v14, %v2558_v58  ;;  %1230 = vmatpush.bf16.msrb.mxu3 %v1923_v61 }
  0xec   : > { %v673_v4 = vadd.f32 %v641_v2, %v2544_v47  ;;  %v627_v9 = vmul.f32 0.044715, %v595_v3  ;;  %v2573_v10 = vadd.f32 %v495_v5, %v2520_v24  ;;  %v564_v7 = vmul.f32 %v2600_v60, %v2600_v60 }
  0xed   : > { %v477_v11 = vpop.f32.mrf.mxu0  ;;  %v690_v38 = vmul.f32 0.7978846, %v658_v28  ;;  %v815_v44 = vmul.f32 %v783_v25, %v2523_v27 }
  0xee   : > { %v2031_v17 = vpop.eup %2030  ;;  %v659_v18 = vadd.f32 %v627_v9, %v2552_v53  ;;  %v579_v19 = vmul.f32 %v2573_v10, %v2573_v10  ;;  %v2579_v20 = vadd.f32 %v477_v11, %v2520_v24  ;;  %v705_v23 = vmul.f32 0.7978846, %v673_v4  ;;  %v1903_v11 = vld [vmem:[#allocation8 + $0x48] sm:$0xff] }
  0xef   : > { %v767_v29 = vadd.f32 1.0, %v2031_v17  ;;  %1428 = vmatpush.bf16.msrb.mxu1 %v1903_v11 }
  0xf0   : > { %v2033_v30 = vpop.eup %2032  ;;  %v611_v31 = vmul.f32 %v579_v19, %v2573_v10  ;;  %v565_v33 = vmul.f32 %v2579_v20, %v2579_v20  ;;  %v691_v34 = vmul.f32 0.7978846, %v659_v18  ;;  %2034 = vtanh.f32 %v705_v23 }
  0xf1   : > { %v753_v35 = vadd.f32 1.0, %v2033_v30  ;;  %v799_v54 = vmul.f32 0.5, %v767_v29  ;;  %v526_v62 = vpop.f32.mrf.mxu1  ;;  %v596_v18 = vmul.f32 %v564_v7, %v2600_v60  ;;  %v1922_v29 = vld [vmem:[#allocation8 + $0xa0] sm:$0xff] }
  0xf2   : > { %v643_v40 = vmul.f32 0.044715, %v611_v31  ;;  %v597_v41 = vmul.f32 %v565_v33, %v2579_v20  ;;  %2036 = vtanh.f32 %v691_v34  ;;  %v2603_v0 = vadd.f32 %v526_v62, %v2546_v49  ;;  %v1902_v34 = vld [vmem:[#allocation8 + $0x40] sm:$0xff]  ;;  %1231 = vmatpush.bf16.msrb.mxu3 %v1922_v29 }
  0xf3   : > { %v497_v42 = vpop.f32.mrf.mxu2  ;;  %v785_v43 = vmul.f32 0.5, %v753_v35  ;;  %2038 = vtanh.f32 %v688_v37  ;;  %v2614_v14 = vmul.f32 %v799_v54, %v2530_v32  ;;  %v628_v28 = vmul.f32 0.044715, %v596_v18  ;;  %1429 = vmatpush.bf16.msrb.mxu1 %v1902_v34 }
  0xf4   : > { %v675_v45 = vadd.f32 %v643_v40, %v2573_v10  ;;  %v629_v46 = vmul.f32 0.044715, %v597_v41  ;;  %v2590_v48 = vadd.f32 %v497_v42, %v2520_v24  ;;  %2040 = vtanh.f32 %v690_v38 }
  0xf5   : > { %v480_v50 = vpop.f32.mrf.mxu0  ;;  %v817_v51 = vmul.f32 %v785_v43, %v2536_v36  ;;  %v566_v9 = vmul.f32 %v2603_v0, %v2603_v0  ;;  %v660_v41 = vadd.f32 %v628_v28, %v2600_v60 }
  0xf6   : > { %v2035_v55 = vpop.eup %2034  ;;  %v661_v56 = vadd.f32 %v629_v46, %v2579_v20  ;;  %v581_v27 = vmul.f32 %v2590_v48, %v2590_v48  ;;  %v2597_v59 = vadd.f32 %v480_v50, %v2520_v24  ;;  %v707_v1 = vmul.f32 0.7978846, %v675_v45 }
  0xf7   : > { %v847_v63 = vpack.c.bf16 %v817_v51, %v815_v44  ;;  %v769_v36 = vadd.f32 1.0, %v2035_v55  ;;  %v598_v21 = vmul.f32 %v566_v9, %v2603_v0  ;;  %v692_v62 = vmul.f32 0.7978846, %v660_v41 }
  0xf8   : > { %v2037_v2 = vpop.eup %2036  ;;  %v613_v3 = vmul.f32 %v581_v27, %v2590_v48  ;;  %v567_v5 = vmul.f32 %v2597_v59, %v2597_v59  ;;  %1001 = vmatmul.bf16.gmra.mxu2 %v2509_v13  ;;  %v693_v6 = vmul.f32 0.7978846, %v661_v56 }
  0xf9   : > { %v2039_v8 = vpop.eup %2038  ;;  %1381 = vmatmul.bf16.vlgmr.msrb.gmra.mxu0 %v847_v63  ;;  %v755_v4 = vadd.f32 1.0, %v2037_v2  ;;  %v801_v12 = vmul.f32 0.5, %v769_v36  ;;  %v630_v33 = vmul.f32 0.044715, %v598_v21  ;;  %v529_v42 = vpop.f32.mrf.mxu1 }
  0xfa   : > { %v2041_v16 = vpop.eup %2040  ;;  %v645_v17 = vmul.f32 0.044715, %v613_v3  ;;  %v599_v13 = vmul.f32 %v567_v5, %v2597_v59  ;;  %2042 = vtanh.f32 %v693_v6  ;;  %v752_v22 = vadd.f32 1.0, %v2039_v8 }
  0xfb   : > { %v500_v19 = vpop.f32.mrf.mxu2  ;;  %v754_v23 = vadd.f32 1.0, %v2041_v16  ;;  %2044 = vtanh.f32 %v707_v1  ;;  %v787_v31 = vmul.f32 0.5, %v755_v4  ;;  %v662_v43 = vadd.f32 %v630_v33, %v2603_v0 }
  0xfc   : > { %v677_v25 = vadd.f32 %v645_v17, %v2590_v48  ;;  %v631_v26 = vmul.f32 0.044715, %v599_v13  ;;  %v2621_v32 = vadd.f32 %v500_v19, %v2520_v24  ;;  %v784_v35 = vmul.f32 0.5, %v752_v22  ;;  %v1921_v22 = vld [vmem:[#allocation8 + $0x98] sm:$0xff] }
  0xfd   : > { %v482_v30 = vpop.f32.mrf.mxu0  ;;  %v786_v37 = vmul.f32 0.5, %v754_v23  ;;  %v2634_v46 = vmul.f32 %v801_v12, %v2544_v47  ;;  %v694_v63 = vmul.f32 0.7978846, %v662_v43  ;;  %v819_v2 = vmul.f32 %v787_v31, %v2552_v53  ;;  %1232 = vmatpush.bf16.msrb.mxu3 %v1921_v22 }
  0xfe   : > { %v663_v38 = vadd.f32 %v631_v26, %v2597_v59  ;;  %v583_v39 = vmul.f32 %v2621_v32, %v2621_v32  ;;  %v2627_v40 = vadd.f32 %v482_v30, %v2520_v24  ;;  %v816_v44 = vmul.f32 %v784_v35, %v2555_v57 }
  0xff   : > { %v818_v45 = vmul.f32 %v786_v37, %v2558_v58  ;;  %v709_v55 = vmul.f32 0.7978846, %v677_v25  ;;  %v855_v47 = vpack.c.bf16 %v2634_v46, %v2614_v14  ;;  %v2655_v16 = vadd.f32 %v529_v42, %v2546_v49 }
 0x100   : > { %v2043_v50 = vpop.eup %2042  ;;  %v615_v51 = vmul.f32 %v583_v39, %v2621_v32  ;;  %v569_v52 = vmul.f32 %v2627_v40, %v2627_v40  ;;  %v695_v54 = vmul.f32 0.7978846, %v663_v38 }
 0x101   : > { %v2045_v56 = vpop.eup %2044  ;;  %v757_v27 = vadd.f32 1.0, %v2043_v50  ;;  %v848_v61 = vpack.c.bf16 %v818_v45, %v816_v44  ;;  %v531_v53 = vpop.f32.mrf.mxu1  ;;  %v568_v26 = vmul.f32 %v2655_v16, %v2655_v16 }
 0x102   : > { %v647_v36 = vmul.f32 0.044715, %v615_v51  ;;  %v601_v57 = vmul.f32 %v569_v52, %v2627_v40  ;;  %2046 = vtanh.f32 %v695_v54  ;;  %v2658_v17 = vadd.f32 %v531_v53, %v2546_v49 }
 0x103   : > { %v502_v58 = vpop.f32.mrf.mxu2  ;;  %v789_v1 = vmul.f32 0.5, %v757_v27  ;;  %1430 = vmatmul.bf16.vlgmr.msrb.gmra.mxu1 %v848_v61  ;;  %2048 = vtanh.f32 %v692_v62  ;;  %v771_v13 = vadd.f32 1.0, %v2045_v56  ;;  %v600_v35 = vmul.f32 %v568_v26, %v2655_v16 }
 0x104   : > { %v633_v3 = vmul.f32 0.044715, %v601_v57  ;;  %v2644_v5 = vadd.f32 %v502_v58, %v2520_v24  ;;  %2050 = vtanh.f32 %v694_v63  ;;  %v679_v6 = vadd.f32 %v647_v36, %v2621_v32 }
 0x105   : > { %v485_v7 = vpop.f32.mrf.mxu0  ;;  %v821_v8 = vmul.f32 %v789_v1, %v2579_v20  ;;  %2052 = vtanh.f32 %v709_v55  ;;  %v570_v28 = vmul.f32 %v2658_v17, %v2658_v17  ;;  %v803_v39 = vmul.f32 0.5, %v771_v13 }
 0x106   : > { %v665_v4 = vadd.f32 %v633_v3, %v2627_v40  ;;  %v585_v9 = vmul.f32 %v2644_v5, %v2644_v5  ;;  %v2652_v11 = vadd.f32 %v485_v7, %v2520_v24  ;;  %v711_v29 = vmul.f32 0.7978846, %v679_v6  ;;  %v1920_v6 = vld [vmem:[#allocation8 + $0x90] sm:$0xff] }
 0x107   : > { %v849_v12 = vpack.c.bf16 %v821_v8, %v819_v2  ;;  %v602_v37 = vmul.f32 %v570_v28, %v2658_v17  ;;  %v632_v52 = vmul.f32 0.044715, %v600_v35  ;;  %v2684_v58 = vmul.f32 %v803_v39, %v2573_v10  ;;  %1233 = vmatpush.bf16.msrb.mxu3 %v1920_v6  ;;  %v2713_v39 = vld [vmem:[#allocation7 + $0x2] ss:$0 sm:$0xff] }
 0x108   : > { %v2047_v18 = vpop.eup %2046  ;;  %v617_v20 = vmul.f32 %v585_v9, %v2644_v5  ;;  %v571_v19 = vmul.f32 %v2652_v11, %v2652_v11  ;;  %1006 = vmatmul.bf16.gmra.mxu2 %v2515_v15  ;;  %v697_v21 = vmul.f32 0.7978846, %v665_v4 }
 0x109   : > { %v2049_v23 = vpop.eup %2048  ;;  %1386 = vmatmul.bf16.gmra.mxu0 %v849_v12  ;;  %v759_v25 = vadd.f32 1.0, %v2047_v18  ;;  %v534_v61 = vpop.f32.mrf.mxu1  ;;  %v634_v63 = vmul.f32 0.044715, %v602_v37  ;;  %v664_v10 = vadd.f32 %v632_v52, %v2655_v16 }
 0x10a   : > { %v2051_v30 = vpop.eup %2050  ;;  %v649_v31 = vmul.f32 0.044715, %v617_v20  ;;  %v603_v33 = vmul.f32 %v571_v19, %v2652_v11  ;;  %2054 = vtanh.f32 %v697_v21  ;;  %v756_v34 = vadd.f32 1.0, %v2049_v23 }
 0x10b   : > { %v505_v15 = vpop.f32.mrf.mxu2  ;;  %v758_v38 = vadd.f32 1.0, %v2051_v30  ;;  %v2053_v41 = vpop.eup %2052  ;;  %v791_v51 = vmul.f32 0.5, %v759_v25  ;;  %2056 = vtanh.f32 %v711_v29  ;;  %v666_v19 = vadd.f32 %v634_v63, %v2658_v17  ;;  %v1919_v25 = vld [vmem:[#allocation8 + $0x88] sm:$0xff] }
 0x10c   : > { %v681_v42 = vadd.f32 %v649_v31, %v2644_v5  ;;  %v635_v43 = vmul.f32 0.044715, %v603_v33  ;;  %v2673_v44 = vadd.f32 %v505_v15, %v2520_v24  ;;  %v788_v45 = vmul.f32 0.5, %v756_v34  ;;  %1234 = vmatpush.bf16.msrb.mxu3 %v1919_v25 }
 0x10d   : > { %v487_v50 = vpop.f32.mrf.mxu0  ;;  %v790_v54 = vmul.f32 0.5, %v758_v38  ;;  %v773_v57 = vadd.f32 1.0, %v2053_v41  ;;  %v823_v9 = vmul.f32 %v791_v51, %v2597_v59  ;;  %v2702_v28 = vadd.f32 %v534_v61, %v2546_v49  ;;  %v1918_v51 = vld [vmem:[#allocation8 + $0x80] sm:$0xff] }
 0x10e   : > { %v667_v55 = vadd.f32 %v635_v43, %v2652_v11  ;;  %v587_v56 = vmul.f32 %v2673_v44, %v2673_v44  ;;  %v2679_v27 = vadd.f32 %v487_v50, %v2520_v24  ;;  %v820_v62 = vmul.f32 %v788_v45, %v2600_v60 }
 0x10f   : > { %v822_v36 = vmul.f32 %v790_v54, %v2603_v0  ;;  %v713_v8 = vmul.f32 0.7978846, %v681_v42  ;;  %v805_v53 = vmul.f32 0.5, %v773_v57  ;;  %v696_v33 = vmul.f32 0.7978846, %v664_v10 }
 0x110   : > { %v2055_v1 = vpop.eup %2054  ;;  %v619_v2 = vmul.f32 %v587_v56, %v2673_v44  ;;  %v573_v3 = vmul.f32 %v2679_v27, %v2679_v27  ;;  %v699_v7 = vmul.f32 0.7978846, %v667_v55  ;;  %v572_v43 = vmul.f32 %v2702_v28, %v2702_v28  ;;  %1235 = vmatpush.bf16.msrb.mxu3 %v1918_v51 }
 0x111   : > { %v761_v4 = vadd.f32 1.0, %v2055_v1  ;;  %v850_v60 = vpack.c.bf16 %v822_v36, %v820_v62  ;;  %v2057_v13 = vpop.eup %2056  ;;  %v2694_v21 = vmul.f32 %v805_v53, %v2590_v48  ;;  %v536_v31 = vpop.f32.mrf.mxu1 }
 0x112   : > { %v651_v12 = vmul.f32 0.044715, %v619_v2  ;;  %v605_v0 = vmul.f32 %v573_v3, %v2679_v27  ;;  %2058 = vtanh.f32 %v699_v7  ;;  %v775_v34 = vadd.f32 1.0, %v2057_v13 }
 0x113   : > { %v507_v18 = vpop.f32.mrf.mxu2  ;;  %v793_v20 = vmul.f32 0.5, %v761_v4  ;;  %1435 = vmatmul.bf16.gmra.mxu1 %v850_v60  ;;  %2060 = vtanh.f32 %v713_v8  ;;  %v857_v29 = vpack.c.bf16 %v2694_v21, %v2684_v58  ;;  %v2710_v15 = vadd.f32 %v536_v31, %v2546_v49 }
 0x114   : > { %v683_v59 = vadd.f32 %v651_v12, %v2673_v44  ;;  %v637_v22 = vmul.f32 0.044715, %v605_v0  ;;  %v2698_v23 = vadd.f32 %v507_v18, %v2520_v24  ;;  %2062 = vtanh.f32 %v696_v33 }
 0x115   : > { %v825_v26 = vmul.f32 %v793_v20, %v2627_v40  ;;  %v698_v40 = vmul.f32 0.7978846, %v666_v19  ;;  %v574_v45 = vmul.f32 %v2710_v15, %v2710_v15  ;;  %v807_v54 = vmul.f32 0.5, %v775_v34 }
 0x116   : > { %v669_v30 = vadd.f32 %v637_v22, %v2679_v27  ;;  %v589_v48 = vmul.f32 %v2698_v23, %v2698_v23  ;;  %v715_v35 = vmul.f32 0.7978846, %v683_v59  ;;  %v604_v36 = vmul.f32 %v572_v43, %v2702_v28 }
 0x117   : > { %v851_v24 = vpack.c.bf16 %v825_v26, %v823_v9  ;;  %2064 = vtanh.f32 %v698_v40  ;;  %v606_v57 = vmul.f32 %v574_v45, %v2710_v15  ;;  %v2728_v3 = vmul.f32 %v807_v54, %v2621_v32  ;;  %v539_v26 = vpop.f32.mrf.mxu3 }
 0x118   : > { %v2059_v37 = vpop.eup %2058  ;;  %v621_v38 = vmul.f32 %v589_v48, %v2698_v23  ;;  %v701_v41 = vmul.f32 0.7978846, %v669_v30  ;;  %v636_v18 = vmul.f32 0.044715, %v604_v36 }
 0x119   : > { %v2061_v42 = vpop.eup %2060  ;;  %1391 = vmatmul.bf16.gmra.mxu0 %v851_v24  ;;  %v763_v56 = vadd.f32 1.0, %v2059_v37  ;;  %v638_v32 = vmul.f32 0.044715, %v606_v57  ;;  %v2747_v37 = vadd.f32 %v539_v26, %v2546_v49 }
 0x11a   : > { %v653_v50 = vmul.f32 0.044715, %v621_v38  ;;  %2066 = vtanh.f32 %v701_v41  ;;  %v777_v52 = vadd.f32 1.0, %v2061_v42  ;;  %v2063_v1 = vpop.eup %2062  ;;  %v668_v40 = vadd.f32 %v636_v18, %v2702_v28 }
 0x11b   : > { %v972_v55 = vpop.f32.mrf.mxu2  ;;  %2068 = vtanh.f32 %v715_v35  ;;  %v795_v4 = vmul.f32 0.5, %v763_v56  ;;  %v760_v9 = vadd.f32 1.0, %v2063_v1  ;;  %v670_v35 = vadd.f32 %v638_v32, %v2710_v15 }
 0x11c   : > { %v685_v61 = vadd.f32 %v653_v50, %v2698_v23  ;;  %v2721_v62 = vadd.f32 %v2713_v39, %v972_v55  ;;  %v809_v63 = vmul.f32 0.5, %v777_v52  ;;  %v700_v50 = vmul.f32 0.7978846, %v668_v40 }
 0x11d   : > { %v2065_v8 = vpop.eup %2064  ;;  %v792_v20 = vmul.f32 0.5, %v760_v9  ;;  %v827_v25 = vmul.f32 %v795_v4, %v2652_v11  ;;  %v702_v51 = vmul.f32 0.7978846, %v670_v35 }
 0x11e   : > { %v1012_v2 = vmul.f32 %v2721_v62, %v2721_v62  ;;  %v2731_v6 = vmul.f32 %v809_v63, %v2644_v5  ;;  %v717_v7 = vmul.f32 0.7978846, %v685_v61  ;;  %v762_v12 = vadd.f32 1.0, %v2065_v8 }
 0x11f   : > { %v824_v30 = vmul.f32 %v792_v20, %v2655_v16  ;;  %v541_v56 = vpop.f32.mrf.mxu3 }
 0x120   : > { %v2067_v60 = vpop.eup %2066  ;;  %v1028_v53 = vmul.f32 %v1012_v2, %v2721_v62  ;;  %v859_v0 = vpack.c.bf16 %v2731_v6, %v2728_v3  ;;  %2070 = vtanh.f32 %v717_v7  ;;  %v794_v5 = vmul.f32 0.5, %v762_v12 }
 0x121   : > { %v2069_v10 = vpop.eup %2068  ;;  %v765_v13 = vadd.f32 1.0, %v2067_v60  ;;  %v2765_v1 = vadd.f32 %v541_v56, %v2546_v49 }
 0x122   : > { %v1044_v19 = vmul.f32 0.044715, %v1028_v53  ;;  %v779_v48 = vadd.f32 1.0, %v2069_v10  ;;  %v826_v34 = vmul.f32 %v794_v5, %v2658_v17 }
 0x123   : > { %v974_v59 = vpop.f32.mrf.mxu2  ;;  %v797_v22 = vmul.f32 0.5, %v765_v13 }
 0x124   : > { %v1060_v31 = vadd.f32 %v1044_v19, %v2721_v62  ;;  %v2740_v33 = vadd.f32 %v2713_v39, %v974_v59  ;;  %v852_v41 = vpack.c.bf16 %v826_v34, %v824_v30  ;;  %v811_v45 = vmul.f32 0.5, %v779_v48 }
 0x125   : > { %v829_v24 = vmul.f32 %v797_v22, %v2679_v27  ;;  %v576_v27 = vmul.f32 %v2747_v37, %v2747_v37 }
 0x126   : > { %v2071_v11 = vpop.eup %2070  ;;  %v1076_v38 = vmul.f32 0.7978846, %v1060_v31  ;;  %v1013_v16 = vmul.f32 %v2740_v33, %v2740_v33  ;;  %1440 = vmatmul.bf16.gmra.mxu1 %v852_v41  ;;  %v2755_v61 = vmul.f32 %v811_v45, %v2673_v44 }
 0x127   : > { %v853_v42 = vpack.c.bf16 %v829_v24, %v827_v25  ;;  %v781_v43 = vadd.f32 1.0, %v2071_v11  ;;  %v608_v2 = vmul.f32 %v576_v27, %v2747_v37  ;;  %v544_v22 = vpop.f32.mrf.mxu3 }
 0x128   : > { %v1029_v17 = vmul.f32 %v1013_v16, %v2740_v33  ;;  %2072 = vtanh.f32 %v1076_v38  ;;  %v2783_v48 = vadd.f32 %v544_v22, %v2546_v49 }
 0x129   : > { %1396 = vmatmul.bf16.gmra.mxu0 %v853_v42  ;;  %v813_v52 = vmul.f32 0.5, %v781_v43  ;;  %2074 = vtanh.f32 %v700_v50  ;;  %v640_v12 = vmul.f32 0.044715, %v608_v2 }
 0x12a   : > { %v1045_v54 = vmul.f32 0.044715, %v1029_v17  ;;  %2076 = vtanh.f32 %v702_v51  ;;  %v580_v45 = vmul.f32 %v2783_v48, %v2783_v48 }
 0x12b   : > { %v977_v55 = vpop.f32.mrf.mxu2  ;;  %v2758_v63 = vmul.f32 %v813_v52, %v2698_v23  ;;  %v578_v23 = vmul.f32 %v2765_v1, %v2765_v1  ;;  %v672_v26 = vadd.f32 %v640_v12, %v2747_v37 }
 0x12c   : > { %v1061_v36 = vadd.f32 %v1045_v54, %v2740_v33  ;;  %v2762_v57 = vadd.f32 %v2713_v39, %v977_v55  ;;  %v612_v55 = vmul.f32 %v580_v45, %v2783_v48 }
 0x12d   : > { %v861_v7 = vpack.c.bf16 %v2758_v63, %v2755_v61  ;;  %v610_v60 = vmul.f32 %v578_v23, %v2765_v1  ;;  %v704_v17 = vmul.f32 0.7978846, %v672_v26 }
 0x12e   : > { %v1077_v8 = vmul.f32 0.7978846, %v1061_v36  ;;  %v1014_v44 = vmul.f32 %v2762_v57, %v2762_v57  ;;  %v2073_v4 = vpop.eup %2072  ;;  %v644_v23 = vmul.f32 0.044715, %v612_v55 }
 0x12f   : > { %v2075_v53 = vpop.eup %2074  ;;  %v642_v13 = vmul.f32 0.044715, %v610_v60  ;;  %v1108_v19 = vadd.f32 1.0, %v2073_v4  ;;  %v546_v46 = vpop.f32.mrf.mxu3 }
 0x130   : > { %2078 = vtanh.f32 %v1077_v8  ;;  %v1030_v9 = vmul.f32 %v1014_v44, %v2762_v57  ;;  %v764_v18 = vadd.f32 1.0, %v2075_v53  ;;  %v2077_v32 = vpop.eup %2076  ;;  %v2803_v56 = vadd.f32 %v546_v46, %v2546_v49 }
 0x131   : > { %v766_v25 = vadd.f32 1.0, %v2077_v32  ;;  %v674_v30 = vadd.f32 %v642_v13, %v2765_v1  ;;  %v1124_v38 = vmul.f32 0.5, %v1108_v19  ;;  %v676_v22 = vadd.f32 %v644_v23, %v2783_v48 }
 0x132   : > { %v1046_v10 = vmul.f32 0.044715, %v1030_v9  ;;  %v796_v31 = vmul.f32 0.5, %v764_v18 }
 0x133   : > { %v979_v20 = vpop.f32.mrf.mxu2  ;;  %v798_v35 = vmul.f32 0.5, %v766_v25  ;;  %v706_v27 = vmul.f32 0.7978846, %v674_v30  ;;  %v708_v45 = vmul.f32 0.7978846, %v676_v22 }
 0x134   : > { %v1062_v5 = vadd.f32 %v1046_v10, %v2762_v57  ;;  %v2778_v59 = vadd.f32 %v2713_v39, %v979_v20  ;;  %v828_v16 = vmul.f32 %v796_v31, %v2702_v28  ;;  %v1140_v28 = vmul.f32 %v1124_v38, %v2721_v62 }
 0x135   : > { %v830_v42 = vmul.f32 %v798_v35, %v2710_v15 }
 0x136   : > { %v2079_v34 = vpop.eup %2078  ;;  %v1015_v24 = vmul.f32 %v2778_v59, %v2778_v59  ;;  %v1078_v40 = vmul.f32 0.7978846, %v1062_v5 }
 0x137   : > { %v1109_v11 = vadd.f32 1.0, %v2079_v34  ;;  %v854_v51 = vpack.c.bf16 %v830_v42, %v828_v16  ;;  %v549_v19 = vpop.f32.mrf.mxu3 }
 0x138   : > { %v1031_v41 = vmul.f32 %v1015_v24, %v2778_v59  ;;  %2080 = vtanh.f32 %v1078_v40  ;;  %v2817_v25 = vadd.f32 %v549_v19, %v2546_v49 }
 0x139   : > { %1401 = vmatmul.bf16.gmra.mxu0 %v855_v47  ;;  %v1125_v43 = vmul.f32 0.5, %v1109_v11  ;;  %2082 = vtanh.f32 %v704_v17  ;;  %1445 = vmatmul.bf16.gmra.mxu1 %v854_v51 }
 0x13a   : > { %v1047_v50 = vmul.f32 0.044715, %v1031_v41  ;;  %2084 = vtanh.f32 %v706_v27  ;;  %v584_v42 = vmul.f32 %v2817_v25, %v2817_v25 }
 0x13b   : > { %v982_v52 = vpop.f32.mrf.mxu2  ;;  %v1141_v54 = vmul.f32 %v1125_v43, %v2740_v33  ;;  %v582_v33 = vmul.f32 %v2803_v56, %v2803_v56 }
 0x13c   : > { %v1063_v15 = vadd.f32 %v1047_v50, %v2778_v59  ;;  %v2799_v14 = vadd.f32 %v2713_v39, %v982_v52  ;;  %v616_v52 = vmul.f32 %v584_v42, %v2817_v25 }
 0x13d   : > { %v1156_v47 = vpack.c.bf16 %v1141_v54, %v1140_v28  ;;  %v614_v4 = vmul.f32 %v582_v33, %v2803_v56 }
 0x13e   : > { %v1016_v62 = vmul.f32 %v2799_v14, %v2799_v14  ;;  %v1079_v36 = vmul.f32 0.7978846, %v1063_v15  ;;  %v2081_v2 = vpop.eup %2080  ;;  %v648_v55 = vmul.f32 0.044715, %v616_v52 }
 0x13f   : > { %1236 = vmatmul.bf16.vlgmr.msrb.gmra.mxu3 %v1156_v47  ;;  %v2083_v44 = vpop.eup %2082  ;;  %v1110_v10 = vadd.f32 1.0, %v2081_v2  ;;  %v646_v13 = vmul.f32 0.044715, %v614_v4  ;;  %v551_v21 = vpop.f32.mrf.mxu3 }
 0x140   : > { %v1032_v8 = vmul.f32 %v1016_v62, %v2799_v14  ;;  %2086 = vtanh.f32 %v1079_v36  ;;  %v2085_v9 = vpop.eup %2084  ;;  %v768_v53 = vadd.f32 1.0, %v2083_v44  ;;  %v2838_v28 = vadd.f32 %v551_v21, %v2546_v49 }
 0x141   : > { %v770_v18 = vadd.f32 1.0, %v2085_v9  ;;  %v678_v34 = vadd.f32 %v646_v13, %v2803_v56  ;;  %v1126_v11 = vmul.f32 0.5, %v1110_v10  ;;  %v680_v10 = vadd.f32 %v648_v55, %v2817_v25 }
 0x142   : > { %v1048_v60 = vmul.f32 0.044715, %v1032_v8  ;;  %v800_v5 = vmul.f32 0.5, %v768_v53 }
 0x143   : > { %v984_v12 = vpop.f32.mrf.mxu2  ;;  %v802_v26 = vmul.f32 0.5, %v770_v18  ;;  %v710_v27 = vmul.f32 0.7978846, %v678_v34  ;;  %v1142_v50 = vmul.f32 %v1126_v11, %v2762_v57 }
 0x144   : > { %v1064_v32 = vadd.f32 %v1048_v60, %v2799_v14  ;;  %v2813_v20 = vadd.f32 %v2713_v39, %v984_v12  ;;  %v832_v40 = vmul.f32 %v800_v5, %v2747_v37 }
 0x145   : > { %v834_v38 = vmul.f32 %v802_v26, %v2765_v1 }
 0x146   : > { %v2087_v30 = vpop.eup %2086  ;;  %v1017_v31 = vmul.f32 %v2813_v20, %v2813_v20  ;;  %v1080_v24 = vmul.f32 0.7978846, %v1064_v32 }
 0x147   : > { %v1111_v35 = vadd.f32 1.0, %v2087_v30  ;;  %v856_v43 = vpack.c.bf16 %v834_v38, %v832_v40  ;;  %v554_v53 = vpop.f32.mrf.mxu3  ;;  %v712_v38 = vmul.f32 0.7978846, %v680_v10 }
 0x148   : > { %v1033_v16 = vmul.f32 %v1017_v31, %v2813_v20  ;;  %2088 = vtanh.f32 %v1080_v24  ;;  %v2852_v13 = vadd.f32 %v554_v53, %v2546_v49 }
 0x149   : > { %1406 = vmatmul.bf16.gmra.mxu0 %v857_v29  ;;  %v1127_v41 = vmul.f32 0.5, %v1111_v35  ;;  %2090 = vtanh.f32 %v708_v45  ;;  %1450 = vmatmul.bf16.gmra.mxu1 %v856_v43 }
 0x14a   : > { %v1049_v17 = vmul.f32 0.044715, %v1033_v16  ;;  %2092 = vtanh.f32 %v710_v27  ;;  %v588_v35 = vmul.f32 %v2852_v13, %v2852_v13 }
 0x14b   : > { %v987_v37 = vpop.f32.mrf.mxu2  ;;  %v1143_v1 = vmul.f32 %v1127_v41, %v2778_v59  ;;  %v586_v59 = vmul.f32 %v2838_v28, %v2838_v28 }
 0x14c   : > { %v1065_v51 = vadd.f32 %v1049_v17, %v2813_v20  ;;  %v2834_v58 = vadd.f32 %v2713_v39, %v987_v37  ;;  %v620_v45 = vmul.f32 %v588_v35, %v2852_v13 }
 0x14d   : > { %v1157_v29 = vpack.c.bf16 %v1143_v1, %v1142_v50  ;;  %v618_v62 = vmul.f32 %v586_v59, %v2838_v28 }
 0x14e   : > { %v1018_v57 = vmul.f32 %v2834_v58, %v2834_v58  ;;  %v1081_v54 = vmul.f32 0.7978846, %v1065_v51  ;;  %v2089_v15 = vpop.eup %2088  ;;  %v652_v51 = vmul.f32 0.044715, %v620_v45 }
 0x14f   : > { %1241 = vmatmul.bf16.gmra.mxu3 %v1157_v29  ;;  %v2091_v47 = vpop.eup %2090  ;;  %v1112_v44 = vadd.f32 1.0, %v2089_v15  ;;  %v650_v23 = vmul.f32 0.044715, %v618_v62  ;;  %v556_v6 = vpop.f32.mrf.mxu3 }
 0x150   : > { %v1034_v46 = vmul.f32 %v1018_v57, %v2834_v58  ;;  %2094 = vtanh.f32 %v1081_v54  ;;  %v2093_v36 = vpop.eup %2092  ;;  %v772_v2 = vadd.f32 1.0, %v2091_v47  ;;  %v2873_v17 = vadd.f32 %v556_v6, %v2546_v49 }
 0x151   : > { %v774_v4 = vadd.f32 1.0, %v2093_v36  ;;  %v682_v5 = vadd.f32 %v650_v23, %v2838_v28  ;;  %v1128_v31 = vmul.f32 0.5, %v1112_v44  ;;  %v684_v62 = vadd.f32 %v652_v51, %v2852_v13 }
 0x152   : > { %v1050_v33 = vmul.f32 0.044715, %v1034_v46  ;;  %v804_v12 = vmul.f32 0.5, %v772_v2 }
 0x153   : > { %v989_v8 = vpop.f32.mrf.mxu2  ;;  %v806_v18 = vmul.f32 0.5, %v774_v4  ;;  %v714_v41 = vmul.f32 0.7978846, %v682_v5  ;;  %v1144_v42 = vmul.f32 %v1128_v31, %v2799_v14 }
 0x154   : > { %v1066_v9 = vadd.f32 %v1050_v33, %v2834_v58  ;;  %v2848_v60 = vadd.f32 %v2713_v39, %v989_v8  ;;  %v836_v26 = vmul.f32 %v804_v12, %v2783_v48 }
 0x155   : > { %v838_v34 = vmul.f32 %v806_v18, %v2803_v56 }
 0x156   : > { %v2095_v32 = vpop.eup %2094  ;;  %v1019_v19 = vmul.f32 %v2848_v60, %v2848_v60  ;;  %v1082_v22 = vmul.f32 0.7978846, %v1066_v9 }
 0x157   : > { %v1113_v30 = vadd.f32 1.0, %v2095_v32  ;;  %v858_v11 = vpack.c.bf16 %v838_v34, %v836_v26  ;;  %v716_v32 = vmul.f32 0.7978846, %v684_v62 }
 0x158   : > { %v1035_v24 = vmul.f32 %v1019_v19, %v2848_v60  ;;  %2096 = vtanh.f32 %v1082_v22 }
 0x159   : > { %1411 = vmatmul.bf16.gmra.mxu0 %v859_v0  ;;  %v1129_v40 = vmul.f32 0.5, %v1113_v30  ;;  %2098 = vtanh.f32 %v712_v38  ;;  %1455 = vmatmul.bf16.gmra.mxu1 %v858_v11 }
 0x15a   : > { %v1051_v16 = vmul.f32 0.044715, %v1035_v24  ;;  %2100 = vtanh.f32 %v714_v41 }
 0x15b   : > { %v992_v48 = vpop.f32.mrf.mxu2  ;;  %v1145_v56 = vmul.f32 %v1129_v40, %v2813_v20  ;;  %v590_v20 = vmul.f32 %v2873_v17, %v2873_v17 }
 0x15c   : > { %v1067_v43 = vadd.f32 %v1051_v16, %v2848_v60  ;;  %v2869_v3 = vadd.f32 %v2713_v39, %v992_v48 }
 0x15d   : > { %v1158_v0 = vpack.c.bf16 %v1145_v56, %v1144_v42  ;;  %v622_v21 = vmul.f32 %v590_v20, %v2873_v17 }
 0x15e   : > { %v1020_v14 = vmul.f32 %v2869_v3, %v2869_v3  ;;  %v1083_v27 = vmul.f32 0.7978846, %v1067_v43  ;;  %v2097_v37 = vpop.eup %2096 }
 0x15f   : > { %1246 = vmatmul.bf16.gmra.mxu3 %v1158_v0  ;;  %v2099_v1 = vpop.eup %2098  ;;  %v1114_v54 = vadd.f32 1.0, %v2097_v37  ;;  %v654_v59 = vmul.f32 0.044715, %v622_v21 }
 0x160   : > { %v1036_v50 = vmul.f32 %v1020_v14, %v2869_v3  ;;  %2102 = vtanh.f32 %v1083_v27  ;;  %v2101_v29 = vpop.eup %2100  ;;  %v776_v49 = vadd.f32 1.0, %v2099_v1 }
 0x161   : > { %v778_v15 = vadd.f32 1.0, %v2101_v29  ;;  %v686_v36 = vadd.f32 %v654_v59, %v2873_v17  ;;  %v1130_v9 = vmul.f32 0.5, %v1114_v54 }
 0x162   : > { %v1052_v52 = vmul.f32 0.044715, %v1036_v50  ;;  %v808_v55 = vmul.f32 0.5, %v776_v49 }
 0x163   : > { %v994_v57 = vpop.f32.mrf.mxu2  ;;  %v810_v33 = vmul.f32 0.5, %v778_v15  ;;  %v718_v19 = vmul.f32 0.7978846, %v686_v36  ;;  %v1146_v26 = vmul.f32 %v1130_v9, %v2834_v58 }
 0x164   : > { %v1068_v46 = vadd.f32 %v1052_v52, %v2869_v3  ;;  %v995_v47 = vadd.f32 %v2713_v39, %v994_v57  ;;  %v840_v23 = vmul.f32 %v808_v55, %v2817_v25 }
 0x165   : > { %v842_v53 = vmul.f32 %v810_v33, %v2838_v28 }
 0x166   : > { %v2103_v2 = vpop.eup %2102  ;;  %v1021_v8 = vmul.f32 %v995_v47, %v995_v47  ;;  %v1084_v44 = vmul.f32 0.7978846, %v1068_v46 }
 0x167   : > { %v1115_v4 = vadd.f32 1.0, %v2103_v2  ;;  %v860_v18 = vpack.c.bf16 %v842_v53, %v840_v23 }
 0x168   : > { %v1037_v12 = vmul.f32 %v1021_v8, %v995_v47  ;;  %2104 = vtanh.f32 %v1084_v44 }
 0x169   : > { %1416 = vmatmul.bf16.gmra.mxu0 %v861_v7  ;;  %v1131_v10 = vmul.f32 0.5, %v1115_v4  ;;  %2106 = vtanh.f32 %v716_v32  ;;  %1460 = vmatmul.bf16.gmra.mxu1 %v860_v18 }
 0x16a   : > { %v1053_v5 = vmul.f32 0.044715, %v1037_v12  ;;  %2108 = vtanh.f32 %v718_v19 }
 0x16b   : > { %v997_v22 = vpop.f32.mrf.mxu2  ;;  %v1147_v25 = vmul.f32 %v1131_v10, %v2848_v60 }
 0x16c   : > { %v1069_v30 = vadd.f32 %v1053_v5, %v995_v47  ;;  %v998_v28 = vadd.f32 %v2713_v39, %v997_v22 }
 0x16d   : > { %v1159_v31 = vpack.c.bf16 %v1147_v25, %v1146_v26 }
 0x16e   : > { %v1022_v61 = vmul.f32 %v998_v28, %v998_v28  ;;  %v1085_v63 = vmul.f32 0.7978846, %v1069_v30  ;;  %v2105_v7 = vpop.eup %2104 }
 0x16f   : > { %1251 = vmatmul.bf16.gmra.mxu3 %v1159_v31  ;;  %v2107_v24 = vpop.eup %2106  ;;  %v1116_v38 = vadd.f32 1.0, %v2105_v7 }
 0x170   : > { %v1038_v34 = vmul.f32 %v1022_v61, %v998_v28  ;;  %2110 = vtanh.f32 %v1085_v63  ;;  %v2109_v40 = vpop.eup %2108  ;;  %v780_v11 = vadd.f32 1.0, %v2107_v24 }
 0x171   : > { %v782_v60 = vadd.f32 1.0, %v2109_v40  ;;  %v1132_v14 = vmul.f32 0.5, %v1116_v38 }
 0x172   : > { %v1054_v35 = vmul.f32 0.044715, %v1038_v34  ;;  %v812_v48 = vmul.f32 0.5, %v780_v11 }
 0x173   : > { %v999_v58 = vpop.f32.mrf.mxu2  ;;  %v814_v42 = vmul.f32 0.5, %v782_v60  ;;  %v1148_v21 = vmul.f32 %v1132_v14, %v2869_v3 }
 0x174   : > { %v1070_v16 = vadd.f32 %v1054_v35, %v998_v28  ;;  %v1000_v41 = vadd.f32 %v2713_v39, %v999_v58  ;;  %v844_v0 = vmul.f32 %v812_v48, %v2852_v13 }
 0x175   : > { %v846_v27 = vmul.f32 %v814_v42, %v2873_v17 }
 0x176   : > { %v2111_v56 = vpop.eup %2110  ;;  %v1023_v43 = vmul.f32 %v1000_v41, %v1000_v41  ;;  %v1086_v6 = vmul.f32 0.7978846, %v1070_v16 }
 0x177   : > { %v1117_v45 = vadd.f32 1.0, %v2111_v56  ;;  %v862_v50 = vpack.c.bf16 %v846_v27, %v844_v0 }
 0x178   : > { %v1039_v20 = vmul.f32 %v1023_v43, %v1000_v41  ;;  %2112 = vtanh.f32 %v1086_v6  ;;  %v1382_v43 = vpop.f32.mrf.mxu0 }
 0x179   : > { %v1133_v37 = vmul.f32 0.5, %v1117_v45  ;;  %1465 = vmatmul.bf16.gmra.mxu1 %v862_v50 }
 0x17a   : > { %v1055_v1 = vmul.f32 0.044715, %v1039_v20 }
 0x17b   : > { %v1002_v51 = vpop.f32.mrf.mxu2  ;;  %v1149_v29 = vmul.f32 %v1133_v37, %v995_v47 }
 0x17c   : > { %v1071_v52 = vadd.f32 %v1055_v1, %v1000_v41  ;;  %v1003_v49 = vadd.f32 %v2713_v39, %v1002_v51 }
 0x17d   : > { %v1160_v57 = vpack.c.bf16 %v1149_v29, %v1148_v21 }
 0x17e   : > { %v1024_v54 = vmul.f32 %v1003_v49, %v1003_v49  ;;  %v1087_v13 = vmul.f32 0.7978846, %v1071_v52  ;;  %v2113_v59 = vpop.eup %2112 }
 0x17f   : > { %1256 = vmatmul.bf16.gmra.mxu3 %v1160_v57  ;;  %v1118_v55 = vadd.f32 1.0, %v2113_v59  ;;  %v2905_v57 = vld [vmem:[%s2978_s4] ss:$0 sm:$0xff] }
 0x180   : > { %v1040_v15 = vmul.f32 %v1024_v54, %v1003_v49  ;;  %2114 = vtanh.f32 %v1087_v13  ;;  %v1431_v6 = vpop.f32.mrf.mxu1  ;;  %v1384_v50 = vpop.f32.mrf.mxu0 }
 0x181   : > { %v1134_v8 = vmul.f32 0.5, %v1118_v55 }
 0x182   : > { %v1056_v17 = vmul.f32 0.044715, %v1040_v15 }
 0x183   : > { %v1004_v46 = vpop.f32.mrf.mxu2  ;;  %v1150_v53 = vmul.f32 %v1134_v8, %v998_v28 }
 0x184   : > { %v1072_v62 = vadd.f32 %v1056_v17, %v1003_v49  ;;  %v1005_v36 = vadd.f32 %v2713_v39, %v1004_v46 }
 0x186   : > { %v2115_v33 = vpop.eup %2114  ;;  %v1025_v3 = vmul.f32 %v1005_v36, %v1005_v36  ;;  %v1088_v47 = vmul.f32 0.7978846, %v1072_v62 }
 0x187   : > { %v1119_v2 = vadd.f32 1.0, %v2115_v33 }
 0x188   : > { %v1041_v44 = vmul.f32 %v1025_v3, %v1005_v36  ;;  %2116 = vtanh.f32 %v1088_v47  ;;  %v1433_v1 = vpop.f32.mrf.mxu1  ;;  %v1387_v51 = vpop.f32.mrf.mxu0 }
 0x189   : > { %v1135_v23 = vmul.f32 0.5, %v1119_v2 }
 0x18a   : > { %v1057_v4 = vmul.f32 0.044715, %v1041_v44 }
 0x18b   : > { %v1007_v9 = vpop.f32.mrf.mxu2  ;;  %v1151_v12 = vmul.f32 %v1135_v23, %v1000_v41 }
 0x18c   : > { %v1073_v10 = vadd.f32 %v1057_v4, %v1005_v36  ;;  %v1008_v18 = vadd.f32 %v2713_v39, %v1007_v9 }
 0x18d   : > { %v1161_v32 = vpack.c.bf16 %v1151_v12, %v1150_v53 }
 0x18e   : > { %v1026_v19 = vmul.f32 %v1008_v18, %v1008_v18  ;;  %v1089_v5 = vmul.f32 0.7978846, %v1073_v10  ;;  %v2117_v22 = vpop.eup %2116 }
 0x18f   : > { %1261 = vmatmul.bf16.gmra.mxu3 %v1161_v32  ;;  %v1120_v31 = vadd.f32 1.0, %v2117_v22 }
 0x190   : > { %v1042_v26 = vmul.f32 %v1026_v19, %v1008_v18  ;;  %2118 = vtanh.f32 %v1089_v5  ;;  %v1436_v21 = vpop.f32.mrf.mxu1  ;;  %v1389_v29 = vpop.f32.mrf.mxu0 }
 0x191   : > { %v1136_v40 = vmul.f32 0.5, %v1120_v31 }
 0x192   : > { %v1058_v25 = vmul.f32 0.044715, %v1042_v26 }
 0x193   : > { %v1009_v30 = vpop.f32.mrf.mxu2  ;;  %v1152_v38 = vmul.f32 %v1136_v40, %v1003_v49 }
 0x194   : > { %v1074_v61 = vadd.f32 %v1058_v25, %v1008_v18  ;;  %v1010_v63 = vadd.f32 %v2713_v39, %v1009_v30 }
 0x196   : > { %v2119_v7 = vpop.eup %2118  ;;  %v1027_v34 = vmul.f32 %v1010_v63, %v1010_v63  ;;  %v1090_v28 = vmul.f32 0.7978846, %v1074_v61 }
 0x197   : > { %v1121_v24 = vadd.f32 1.0, %v2119_v7 }
 0x198   : > { %v1043_v35 = vmul.f32 %v1027_v34, %v1010_v63  ;;  %2120 = vtanh.f32 %v1090_v28  ;;  %v1438_v54 = vpop.f32.mrf.mxu1  ;;  %v1392_v46 = vpop.f32.mrf.mxu0 }
 0x199   : > { %v1137_v11 = vmul.f32 0.5, %v1121_v24 }
 0x19a   : > { %v1059_v58 = vmul.f32 0.044715, %v1043_v35 }
 0x19b   : > { %v1153_v60 = vmul.f32 %v1137_v11, %v1005_v36 }
 0x19c   : > { %v1075_v16 = vadd.f32 %v1059_v58, %v1010_v63 }
 0x19d   : > { %v1162_v41 = vpack.c.bf16 %v1153_v60, %v1152_v38 }
 0x19e   : > { %v1091_v48 = vmul.f32 0.7978846, %v1075_v16  ;;  %v2121_v42 = vpop.eup %2120 }
 0x19f   : > { %1266 = vmatmul.bf16.gmra.mxu3 %v1162_v41  ;;  %v1122_v56 = vadd.f32 1.0, %v2121_v42 }
 0x1a0   : > { %2122 = vtanh.f32 %v1091_v48  ;;  %v1394_v2 = vpop.f32.mrf.mxu0 }
 0x1a1   : > { %v1138_v45 = vmul.f32 0.5, %v1122_v56 }
 0x1a3   : > { %v1154_v27 = vmul.f32 %v1138_v45, %v1008_v18  ;;  %v1441_v62 = vpop.f32.mrf.mxu1 }
 0x1a6   : > { %v2123_v39 = vpop.eup %2122 }
 0x1a7   : > { %v1123_v0 = vadd.f32 1.0, %v2123_v39 }
 0x1a8   : > { %v1397_v12 = vpop.f32.mrf.mxu0 }
 0x1a9   : > { %v1139_v14 = vmul.f32 0.5, %v1123_v0 }
 0x1ab   : > { %v1155_v20 = vmul.f32 %v1139_v14, %v1010_v63  ;;  %v1443_v44 = vpop.f32.mrf.mxu1 }
 0x1ad   : > { %v1163_v37 = vpack.c.bf16 %v1155_v20, %v1154_v27 }
 0x1af   : > { %1271 = vmatmul.bf16.gmra.mxu3 %v1163_v37 }
 0x1b0   : > { %v1399_v22 = vpop.f32.mrf.mxu0 }
 0x1b6   : > { %v1446_v10 = vpop.f32.mrf.mxu1 }
 0x1b8   : > { %v1402_v34 = vpop.f32.mrf.mxu0 }
 0x1be   : > { %v1448_v30 = vpop.f32.mrf.mxu1 }
 0x1c0   : > { %v1404_v38 = vpop.f32.mrf.mxu0 }
 0x1c2   : > { %v1237_v52 = vpop.f32.mrf.mxu3 }
 0x1c3   : > { %v1383_v49 = vadd.f32 %v1382_v43, %v1237_v52 }
 0x1c5   : > { %v1432_v13 = vadd.f32 %v1431_v6, %v1383_v49 }
 0x1c6   : > { %v1451_v24 = vpop.f32.mrf.mxu1 }
 0x1c7   : > { %v1475_v59 = vadd.f32 %v2905_v57, %v1432_v13 }
 0x1c8   : > { %v1407_v43 = vpop.f32.mrf.mxu0 }
 0x1c9   : > { %1491 = vst [vmem:[%s2908_s16] sm:$0xff] %v1475_v59 }
 0x1ca   : > { %v1239_v15 = vpop.f32.mrf.mxu3 }
 0x1cb   : > { %v1385_v17 = vadd.f32 %v1384_v50, %v1239_v15 }
 0x1cd   : > { %v1434_v55 = vadd.f32 %v1433_v1, %v1385_v17 }
 0x1ce   : > { %v1453_v16 = vpop.f32.mrf.mxu1 }
 0x1cf   : > { %v1476_v36 = vadd.f32 %v2905_v57, %v1434_v55 }
 0x1d0   : > { %v1409_v27 = vpop.f32.mrf.mxu0 }
 0x1d1   : > { %1492 = vst [vmem:[%s2908_s16 + $0x8] sm:$0xff] %v1476_v36 }
 0x1d2   : > { %v1242_v33 = vpop.f32.mrf.mxu3 }
 0x1d3   : > { %v1388_v3 = vadd.f32 %v1387_v51, %v1242_v33 }
 0x1d5   : > { %v1437_v47 = vadd.f32 %v1436_v21, %v1388_v3 }
 0x1d6   : > { %v1456_v39 = vpop.f32.mrf.mxu1 }
 0x1d7   : > { %v1477_v8 = vadd.f32 %v2905_v57, %v1437_v47 }
 0x1d8   : > { %v1412_v52 = vpop.f32.mrf.mxu0 }
 0x1d9   : > { %1493 = vst [vmem:[%s2908_s16 + $0x10] sm:$0xff] %v1477_v8 }
 0x1da   : > { %v1244_v23 = vpop.f32.mrf.mxu3 }
 0x1db   : > { %v1390_v4 = vadd.f32 %v1389_v29, %v1244_v23 }
 0x1dd   : > { %v1439_v9 = vadd.f32 %v1438_v54, %v1390_v4 }
 0x1de   : > { %v1458_v50 = vpop.f32.mrf.mxu1 }
 0x1df   : > { %v1478_v53 = vadd.f32 %v2905_v57, %v1439_v9 }
 0x1e1   : > { %1494 = vst [vmem:[%s2908_s16 + $0x18] sm:$0xff] %v1478_v53 }
 0x1e2   : > { %v1247_v18 = vpop.f32.mrf.mxu3 }
 0x1e3   : > { %v1393_v32 = vadd.f32 %v1392_v46, %v1247_v18  ;;  %v1414_v46 = vpop.f32.mrf.mxu0 }
 0x1e5   : > { %v1442_v19 = vadd.f32 %v1441_v62, %v1393_v32 }
 0x1e6   : > { %v1461_v54 = vpop.f32.mrf.mxu1 }
 0x1e7   : > { %v1479_v5 = vadd.f32 %v2905_v57, %v1442_v19 }
 0x1e9   : > { %1495 = vst [vmem:[%s2908_s16 + $0x20] sm:$0xff] %v1479_v5 }
 0x1ea   : > { %v1249_v26 = vpop.f32.mrf.mxu3 }
 0x1eb   : > { %v1395_v25 = vadd.f32 %v1394_v2, %v1249_v26  ;;  %v1417_v2 = vpop.f32.mrf.mxu0 }
 0x1ed   : > { %v1444_v31 = vadd.f32 %v1443_v44, %v1395_v25 }
 0x1ee   : > { %v1463_v62 = vpop.f32.mrf.mxu1 }
 0x1ef   : > { %v1480_v61 = vadd.f32 %v2905_v57, %v1444_v31 }
 0x1f1   : > { %1496 = vst [vmem:[%s2908_s16 + $0x28] sm:$0xff] %v1480_v61 }
 0x1f2   : > { %v1252_v63 = vpop.f32.mrf.mxu3 }
 0x1f3   : > { %v1398_v7 = vadd.f32 %v1397_v12, %v1252_v63  ;;  %v1419_v53 = vpop.f32.mrf.mxu0 }
 0x1f5   : > { %v1447_v28 = vadd.f32 %v1446_v10, %v1398_v7 }
 0x1f6   : > { %v1466_v8 = vpop.f32.mrf.mxu1 }
 0x1f7   : > { %v1481_v40 = vadd.f32 %v2905_v57, %v1447_v28 }
 0x1f9   : > { %1497 = vst [vmem:[%s2908_s16 + $0x30] sm:$0xff] %v1481_v40 }
 0x1fa   : > { %v1254_v35 = vpop.f32.mrf.mxu3 }
 0x1fb   : > { %v1400_v11 = vadd.f32 %v1399_v22, %v1254_v35 }
 0x1fd   : > { %v1449_v58 = vadd.f32 %v1448_v30, %v1400_v11 }
 0x1fe   : > { %v1468_v18 = vpop.f32.mrf.mxu1 }
 0x1ff   : > { %v1482_v60 = vadd.f32 %v2905_v57, %v1449_v58 }
 0x201   : > { %1498 = vst [vmem:[%s2908_s16 + $0x38] sm:$0xff] %v1482_v60 }
 0x202   : > { %v1257_v41 = vpop.f32.mrf.mxu3 }
 0x203   : > { %v1403_v48 = vadd.f32 %v1402_v34, %v1257_v41 }
 0x205   : > { %v1452_v42 = vadd.f32 %v1451_v24, %v1403_v48 }
 0x207   : > { %v1483_v56 = vadd.f32 %v2905_v57, %v1452_v42 }
 0x209   : > { %1499 = vst [vmem:[%s2908_s16 + $0x40] sm:$0xff] %v1483_v56 }
 0x20a   : > { %v1259_v6 = vpop.f32.mrf.mxu3 }
 0x20b   : > { %v1405_v0 = vadd.f32 %v1404_v38, %v1259_v6 }
 0x20d   : > { %v1454_v45 = vadd.f32 %v1453_v16, %v1405_v0 }
 0x20f   : > { %v1484_v14 = vadd.f32 %v2905_v57, %v1454_v45 }
 0x211   : > { %1500 = vst [vmem:[%s2908_s16 + $0x48] sm:$0xff] %v1484_v14 }
 0x212   : > { %v1262_v20 = vpop.f32.mrf.mxu3 }
 0x213   : > { %v1408_v37 = vadd.f32 %v1407_v43, %v1262_v20 }
 0x215   : > { %v1457_v1 = vadd.f32 %v1456_v39, %v1408_v37 }
 0x217   : > { %v1485_v51 = vadd.f32 %v2905_v57, %v1457_v1 }
 0x219   : > { %1501 = vst [vmem:[%s2908_s16 + $0x50] sm:$0xff] %v1485_v51 }
 0x21a   : > { %v1264_v21 = vpop.f32.mrf.mxu3 }
 0x21b   : > { %v1410_v29 = vadd.f32 %v1409_v27, %v1264_v21 }
 0x21d   : > { %v1459_v49 = vadd.f32 %v1458_v50, %v1410_v29 }
 0x21f   : > { %v1486_v13 = vadd.f32 %v2905_v57, %v1459_v49 }
 0x221   : > { %1502 = vst [vmem:[%s2908_s16 + $0x58] sm:$0xff] %v1486_v13 }
 0x222   : > { %v1267_v59 = vpop.f32.mrf.mxu3 }
 0x223   : > { %v1413_v15 = vadd.f32 %v1412_v52, %v1267_v59 }
 0x225   : > { %v1462_v17 = vadd.f32 %v1461_v54, %v1413_v15 }
 0x227   : > { %v1487_v55 = vadd.f32 %v2905_v57, %v1462_v17 }
 0x229   : > { %1503 = vst [vmem:[%s2908_s16 + $0x60] sm:$0xff] %v1487_v55 }
 0x22a   : > { %v1269_v36 = vpop.f32.mrf.mxu3 }
 0x22b   : > { %v1415_v33 = vadd.f32 %v1414_v46, %v1269_v36 }
 0x22d   : > { %v1464_v3 = vadd.f32 %v1463_v62, %v1415_v33 }
 0x22f   : > { %v1488_v47 = vadd.f32 %v2905_v57, %v1464_v3 }
 0x231   : > { %1504 = vst [vmem:[%s2908_s16 + $0x68] sm:$0xff] %v1488_v47 }
 0x232   : > { %v1272_v44 = vpop.f32.mrf.mxu3 }
 0x233   : > { %v1418_v23 = vadd.f32 %v1417_v2, %v1272_v44 }
 0x235   : > { %v1467_v4 = vadd.f32 %v1466_v8, %v1418_v23 }
 0x237   : > { %v1489_v9 = vadd.f32 %v2905_v57, %v1467_v4 }
 0x239   : > { %1505 = vst [vmem:[%s2908_s16 + $0x70] sm:$0xff] %v1489_v9 }
 0x23a   : > { %v1274_v12 = vpop.f32.mrf.mxu3 }
 0x23b   : > { %v1420_v10 = vadd.f32 %v1419_v53, %v1274_v12 }
 0x23d   : > { %v1469_v32 = vadd.f32 %v1468_v18, %v1420_v10 }
 0x23f   : > { %v1490_v19 = vadd.f32 %v2905_v57, %v1469_v32 }
 0x241   : > { %1506 = vst [vmem:[%s2908_s16 + $0x78] sm:$0xff] %v1490_v19 }
 0x242   : > { %2271 = shalt.err (!%p2268_p10)
}
 0x243   : > { %s2327_s17 = smov 128   ;;  %s2328_s28 = smov 8  }
 0x244   : > { %1957 = dma.vmem_to_hbm [thread:$0]  (%p2443_p0), %s1521_s12, 2048, %s1523_s14, %s1508_s22, %s2327_s17, %s2327_s17, %s2328_s28  }
 0x245 PF: > { %p1984_p11 = scmp.ge.s32.totalorder %s2318_s21, 2  ;;  %s1537_s16 = sand.u32 1, %s2306_s18  }
 0x246   : > { %s1538_s23 = scalar_lea.sflag [#allocation4], %s1537_s16 }
 0x247   : > { %p1974_p12 = pnand %p1984_p11, %p2394_p6 }
 0x249   : > { %p1975_p13 = pneg %p1974_p12 }
 0x24b   : > { %2301 = dma.done.wait (%p1975_p13), %s1538_s23, 2048  }
 0x24c   : > { %2303 = vsyncadd (%p1975_p13), %s1538_s23, 4294965248  ;;  %p20_p3 = scmp.ge.s32.totalorder %s2430_s30, 6   ;;  %s2988_s18 = smov %s2310_s19 }
 0x24d   : > { %s2989_s19 = smov %s2314_s20  ;;  %s2990_s20 = smov %s2439_s9 }
 0x24e   : > { %s2991_s21 = smov %s2430_s30  ;;  %22 = sbr.rel (!%p20_p3) target bundleno = 7 (0x7), region = 97 }
 0x253   :  { %1544 = vsyncpa [#allocation3], 1 }
 0x254   :  { %1546 = vsyncpa [#allocation3 + $0x1], 1 }
 0x255   :  { %1547 = vsyncpa [#allocation6], 1 }
 0x256   :  { %1548 = vsyncpa [#allocation9], 1 }
 0x257   :  { %1549 = vsyncpa [#allocation4], 1 }
 0x258   :  { %1551 = vsyncpa [#allocation4 + $0x1], 1 }

// kernel: tpu_custom_call.1
= control target key start
LH: loop header
LB: loop body
LE: loop exit
PB: predicated region body
PF: predicated region fallthrough
CT: control target
= control target key end

     0   :  { %10 = vsyncpa [#allocation3], 0  ;;  %s2974_s0 = inlined_call_operand.hbm [shape: bf16[512,128], index: 0, kind: input, shape index: {}]   ;;  %s2975_s1 = inlined_call_operand.hbm [shape: bf16[128,384], index: 1, kind: input, shape index: {}]   ;;  %s2976_s2 = inlined_call_operand.hbm [shape: f32[1,384], index: 2, kind: input, shape index: {}]   ;;  %s2977_s3 = inlined_call_operand.hbm [shape: bf16[384,128], index: 3, kind: input, shape index: {}]   ;;  %s2978_s4 = inlined_call_operand.vmem [shape: f32[1,128], index: 4, kind: input, shape index: {}]   ;;  %s2979_s5 = inlined_call_operand.hbm [shape: f32[512,128], index: 5, kind: output, shape index: {}]  }
   0x1   :  { %12 = vsyncpa [#allocation3 + $0x1], 0 }
   0x2   :  { %13 = vsyncpa [#allocation6], 0 }
   0x3   :  { %14 = vsyncpa [#allocation9], 0 }
   0x4   :  { %15 = vsyncpa [#allocation4], 0 }
   0x5   :  { %17 = vsyncpa [#allocation4 + $0x1], 0  ;;  %s2359_s18 = smov 0   ;;  %s2361_s19 = smov 0  }
   0x6   :  { %s2363_s20 = smov 0   ;;  %s2365_s21 = smov 0  }
   0x7 LB: > { %s2380_s22 = sadd.s32 4294967295, %s2318_s21   ;;  %s1625_s23 = sadd.s32 4294967294, %s2318_s21   ;;  %s2318_s21 = sphi %s2365_s21, %s2991_s21   ;;  %s2314_s20 = sphi %s2363_s20, %s2990_s20   ;;  %s2310_s19 = sphi %s2361_s19, %s2989_s19   ;;  %s2306_s18 = sphi %s2359_s18, %s2988_s18  }
   0x8   : > { %p43_p0 = scmp.ne.s32.totalorder %s2310_s19, %s2306_s18  ;;  %p44_p1 = scmp.eq.s32.totalorder %s2380_s22, 0 }
   0x9   : > { %p151_p2 = scmp.eq.s32.totalorder %s2380_s22, 3  ;;  %p157_p3 = scmp.eq.s32.totalorder %s1625_s23, 3 }
   0xa   : > { %p2389_p4 = por %p44_p1, %p43_p0  ;;  %p1626_p5 = scmp.ge.s32.totalorder %s2318_s21, 1 }
   0xb   : > { %p2394_p6 = por %p157_p3, %p43_p0  ;;  %p164_p7 = scmp.lt.s32.totalorder %s2318_s21, 5 }
   0xc   : > { %s175_s28 = sshll.u32 %s2975_s1, 4  ;;  %s2320_s30 = smov [#allocation5]   ;;  %s176_s28 = int_to_ptr.hbm [resolvable:$true] %s175_s28 }
   0xd   : > { %p2402_p8 = pnand %p1626_p5, %p164_p7  ;;  %s177_s6 = sshll.u32 %s2320_s30, 4  ;;  %s178_s6 = int_to_ptr.vmem [resolvable:$true] %s177_s6 }
   0xe   : > { %s190_s10 = sshll.u32 %s2976_s2, 4  ;;  %s2321_s11 = smov 192   ;;  %s191_s10 = int_to_ptr.hbm [resolvable:$true] %s190_s10 }
   0xf   : > { %p1959_p9 = pneg %p2402_p8  ;;  %s2322_s12 = smov 12  }
  0x10   : > { %s2323_s13 = smov [#allocation7]   ;;  %s201_s17 = sshll.u32 %s2977_s3, 4  ;;  %s202_s17 = int_to_ptr.hbm [resolvable:$true] %s201_s17 }
  0x11   : > { %p2410_p10 = pnand %p1959_p9, %p44_p1  ;;  %s192_s14 = sshll.u32 %s2323_s13, 4  ;;  %s193_s14 = int_to_ptr.vmem [resolvable:$true] %s192_s14 }
  0x12   : > { %s2324_s23 = smov [#allocation8]   ;;  %s2980_s27 = smov 64  }
  0x13   : > { %1962 = dma.hbm_to_vmem [thread:$0]  (!%p2410_p10), %s176_s28, 3072, %s178_s6, [#allocation6], %s2321_s11, %s2321_s11, %s2322_s12  }
  0x14   : > { %1965 = dma.hbm_to_vmem [thread:$0]  (!%p2410_p10), %s191_s10, 48, %s193_s14, [#allocation6]  }
  0x15   : > { %s203_s26 = sshll.u32 %s2324_s23, 4  ;;  %s2326_s28 = smov 4   ;;  %s204_s26 = int_to_ptr.vmem [resolvable:$true] %s203_s26 }
  0x16   : > { %1968 = dma.hbm_to_vmem [thread:$0]  (!%p2410_p10), %s202_s17, 3072, %s204_s26, [#allocation9], %s2980_s27, %s2980_s27, %s2326_s28  }
  0x17   : > { %s2430_s30 = sadd.s32 1, %s2318_s21   ;;  %s30_s8 = sadd.s32 1, %s2314_s20 }
  0x18   : > { %s27_s6 = ssub.s32 %s2318_s21, %s2430_s30  ;;  %p37_p12 = scmp.ne.s32.totalorder %s2314_s20, %s2310_s19 }
  0x19   : > { %p28_p11 = scmp.eq.s32.totalorder %s27_s6, 0  ;;  %p38_p13 = scmp.eq.s32.totalorder %s2318_s21, 0 }
  0x1a   : > { %p2443_p0 = por %p151_p2, %p37_p12  ;;  %p1980_p3 = scmp.lt.s32.totalorder %s2318_s21, 4 }
  0x1b   : > { %s2439_s9 = scalar_select %p28_p11, %s2314_s20, %s30_s8  }
  0x1c   : > { %s220_s7 = sand.u32 1, %s2314_s20   ;;  %s1869_s11 = sshll.u32 %s2318_s21, 6 }
  0x1d   : > { %p39_p5 = por %p38_p13, %p37_p12  ;;  %s1631_s12 = sshll.u32 %s220_s7, 6 }
  0x1e   : > { %s229_s15 = scalar_lea.hbm %s2974_s0, %s1869_s11  ;;  %s224_s17 = scalar_lea.vmem [#allocation2], %s1631_s12 }
  0x1f   : > { %s230_s16 = sshll.u32 %s229_s15, 4  ;;  %s232_s23 = sshll.u32 %s224_s17, 4  ;;  %s231_s16 = int_to_ptr.hbm [resolvable:$true] %s230_s16  ;;  %s233_s23 = int_to_ptr.vmem [resolvable:$true] %s232_s23 }
  0x20   : > { %p2453_p7 = pnand %p1980_p3, %p39_p5  ;;  %s221_s6 = scalar_lea.sflag [#allocation3], %s220_s7 }
  0x21   : > { %s2214_s8 = sshra.s32 %s231_s16, 4  ;;  %s2221_s12 = scalar_lea.hbm %s2974_s0, 256  ;;  %s2215_s8 = int_to_ptr.hbm [resolvable:$true] %s2214_s8 }
  0x22   : > { %s2216_s27 = scalar_lea.hbm %s2215_s8, 64  ;;  %p2218_p9 = pneg %p2453_p7 }
  0x23   : > { %p2217_p2 = scmp.ne.s32.totalorder %s2215_s8, %s2216_s27  ;;  %p2222_p12 = scmp.lt.s32.totalorder %s2215_s8, %s2974_s0 }
  0x24   : > { %p2223_p13 = scmp.lt.s32.totalorder %s2221_s12, %s2216_s27 }
  0x25   : > { %p2219_p10 = pnand %p2218_p9, %p2217_p2 }
  0x26   : > { %p2224_p3 = por %p2223_p13, %p2222_p12 }
  0x27   : > { %p2220_p11 = pneg %p2219_p10 }
  0x29   : > { %p2225_p5 = pnand %p2224_p3, %p2220_p11 }
  0x2b   : > { %2228 = shalt.err (!%p2225_p5)
}
  0x2c   : > { %s2987_s7 = smov 64   ;;  %244 = sbr.rel (%p2402_p8) target bundleno = 581 (0x245), region = 40 }
  0x2d   : > { %1972 = dma.hbm_to_vmem [thread:$0]  (!%p2453_p7), %s231_s16, 1024, %s233_s23, %s221_s6, %s2987_s7, %s2987_s7, %s2326_s28  }
  0x2e   : > { %s2473_s17 = sand.u32 (!%p2402_p8), 1, %s2310_s19  }
  0x2f   : > { %s1635_s8 = sshll.u32 (!%p2402_p8), %s2473_s17, 6  ;;  %s247_s27 = scalar_lea.sflag (!%p2402_p8), [#allocation3], %s2473_s17 }
  0x30   : > { %s2477_s11 = scalar_lea.vmem (!%p2402_p8), [#allocation2], %s1635_s8 }
  0x31   : > { %2289 = dma.done.wait (%p2389_p4), %s247_s27, 1024  }
  0x32   : > { %2291 = vsyncadd (%p2389_p4), %s247_s27, 4294966272 }
  0x33   : > { %2293 = dma.done.wait (%p44_p1), [#allocation6], 3120  }
  0x34   : > { %2295 = vsyncadd (%p44_p1), [#allocation6], 4294964176 }
  0x35   : > { %2297 = dma.done.wait (%p44_p1), [#allocation9], 3072  }
  0x36   : > { %2299 = vsyncadd (%p44_p1), [#allocation9], 4294964224  ;;  %v1730_v0 = vld [vmem:[#allocation5 + $0xa8] sm:$0xf]  ;;  %v1893_v1 = vld [vmem:[#allocation5 + $0xb0] sm:$0xf0] }
  0x37   : > { %v1722_v2 = vld [vmem:[#allocation5 + $0x90] sm:$0xf]  ;;  %v1731_v3 = vor.u32 %v1893_v1, %v1730_v0  ;;  %v1891_v4 = vld [vmem:[#allocation5 + $0x98] sm:$0xf0]  ;;  %v1714_v6 = vld [vmem:[#allocation5 + $0x78] sm:$0xf] }
  0x38   : > { %v1723_v5 = vor.u32 %v1891_v4, %v1722_v2  ;;  %v1889_v7 = vld [vmem:[#allocation5 + $0x80] sm:$0xf0]  ;;  %v1706_v9 = vld [vmem:[#allocation5 + $0x60] sm:$0xf]  ;;  %v1892_v10 = vld [vmem:[#allocation5 + $0xac] sm:$0xf] }
  0x39   : > { %461 = vmatpush.bf16.msra.mxu0 %v1731_v3  ;;  %1927 = vmatpush.bf16.msra.mxu2 %v1731_v3  ;;  %v1715_v8 = vor.u32 %v1889_v7, %v1714_v6  ;;  %v1732_v11 = vld [vmem:[#allocation5 + $0xb4] sm:$0xf0]  ;;  %v1887_v12 = vld [vmem:[#allocation5 + $0x68] sm:$0xf0]  ;;  %v1890_v14 = vld [vmem:[#allocation5 + $0x94] sm:$0xf] }
  0x3a   : > { %v1735_v13 = vor.u32 %v1892_v10, %v1732_v11  ;;  %v1724_v15 = vld [vmem:[#allocation5 + $0x9c] sm:$0xf0]  ;;  %v1707_v17 = vor.u32 %v1887_v12, %v1706_v9  ;;  %v1698_v18 = vld [vmem:[#allocation5 + $0x48] sm:$0xf]  ;;  %v1885_v19 = vld [vmem:[#allocation5 + $0x50] sm:$0xf0] }
  0x3b   : > { %v1727_v16 = vor.u32 %v1890_v14, %v1724_v15  ;;  %v1699_v20 = vor.u32 %v1885_v19, %v1698_v18  ;;  %v1690_v21 = vld [vmem:[#allocation5 + $0x30] sm:$0xf]  ;;  %v1883_v22 = vld [vmem:[#allocation5 + $0x38] sm:$0xf0]  ;;  %v1716_v24 = vld [vmem:[#allocation5 + $0x84] sm:$0xf0] }
  0x3c   : > { %510 = vmatpush.bf16.msra.mxu1 %v1735_v13  ;;  %1935 = vmatpush.bf16.msra.mxu3 %v1735_v13  ;;  %v1888_v23 = vld [vmem:[#allocation5 + $0x7c] sm:$0xf]  ;;  %v1886_v26 = vld [vmem:[#allocation5 + $0x64] sm:$0xf]  ;;  %v1691_v27 = vor.u32 %v1883_v22, %v1690_v21  ;;  %v1708_v28 = vld [vmem:[#allocation5 + $0x6c] sm:$0xf0] }
  0x3d   : > { %462 = vmatpush.bf16.msra.mxu0 %v1723_v5  ;;  %1928 = vmatpush.bf16.msra.mxu2 %v1723_v5  ;;  %v1719_v25 = vor.u32 %v1888_v23, %v1716_v24  ;;  %v1682_v29 = vld [vmem:[#allocation5 + $0x18] sm:$0xf]  ;;  %v1881_v30 = vld [vmem:[#allocation5 + $0x20] sm:$0xf0]  ;;  %v1711_v31 = vor.u32 %v1886_v26, %v1708_v28  ;;  %v1884_v32 = vld [vmem:[#allocation5 + $0x4c] sm:$0xf] }
  0x3e   : > { %v1700_v33 = vld [vmem:[#allocation5 + $0x54] sm:$0xf0]  ;;  %v1683_v34 = vor.u32 %v1881_v30, %v1682_v29  ;;  %v1674_v35 = vld [vmem:[#allocation5] sm:$0xf]  ;;  %v1879_v36 = vld [vmem:[#allocation5 + $0x8] sm:$0xf0] }
  0x3f   : > { %v1766_v37 = vld [vmem:[#allocation5 + $0xb0] sm:$0xf]  ;;  %v1703_v38 = vor.u32 %v1884_v32, %v1700_v33  ;;  %v1917_v39 = vld [vmem:[#allocation5 + $0xb8] sm:$0xf0]  ;;  %v1882_v40 = vld [vmem:[#allocation5 + $0x34] sm:$0xf]  ;;  %v1675_v42 = vor.u32 %v1879_v36, %v1674_v35 }
  0x40   : > { %511 = vmatpush.bf16.msra.mxu1 %v1727_v16  ;;  %1936 = vmatpush.bf16.msra.mxu3 %v1727_v16  ;;  %v1692_v41 = vld [vmem:[#allocation5 + $0x3c] sm:$0xf0]  ;;  %v1767_v43 = vor.u32 %v1917_v39, %v1766_v37  ;;  %v1762_v45 = vld [vmem:[#allocation5 + $0x98] sm:$0xf]  ;;  %v1916_v46 = vld [vmem:[#allocation5 + $0xa0] sm:$0xf0] }
  0x41   : > { %463 = vmatpush.bf16.msra.mxu0 %v1715_v8  ;;  %1929 = vmatpush.bf16.msra.mxu2 %v1715_v8  ;;  %v1695_v44 = vor.u32 %v1882_v40, %v1692_v41  ;;  %v2492_v47 = vld [vmem:[%s2477_s11] sm:$0xff]  ;;  %v1763_v49 = vor.u32 %v1916_v46, %v1762_v45  ;;  %v1915_v51 = vld [vmem:[#allocation5 + $0x88] sm:$0xf0]  ;;  %v1880_v52 = vld [vmem:[#allocation5 + $0x1c] sm:$0xf]  ;;  %s1639_s24 = sshll.u32 %s2473_s17, 7 }
  0x42   : > { %v2495_v48 = vld [vmem:[%s2477_s11 + $0x20] sm:$0xff]  ;;  %v1684_v53 = vld [vmem:[#allocation5 + $0x24] sm:$0xf0]  ;;  %v1676_v56 = vld [vmem:[#allocation5 + $0xc] sm:$0xf0]  ;;  %s2908_s16 = scalar_lea.vmem [#allocation10], %s1639_s24 }
  0x43   : > { %v1758_v50 = vld [vmem:[#allocation5 + $0x80] sm:$0xf]  ;;  %v1687_v54 = vor.u32 %v1880_v52, %v1684_v53  ;;  %v1878_v55 = vld [vmem:[#allocation5 + $0x4] sm:$0xf]  ;;  %v1754_v59 = vld [vmem:[#allocation5 + $0x68] sm:$0xf] }
  0x44   : > { %512 = vmatpush.bf16.msra.mxu1 %v1719_v25  ;;  %1937 = vmatpush.bf16.msra.mxu3 %v1719_v25  ;;  %v1759_v57 = vor.u32 %v1915_v51, %v1758_v50  ;;  %v1679_v58 = vor.u32 %v1878_v55, %v1676_v56  ;;  %v1914_v60 = vld [vmem:[#allocation5 + $0x70] sm:$0xf0]  ;;  %v1750_v62 = vld [vmem:[#allocation5 + $0x50] sm:$0xf]  ;;  %v1913_v63 = vld [vmem:[#allocation5 + $0x58] sm:$0xf0] }
  0x45   : > { %464 = vmatpush.bf16.msra.mxu0 %v1707_v17  ;;  %1930 = vmatpush.bf16.msra.mxu2 %v1707_v17  ;;  %v1755_v61 = vor.u32 %v1914_v60, %v1754_v59  ;;  %v1751_v0 = vor.u32 %v1913_v63, %v1750_v62  ;;  %v1746_v1 = vld [vmem:[#allocation5 + $0x38] sm:$0xf]  ;;  %v1912_v2 = vld [vmem:[#allocation5 + $0x40] sm:$0xf0]  ;;  %v1871_v3 = vld [vmem:[%s2477_s11 + $0x8] sm:$0xff]  ;;  %s1926_s23 = sshll.u32 %s2380_s22, 7 }
  0x46   : > { %v2503_v4 = vld [vmem:[%s2477_s11 + $0x28] sm:$0xff]  ;;  %v1747_v5 = vor.u32 %v1912_v2, %v1746_v1  ;;  %v1742_v6 = vld [vmem:[#allocation5 + $0x20] sm:$0xf]  ;;  %v1910_v10 = vld [vmem:[#allocation5 + $0x10] sm:$0xf0]  ;;  %s1519_s13 = scalar_lea.hbm %s2979_s5, %s1926_s23  ;;  %s1520_s12 = sshll.u32 %s2908_s16, 4  ;;  %s1521_s12 = int_to_ptr.vmem [resolvable:$true] %s1520_s12 }
  0x47   : > { %v1911_v7 = vld [vmem:[#allocation5 + $0x28] sm:$0xf0]  ;;  %v1738_v9 = vld [vmem:[#allocation5 + $0x8] sm:$0xf]  ;;  %v1872_v12 = vld [vmem:[%s2477_s11 + $0x10] sm:$0xff]  ;;  %s1522_s14 = sshll.u32 %s1519_s13, 4  ;;  %s1523_s14 = int_to_ptr.hbm [resolvable:$true] %s1522_s14 }
  0x48   : > { %513 = vmatpush.bf16.msra.mxu1 %v1711_v31  ;;  %1938 = vmatpush.bf16.msra.mxu3 %v1711_v31  ;;  %v1743_v8 = vor.u32 %v1911_v7, %v1742_v6  ;;  %v1739_v11 = vor.u32 %v1910_v10, %v1738_v9  ;;  %v2509_v13 = vld [vmem:[%s2477_s11 + $0x30] sm:$0xff]  ;;  %v1873_v14 = vld [vmem:[%s2477_s11 + $0x18] sm:$0xff]  ;;  %v1898_v19 = vld [vmem:[#allocation8 + $0x20] sm:$0xff]  ;;  %s1508_s22 = scalar_lea.sflag [#allocation4], %s2473_s17  ;;  %s2258_s15 = sshra.s32 %s1523_s14, 4  ;;  %s2259_s15 = int_to_ptr.hbm [resolvable:$true] %s2258_s15 }
  0x49   : > { %465 = vmatpush.bf16.msra.mxu0 %v1699_v20  ;;  %1931 = vmatpush.bf16.msra.mxu2 %v1699_v20  ;;  %v2515_v15 = vld [vmem:[%s2477_s11 + $0x38] sm:$0xff]  ;;  %v1899_v18 = vld [vmem:[#allocation8 + $0x28] sm:$0xff]  ;;  %v327_v23 = vld [vmem:[#allocation7] sm:$0x3]  ;;  %s2260_s7 = scalar_lea.hbm %s2259_s15, 128  ;;  %s2264_s11 = scalar_lea.hbm %s2979_s5, 512 }
  0x4a   : > { %v1901_v16 = vld [vmem:[#allocation8 + $0x38] sm:$0xff]  ;;  %v1900_v17 = vld [vmem:[#allocation8 + $0x30] sm:$0xff]  ;;  %v1895_v22 = vld [vmem:[#allocation8 + $0x8] sm:$0xff]  ;;  %v2520_v24 = vperm.slane %v327_v23, 0  ;;  %p2261_p1 = scmp.ne.s32.totalorder %s2259_s15, %s2260_s7  ;;  %p2265_p7 = scmp.lt.s32.totalorder %s2259_s15, %s2979_s5 }
  0x4b   : > { %v1897_v20 = vld [vmem:[#allocation8 + $0x18] sm:$0xff]  ;;  %v1896_v21 = vld [vmem:[#allocation8 + $0x10] sm:$0xff]  ;;  %v1894_v25 = vld [vmem:[#allocation8] sm:$0xff]  ;;  %p2266_p2 = scmp.lt.s32.totalorder %s2264_s11, %s2260_s7 }
  0x4c   : > { %514 = vmatpush.bf16.msra.mxu1 %v1703_v38  ;;  %1939 = vmatpush.bf16.msra.mxu3 %v1703_v38  ;;  %v1909_v41 = vld [vmem:[#allocation8 + $0x78] sm:$0xff]  ;;  %v1908_v50 = vld [vmem:[#allocation8 + $0x70] sm:$0xff]  ;;  %v1907_v1 = vld [vmem:[#allocation8 + $0x68] sm:$0xff]  ;;  %p2262_p4 = pnand %p2261_p1, %p2443_p0 }
  0x4d   : > { %466 = vmatpush.bf16.msra.mxu0 %v1691_v27  ;;  %1932 = vmatpush.bf16.msra.mxu2 %v1691_v27  ;;  %p2267_p9 = por %p2266_p2, %p2265_p7 }
  0x4e   : > { %p2263_p8 = pneg %p2262_p4 }
  0x50   : > { %515 = vmatpush.bf16.msra.mxu1 %v1695_v44  ;;  %1940 = vmatpush.bf16.msra.mxu3 %v1695_v44  ;;  %p2268_p10 = pnand %p2267_p9, %p2263_p8 }
  0x51   : > { %467 = vmatpush.bf16.msra.mxu0 %v1683_v34  ;;  %1933 = vmatpush.bf16.msra.mxu2 %v1683_v34 }
  0x54   : > { %516 = vmatpush.bf16.msra.mxu1 %v1687_v54  ;;  %1941 = vmatpush.bf16.msra.mxu3 %v1687_v54  ;;  %v1925_v54 = vld [vmem:[#allocation8 + $0xb8] sm:$0xff] }
  0x55   : > { %468 = vmatpush.bf16.msra.mxu0 %v1675_v42  ;;  %1934 = vmatpush.bf16.msra.mxu2 %v1675_v42 }
  0x58   : > { %469 = vmatmul.bf16.vlgmr.msra.gmra.mxu0 %v2492_v47  ;;  %489 = vmatmul.bf16.vlgmr.msra.gmra.mxu2 %v2495_v48 }
  0x59   : > { %963 = vmatpush.bf16.msrb.mxu2 %v1767_v43  ;;  %517 = vmatpush.bf16.msra.mxu1 %v1679_v58 }
  0x5a   : > { %1942 = vmatpush.bf16.msra.mxu3 %v1679_v58  ;;  %1373 = vmatpush.bf16.msrb.mxu0 %v1901_v16  ;;  %v1906_v16 = vld [vmem:[#allocation8 + $0x60] sm:$0xff] }
  0x5c   : > { %518 = vmatmul.bf16.vlgmr.msra.gmra.mxu1 %v2492_v47 }
  0x5d   : > { %964 = vmatpush.bf16.msrb.mxu2 %v1763_v49  ;;  %538 = vmatmul.bf16.vlgmr.msra.gmra.mxu3 %v2495_v48  ;;  %v2546_v49 = vperm.slane %v327_v23, 1 }
  0x5e   : > { %1374 = vmatpush.bf16.msrb.mxu0 %v1900_v17  ;;  %1422 = vmatpush.bf16.msrb.mxu1 %v1909_v41 }
  0x5f   : > { %1228 = vmatpush.bf16.msrb.mxu3 %v1925_v54 }
  0x61   : > { %965 = vmatpush.bf16.msrb.mxu2 %v1759_v57 }
  0x62   : > { %1375 = vmatpush.bf16.msrb.mxu0 %v1899_v18  ;;  %1423 = vmatpush.bf16.msrb.mxu1 %v1908_v50 }
  0x65   : > { %966 = vmatpush.bf16.msrb.mxu2 %v1755_v61 }
  0x66   : > { %1376 = vmatpush.bf16.msrb.mxu0 %v1898_v19  ;;  %1424 = vmatpush.bf16.msrb.mxu1 %v1907_v1 }
  0x68   : > { %474 = vmatmul.bf16.gmra.mxu0 %v1871_v3  ;;  %494 = vmatmul.bf16.gmra.mxu2 %v2503_v4 }
  0x69   : > { %967 = vmatpush.bf16.msrb.mxu2 %v1751_v0 }
  0x6a   : > { %1377 = vmatpush.bf16.msrb.mxu0 %v1897_v20  ;;  %1425 = vmatpush.bf16.msrb.mxu1 %v1906_v16 }
  0x6c   : > { %523 = vmatmul.bf16.gmra.mxu1 %v1871_v3 }
  0x6d   : > { %968 = vmatpush.bf16.msrb.mxu2 %v1747_v5  ;;  %543 = vmatmul.bf16.gmra.mxu3 %v2503_v4 }
  0x6e   : > { %1378 = vmatpush.bf16.msrb.mxu0 %v1896_v21  ;;  %v1924_v21 = vld [vmem:[#allocation8 + $0xb0] sm:$0xff] }
  0x6f   : > { %1229 = vmatpush.bf16.msrb.mxu3 %v1924_v21 }
  0x71   : > { %969 = vmatpush.bf16.msrb.mxu2 %v1743_v8 }
  0x72   : > { %1379 = vmatpush.bf16.msrb.mxu0 %v1895_v22 }
  0x75   : > { %970 = vmatpush.bf16.msrb.mxu2 %v1739_v11 }
  0x76   : > { %1380 = vmatpush.bf16.msrb.mxu0 %v1894_v25 }
  0x78   : > { %479 = vmatmul.bf16.gmra.mxu0 %v1872_v12  ;;  %499 = vmatmul.bf16.gmra.mxu2 %v2509_v13 }
  0x7c   : > { %528 = vmatmul.bf16.gmra.mxu1 %v1872_v12 }
  0x7d   : > { %548 = vmatmul.bf16.gmra.mxu3 %v2509_v13 }
  0x88   : > { %484 = vmatmul.bf16.gmra.mxu0 %v1873_v14  ;;  %504 = vmatmul.bf16.gmra.mxu2 %v2515_v15 }
  0x8c   : > { %533 = vmatmul.bf16.gmra.mxu1 %v1873_v14 }
  0x8d   : > { %553 = vmatmul.bf16.gmra.mxu3 %v2515_v15 }
  0x98   : > { %971 = vmatmul.bf16.vlgmr.msrb.gmra.mxu2 %v2492_v47 }
  0xa8   : > { %976 = vmatmul.bf16.gmra.mxu2 %v1871_v3 }
  0xb8   : > { %981 = vmatmul.bf16.gmra.mxu2 %v1872_v12 }
  0xc8   : > { %986 = vmatmul.bf16.gmra.mxu2 %v1873_v14 }
  0xd5   : > { %v470_v26 = vpop.f32.mrf.mxu0 }
  0xd6   : > { %v2523_v27 = vadd.f32 %v470_v26, %v2520_v24 }
  0xd8   : > { %v559_v28 = vmul.f32 %v2523_v27, %v2523_v27  ;;  %991 = vmatmul.bf16.gmra.mxu2 %v2495_v48 }
  0xd9   : > { %v519_v37 = vpop.f32.mrf.mxu1 }
  0xda   : > { %v591_v29 = vmul.f32 %v559_v28, %v2523_v27  ;;  %v2555_v57 = vadd.f32 %v519_v37, %v2546_v49 }
  0xdb   : > { %v490_v30 = vpop.f32.mrf.mxu2 }
  0xdc   : > { %v623_v31 = vmul.f32 0.044715, %v591_v29  ;;  %v2530_v32 = vadd.f32 %v490_v30, %v2520_v24  ;;  %v560_v63 = vmul.f32 %v2555_v57, %v2555_v57 }
  0xdd   : > { %v472_v33 = vpop.f32.mrf.mxu0 }
  0xde   : > { %v655_v34 = vadd.f32 %v623_v31, %v2523_v27  ;;  %v575_v35 = vmul.f32 %v2530_v32, %v2530_v32  ;;  %v2536_v36 = vadd.f32 %v472_v33, %v2520_v24  ;;  %v592_v7 = vmul.f32 %v560_v63, %v2555_v57 }
  0xe0   : > { %v687_v38 = vmul.f32 0.7978846, %v655_v34  ;;  %v607_v39 = vmul.f32 %v575_v35, %v2530_v32  ;;  %v561_v40 = vmul.f32 %v2536_v36, %v2536_v36  ;;  %v624_v12 = vmul.f32 0.044715, %v592_v7 }
  0xe1   : > { %v521_v55 = vpop.f32.mrf.mxu1 }
  0xe2   : > { %2028 = vtanh.f32 %v687_v38  ;;  %v639_v42 = vmul.f32 0.044715, %v607_v39  ;;  %v593_v43 = vmul.f32 %v561_v40, %v2536_v36  ;;  %v2558_v58 = vadd.f32 %v521_v55, %v2546_v49  ;;  %v1905_v39 = vld [vmem:[#allocation8 + $0x58] sm:$0xff] }
  0xe3   : > { %v492_v44 = vpop.f32.mrf.mxu2  ;;  %v656_v26 = vadd.f32 %v624_v12, %v2555_v57  ;;  %1426 = vmatpush.bf16.msrb.mxu1 %v1905_v39 }
  0xe4   : > { %v671_v45 = vadd.f32 %v639_v42, %v2530_v32  ;;  %v625_v46 = vmul.f32 0.044715, %v593_v43  ;;  %v2544_v47 = vadd.f32 %v492_v44, %v2520_v24  ;;  %v562_v0 = vmul.f32 %v2558_v58, %v2558_v58 }
  0xe5   : > { %v475_v48 = vpop.f32.mrf.mxu0  ;;  %v688_v37 = vmul.f32 0.7978846, %v656_v26 }
  0xe6   : > { %v657_v51 = vadd.f32 %v625_v46, %v2536_v36  ;;  %v577_v52 = vmul.f32 %v2544_v47, %v2544_v47  ;;  %v2552_v53 = vadd.f32 %v475_v48, %v2520_v24  ;;  %v703_v56 = vmul.f32 0.7978846, %v671_v45 }
  0xe7   : > { %v594_v8 = vmul.f32 %v562_v0, %v2558_v58 }
  0xe8   : > { %v2029_v59 = vpop.eup %2028  ;;  %v689_v60 = vmul.f32 0.7978846, %v657_v51  ;;  %v609_v61 = vmul.f32 %v577_v52, %v2544_v47  ;;  %v563_v62 = vmul.f32 %v2552_v53, %v2552_v53  ;;  %996 = vmatmul.bf16.gmra.mxu2 %v2503_v4  ;;  %2030 = vtanh.f32 %v703_v56  ;;  %v1904_v52 = vld [vmem:[#allocation8 + $0x50] sm:$0xff] }
  0xe9   : > { %v751_v6 = vadd.f32 1.0, %v2029_v59  ;;  %v626_v14 = vmul.f32 0.044715, %v594_v8  ;;  %v524_v22 = vpop.f32.mrf.mxu1  ;;  %1427 = vmatpush.bf16.msrb.mxu1 %v1904_v52 }
  0xea   : > { %2032 = vtanh.f32 %v689_v60  ;;  %v641_v2 = vmul.f32 0.044715, %v609_v61  ;;  %v595_v3 = vmul.f32 %v563_v62, %v2552_v53  ;;  %v2600_v60 = vadd.f32 %v524_v22, %v2546_v49  ;;  %v1923_v61 = vld [vmem:[#allocation8 + $0xa8] sm:$0xff] }
  0xeb   : > { %v495_v5 = vpop.f32.mrf.mxu2  ;;  %v783_v25 = vmul.f32 0.5, %v751_v6  ;;  %v658_v28 = vadd.f32 %v626_v14, %v2558_v58  ;;  %1230 = vmatpush.bf16.msrb.mxu3 %v1923_v61 }
  0xec   : > { %v673_v4 = vadd.f32 %v641_v2, %v2544_v47  ;;  %v627_v9 = vmul.f32 0.044715, %v595_v3  ;;  %v2573_v10 = vadd.f32 %v495_v5, %v2520_v24  ;;  %v564_v7 = vmul.f32 %v2600_v60, %v2600_v60 }
  0xed   : > { %v477_v11 = vpop.f32.mrf.mxu0  ;;  %v690_v38 = vmul.f32 0.7978846, %v658_v28  ;;  %v815_v44 = vmul.f32 %v783_v25, %v2523_v27 }
  0xee   : > { %v2031_v17 = vpop.eup %2030  ;;  %v659_v18 = vadd.f32 %v627_v9, %v2552_v53  ;;  %v579_v19 = vmul.f32 %v2573_v10, %v2573_v10  ;;  %v2579_v20 = vadd.f32 %v477_v11, %v2520_v24  ;;  %v705_v23 = vmul.f32 0.7978846, %v673_v4  ;;  %v1903_v11 = vld [vmem:[#allocation8 + $0x48] sm:$0xff] }
  0xef   : > { %v767_v29 = vadd.f32 1.0, %v2031_v17  ;;  %1428 = vmatpush.bf16.msrb.mxu1 %v1903_v11 }
  0xf0   : > { %v2033_v30 = vpop.eup %2032  ;;  %v611_v31 = vmul.f32 %v579_v19, %v2573_v10  ;;  %v565_v33 = vmul.f32 %v2579_v20, %v2579_v20  ;;  %v691_v34 = vmul.f32 0.7978846, %v659_v18  ;;  %2034 = vtanh.f32 %v705_v23 }
  0xf1   : > { %v753_v35 = vadd.f32 1.0, %v2033_v30  ;;  %v799_v54 = vmul.f32 0.5, %v767_v29  ;;  %v526_v62 = vpop.f32.mrf.mxu1  ;;  %v596_v18 = vmul.f32 %v564_v7, %v2600_v60  ;;  %v1922_v29 = vld [vmem:[#allocation8 + $0xa0] sm:$0xff] }
  0xf2   : > { %v643_v40 = vmul.f32 0.044715, %v611_v31  ;;  %v597_v41 = vmul.f32 %v565_v33, %v2579_v20  ;;  %2036 = vtanh.f32 %v691_v34  ;;  %v2603_v0 = vadd.f32 %v526_v62, %v2546_v49  ;;  %v1902_v34 = vld [vmem:[#allocation8 + $0x40] sm:$0xff]  ;;  %1231 = vmatpush.bf16.msrb.mxu3 %v1922_v29 }
  0xf3   : > { %v497_v42 = vpop.f32.mrf.mxu2  ;;  %v785_v43 = vmul.f32 0.5, %v753_v35  ;;  %2038 = vtanh.f32 %v688_v37  ;;  %v2614_v14 = vmul.f32 %v799_v54, %v2530_v32  ;;  %v628_v28 = vmul.f32 0.044715, %v596_v18  ;;  %1429 = vmatpush.bf16.msrb.mxu1 %v1902_v34 }
  0xf4   : > { %v675_v45 = vadd.f32 %v643_v40, %v2573_v10  ;;  %v629_v46 = vmul.f32 0.044715, %v597_v41  ;;  %v2590_v48 = vadd.f32 %v497_v42, %v2520_v24  ;;  %2040 = vtanh.f32 %v690_v38 }
  0xf5   : > { %v480_v50 = vpop.f32.mrf.mxu0  ;;  %v817_v51 = vmul.f32 %v785_v43, %v2536_v36  ;;  %v566_v9 = vmul.f32 %v2603_v0, %v2603_v0  ;;  %v660_v41 = vadd.f32 %v628_v28, %v2600_v60 }
  0xf6   : > { %v2035_v55 = vpop.eup %2034  ;;  %v661_v56 = vadd.f32 %v629_v46, %v2579_v20  ;;  %v581_v27 = vmul.f32 %v2590_v48, %v2590_v48  ;;  %v2597_v59 = vadd.f32 %v480_v50, %v2520_v24  ;;  %v707_v1 = vmul.f32 0.7978846, %v675_v45 }
  0xf7   : > { %v847_v63 = vpack.c.bf16 %v817_v51, %v815_v44  ;;  %v769_v36 = vadd.f32 1.0, %v2035_v55  ;;  %v598_v21 = vmul.f32 %v566_v9, %v2603_v0  ;;  %v692_v62 = vmul.f32 0.7978846, %v660_v41 }
  0xf8   : > { %v2037_v2 = vpop.eup %2036  ;;  %v613_v3 = vmul.f32 %v581_v27, %v2590_v48  ;;  %v567_v5 = vmul.f32 %v2597_v59, %v2597_v59  ;;  %1001 = vmatmul.bf16.gmra.mxu2 %v2509_v13  ;;  %v693_v6 = vmul.f32 0.7978846, %v661_v56 }
  0xf9   : > { %v2039_v8 = vpop.eup %2038  ;;  %1381 = vmatmul.bf16.vlgmr.msrb.gmra.mxu0 %v847_v63  ;;  %v755_v4 = vadd.f32 1.0, %v2037_v2  ;;  %v801_v12 = vmul.f32 0.5, %v769_v36  ;;  %v630_v33 = vmul.f32 0.044715, %v598_v21  ;;  %v529_v42 = vpop.f32.mrf.mxu1 }
  0xfa   : > { %v2041_v16 = vpop.eup %2040  ;;  %v645_v17 = vmul.f32 0.044715, %v613_v3  ;;  %v599_v13 = vmul.f32 %v567_v5, %v2597_v59  ;;  %2042 = vtanh.f32 %v693_v6  ;;  %v752_v22 = vadd.f32 1.0, %v2039_v8 }
  0xfb   : > { %v500_v19 = vpop.f32.mrf.mxu2  ;;  %v754_v23 = vadd.f32 1.0, %v2041_v16  ;;  %2044 = vtanh.f32 %v707_v1  ;;  %v787_v31 = vmul.f32 0.5, %v755_v4  ;;  %v662_v43 = vadd.f32 %v630_v33, %v2603_v0 }
  0xfc   : > { %v677_v25 = vadd.f32 %v645_v17, %v2590_v48  ;;  %v631_v26 = vmul.f32 0.044715, %v599_v13  ;;  %v2621_v32 = vadd.f32 %v500_v19, %v2520_v24  ;;  %v784_v35 = vmul.f32 0.5, %v752_v22  ;;  %v1921_v22 = vld [vmem:[#allocation8 + $0x98] sm:$0xff] }
  0xfd   : > { %v482_v30 = vpop.f32.mrf.mxu0  ;;  %v786_v37 = vmul.f32 0.5, %v754_v23  ;;  %v2634_v46 = vmul.f32 %v801_v12, %v2544_v47  ;;  %v694_v63 = vmul.f32 0.7978846, %v662_v43  ;;  %v819_v2 = vmul.f32 %v787_v31, %v2552_v53  ;;  %1232 = vmatpush.bf16.msrb.mxu3 %v1921_v22 }
  0xfe   : > { %v663_v38 = vadd.f32 %v631_v26, %v2597_v59  ;;  %v583_v39 = vmul.f32 %v2621_v32, %v2621_v32  ;;  %v2627_v40 = vadd.f32 %v482_v30, %v2520_v24  ;;  %v816_v44 = vmul.f32 %v784_v35, %v2555_v57 }
  0xff   : > { %v818_v45 = vmul.f32 %v786_v37, %v2558_v58  ;;  %v709_v55 = vmul.f32 0.7978846, %v677_v25  ;;  %v855_v47 = vpack.c.bf16 %v2634_v46, %v2614_v14  ;;  %v2655_v16 = vadd.f32 %v529_v42, %v2546_v49 }
 0x100   : > { %v2043_v50 = vpop.eup %2042  ;;  %v615_v51 = vmul.f32 %v583_v39, %v2621_v32  ;;  %v569_v52 = vmul.f32 %v2627_v40, %v2627_v40  ;;  %v695_v54 = vmul.f32 0.7978846, %v663_v38 }
 0x101   : > { %v2045_v56 = vpop.eup %2044  ;;  %v757_v27 = vadd.f32 1.0, %v2043_v50  ;;  %v848_v61 = vpack.c.bf16 %v818_v45, %v816_v44  ;;  %v531_v53 = vpop.f32.mrf.mxu1  ;;  %v568_v26 = vmul.f32 %v2655_v16, %v2655_v16 }
 0x102   : > { %v647_v36 = vmul.f32 0.044715, %v615_v51  ;;  %v601_v57 = vmul.f32 %v569_v52, %v2627_v40  ;;  %2046 = vtanh.f32 %v695_v54  ;;  %v2658_v17 = vadd.f32 %v531_v53, %v2546_v49 }
 0x103   : > { %v502_v58 = vpop.f32.mrf.mxu2  ;;  %v789_v1 = vmul.f32 0.5, %v757_v27  ;;  %1430 = vmatmul.bf16.vlgmr.msrb.gmra.mxu1 %v848_v61  ;;  %2048 = vtanh.f32 %v692_v62  ;;  %v771_v13 = vadd.f32 1.0, %v2045_v56  ;;  %v600_v35 = vmul.f32 %v568_v26, %v2655_v16 }
 0x104   : > { %v633_v3 = vmul.f32 0.044715, %v601_v57  ;;  %v2644_v5 = vadd.f32 %v502_v58, %v2520_v24  ;;  %2050 = vtanh.f32 %v694_v63  ;;  %v679_v6 = vadd.f32 %v647_v36, %v2621_v32 }
 0x105   : > { %v485_v7 = vpop.f32.mrf.mxu0  ;;  %v821_v8 = vmul.f32 %v789_v1, %v2579_v20  ;;  %2052 = vtanh.f32 %v709_v55  ;;  %v570_v28 = vmul.f32 %v2658_v17, %v2658_v17  ;;  %v803_v39 = vmul.f32 0.5, %v771_v13 }
 0x106   : > { %v665_v4 = vadd.f32 %v633_v3, %v2627_v40  ;;  %v585_v9 = vmul.f32 %v2644_v5, %v2644_v5  ;;  %v2652_v11 = vadd.f32 %v485_v7, %v2520_v24  ;;  %v711_v29 = vmul.f32 0.7978846, %v679_v6  ;;  %v1920_v6 = vld [vmem:[#allocation8 + $0x90] sm:$0xff] }
 0x107   : > { %v849_v12 = vpack.c.bf16 %v821_v8, %v819_v2  ;;  %v602_v37 = vmul.f32 %v570_v28, %v2658_v17  ;;  %v632_v52 = vmul.f32 0.044715, %v600_v35  ;;  %v2684_v58 = vmul.f32 %v803_v39, %v2573_v10  ;;  %1233 = vmatpush.bf16.msrb.mxu3 %v1920_v6  ;;  %v2713_v39 = vld [vmem:[#allocation7 + $0x2] ss:$0 sm:$0xff] }
 0x108   : > { %v2047_v18 = vpop.eup %2046  ;;  %v617_v20 = vmul.f32 %v585_v9, %v2644_v5  ;;  %v571_v19 = vmul.f32 %v2652_v11, %v2652_v11  ;;  %1006 = vmatmul.bf16.gmra.mxu2 %v2515_v15  ;;  %v697_v21 = vmul.f32 0.7978846, %v665_v4 }
 0x109   : > { %v2049_v23 = vpop.eup %2048  ;;  %1386 = vmatmul.bf16.gmra.mxu0 %v849_v12  ;;  %v759_v25 = vadd.f32 1.0, %v2047_v18  ;;  %v534_v61 = vpop.f32.mrf.mxu1  ;;  %v634_v63 = vmul.f32 0.044715, %v602_v37  ;;  %v664_v10 = vadd.f32 %v632_v52, %v2655_v16 }
 0x10a   : > { %v2051_v30 = vpop.eup %2050  ;;  %v649_v31 = vmul.f32 0.044715, %v617_v20  ;;  %v603_v33 = vmul.f32 %v571_v19, %v2652_v11  ;;  %2054 = vtanh.f32 %v697_v21  ;;  %v756_v34 = vadd.f32 1.0, %v2049_v23 }
 0x10b   : > { %v505_v15 = vpop.f32.mrf.mxu2  ;;  %v758_v38 = vadd.f32 1.0, %v2051_v30  ;;  %v2053_v41 = vpop.eup %2052  ;;  %v791_v51 = vmul.f32 0.5, %v759_v25  ;;  %2056 = vtanh.f32 %v711_v29  ;;  %v666_v19 = vadd.f32 %v634_v63, %v2658_v17  ;;  %v1919_v25 = vld [vmem:[#allocation8 + $0x88] sm:$0xff] }
 0x10c   : > { %v681_v42 = vadd.f32 %v649_v31, %v2644_v5  ;;  %v635_v43 = vmul.f32 0.044715, %v603_v33  ;;  %v2673_v44 = vadd.f32 %v505_v15, %v2520_v24  ;;  %v788_v45 = vmul.f32 0.5, %v756_v34  ;;  %1234 = vmatpush.bf16.msrb.mxu3 %v1919_v25 }
 0x10d   : > { %v487_v50 = vpop.f32.mrf.mxu0  ;;  %v790_v54 = vmul.f32 0.5, %v758_v38  ;;  %v773_v57 = vadd.f32 1.0, %v2053_v41  ;;  %v823_v9 = vmul.f32 %v791_v51, %v2597_v59  ;;  %v2702_v28 = vadd.f32 %v534_v61, %v2546_v49  ;;  %v1918_v51 = vld [vmem:[#allocation8 + $0x80] sm:$0xff] }
 0x10e   : > { %v667_v55 = vadd.f32 %v635_v43, %v2652_v11  ;;  %v587_v56 = vmul.f32 %v2673_v44, %v2673_v44  ;;  %v2679_v27 = vadd.f32 %v487_v50, %v2520_v24  ;;  %v820_v62 = vmul.f32 %v788_v45, %v2600_v60 }
 0x10f   : > { %v822_v36 = vmul.f32 %v790_v54, %v2603_v0  ;;  %v713_v8 = vmul.f32 0.7978846, %v681_v42  ;;  %v805_v53 = vmul.f32 0.5, %v773_v57  ;;  %v696_v33 = vmul.f32 0.7978846, %v664_v10 }
 0x110   : > { %v2055_v1 = vpop.eup %2054  ;;  %v619_v2 = vmul.f32 %v587_v56, %v2673_v44  ;;  %v573_v3 = vmul.f32 %v2679_v27, %v2679_v27  ;;  %v699_v7 = vmul.f32 0.7978846, %v667_v55  ;;  %v572_v43 = vmul.f32 %v2702_v28, %v2702_v28  ;;  %1235 = vmatpush.bf16.msrb.mxu3 %v1918_v51 }
 0x111   : > { %v761_v4 = vadd.f32 1.0, %v2055_v1  ;;  %v850_v60 = vpack.c.bf16 %v822_v36, %v820_v62  ;;  %v2057_v13 = vpop.eup %2056  ;;  %v2694_v21 = vmul.f32 %v805_v53, %v2590_v48  ;;  %v536_v31 = vpop.f32.mrf.mxu1 }
 0x112   : > { %v651_v12 = vmul.f32 0.044715, %v619_v2  ;;  %v605_v0 = vmul.f32 %v573_v3, %v2679_v27  ;;  %2058 = vtanh.f32 %v699_v7  ;;  %v775_v34 = vadd.f32 1.0, %v2057_v13 }
 0x113   : > { %v507_v18 = vpop.f32.mrf.mxu2  ;;  %v793_v20 = vmul.f32 0.5, %v761_v4  ;;  %1435 = vmatmul.bf16.gmra.mxu1 %v850_v60  ;;  %2060 = vtanh.f32 %v713_v8  ;;  %v857_v29 = vpack.c.bf16 %v2694_v21, %v2684_v58  ;;  %v2710_v15 = vadd.f32 %v536_v31, %v2546_v49 }
 0x114   : > { %v683_v59 = vadd.f32 %v651_v12, %v2673_v44  ;;  %v637_v22 = vmul.f32 0.044715, %v605_v0  ;;  %v2698_v23 = vadd.f32 %v507_v18, %v2520_v24  ;;  %2062 = vtanh.f32 %v696_v33 }
 0x115   : > { %v825_v26 = vmul.f32 %v793_v20, %v2627_v40  ;;  %v698_v40 = vmul.f32 0.7978846, %v666_v19  ;;  %v574_v45 = vmul.f32 %v2710_v15, %v2710_v15  ;;  %v807_v54 = vmul.f32 0.5, %v775_v34 }
 0x116   : > { %v669_v30 = vadd.f32 %v637_v22, %v2679_v27  ;;  %v589_v48 = vmul.f32 %v2698_v23, %v2698_v23  ;;  %v715_v35 = vmul.f32 0.7978846, %v683_v59  ;;  %v604_v36 = vmul.f32 %v572_v43, %v2702_v28 }
 0x117   : > { %v851_v24 = vpack.c.bf16 %v825_v26, %v823_v9  ;;  %2064 = vtanh.f32 %v698_v40  ;;  %v606_v57 = vmul.f32 %v574_v45, %v2710_v15  ;;  %v2728_v3 = vmul.f32 %v807_v54, %v2621_v32  ;;  %v539_v26 = vpop.f32.mrf.mxu3 }
 0x118   : > { %v2059_v37 = vpop.eup %2058  ;;  %v621_v38 = vmul.f32 %v589_v48, %v2698_v23  ;;  %v701_v41 = vmul.f32 0.7978846, %v669_v30  ;;  %v636_v18 = vmul.f32 0.044715, %v604_v36 }
 0x119   : > { %v2061_v42 = vpop.eup %2060  ;;  %1391 = vmatmul.bf16.gmra.mxu0 %v851_v24  ;;  %v763_v56 = vadd.f32 1.0, %v2059_v37  ;;  %v638_v32 = vmul.f32 0.044715, %v606_v57  ;;  %v2747_v37 = vadd.f32 %v539_v26, %v2546_v49 }
 0x11a   : > { %v653_v50 = vmul.f32 0.044715, %v621_v38  ;;  %2066 = vtanh.f32 %v701_v41  ;;  %v777_v52 = vadd.f32 1.0, %v2061_v42  ;;  %v2063_v1 = vpop.eup %2062  ;;  %v668_v40 = vadd.f32 %v636_v18, %v2702_v28 }
 0x11b   : > { %v972_v55 = vpop.f32.mrf.mxu2  ;;  %2068 = vtanh.f32 %v715_v35  ;;  %v795_v4 = vmul.f32 0.5, %v763_v56  ;;  %v760_v9 = vadd.f32 1.0, %v2063_v1  ;;  %v670_v35 = vadd.f32 %v638_v32, %v2710_v15 }
 0x11c   : > { %v685_v61 = vadd.f32 %v653_v50, %v2698_v23  ;;  %v2721_v62 = vadd.f32 %v2713_v39, %v972_v55  ;;  %v809_v63 = vmul.f32 0.5, %v777_v52  ;;  %v700_v50 = vmul.f32 0.7978846, %v668_v40 }
 0x11d   : > { %v2065_v8 = vpop.eup %2064  ;;  %v792_v20 = vmul.f32 0.5, %v760_v9  ;;  %v827_v25 = vmul.f32 %v795_v4, %v2652_v11  ;;  %v702_v51 = vmul.f32 0.7978846, %v670_v35 }
 0x11e   : > { %v1012_v2 = vmul.f32 %v2721_v62, %v2721_v62  ;;  %v2731_v6 = vmul.f32 %v809_v63, %v2644_v5  ;;  %v717_v7 = vmul.f32 0.7978846, %v685_v61  ;;  %v762_v12 = vadd.f32 1.0, %v2065_v8 }
 0x11f   : > { %v824_v30 = vmul.f32 %v792_v20, %v2655_v16  ;;  %v541_v56 = vpop.f32.mrf.mxu3 }
 0x120   : > { %v2067_v60 = vpop.eup %2066  ;;  %v1028_v53 = vmul.f32 %v1012_v2, %v2721_v62  ;;  %v859_v0 = vpack.c.bf16 %v2731_v6, %v2728_v3  ;;  %2070 = vtanh.f32 %v717_v7  ;;  %v794_v5 = vmul.f32 0.5, %v762_v12 }
 0x121   : > { %v2069_v10 = vpop.eup %2068  ;;  %v765_v13 = vadd.f32 1.0, %v2067_v60  ;;  %v2765_v1 = vadd.f32 %v541_v56, %v2546_v49 }
 0x122   : > { %v1044_v19 = vmul.f32 0.044715, %v1028_v53  ;;  %v779_v48 = vadd.f32 1.0, %v2069_v10  ;;  %v826_v34 = vmul.f32 %v794_v5, %v2658_v17 }
 0x123   : > { %v974_v59 = vpop.f32.mrf.mxu2  ;;  %v797_v22 = vmul.f32 0.5, %v765_v13 }
 0x124   : > { %v1060_v31 = vadd.f32 %v1044_v19, %v2721_v62  ;;  %v2740_v33 = vadd.f32 %v2713_v39, %v974_v59  ;;  %v852_v41 = vpack.c.bf16 %v826_v34, %v824_v30  ;;  %v811_v45 = vmul.f32 0.5, %v779_v48 }
 0x125   : > { %v829_v24 = vmul.f32 %v797_v22, %v2679_v27  ;;  %v576_v27 = vmul.f32 %v2747_v37, %v2747_v37 }
 0x126   : > { %v2071_v11 = vpop.eup %2070  ;;  %v1076_v38 = vmul.f32 0.7978846, %v1060_v31  ;;  %v1013_v16 = vmul.f32 %v2740_v33, %v2740_v33  ;;  %1440 = vmatmul.bf16.gmra.mxu1 %v852_v41  ;;  %v2755_v61 = vmul.f32 %v811_v45, %v2673_v44 }
 0x127   : > { %v853_v42 = vpack.c.bf16 %v829_v24, %v827_v25  ;;  %v781_v43 = vadd.f32 1.0, %v2071_v11  ;;  %v608_v2 = vmul.f32 %v576_v27, %v2747_v37  ;;  %v544_v22 = vpop.f32.mrf.mxu3 }
 0x128   : > { %v1029_v17 = vmul.f32 %v1013_v16, %v2740_v33  ;;  %2072 = vtanh.f32 %v1076_v38  ;;  %v2783_v48 = vadd.f32 %v544_v22, %v2546_v49 }
 0x129   : > { %1396 = vmatmul.bf16.gmra.mxu0 %v853_v42  ;;  %v813_v52 = vmul.f32 0.5, %v781_v43  ;;  %2074 = vtanh.f32 %v700_v50  ;;  %v640_v12 = vmul.f32 0.044715, %v608_v2 }
 0x12a   : > { %v1045_v54 = vmul.f32 0.044715, %v1029_v17  ;;  %2076 = vtanh.f32 %v702_v51  ;;  %v580_v45 = vmul.f32 %v2783_v48, %v2783_v48 }
 0x12b   : > { %v977_v55 = vpop.f32.mrf.mxu2  ;;  %v2758_v63 = vmul.f32 %v813_v52, %v2698_v23  ;;  %v578_v23 = vmul.f32 %v2765_v1, %v2765_v1  ;;  %v672_v26 = vadd.f32 %v640_v12, %v2747_v37 }
 0x12c   : > { %v1061_v36 = vadd.f32 %v1045_v54, %v2740_v33  ;;  %v2762_v57 = vadd.f32 %v2713_v39, %v977_v55  ;;  %v612_v55 = vmul.f32 %v580_v45, %v2783_v48 }
 0x12d   : > { %v861_v7 = vpack.c.bf16 %v2758_v63, %v2755_v61  ;;  %v610_v60 = vmul.f32 %v578_v23, %v2765_v1  ;;  %v704_v17 = vmul.f32 0.7978846, %v672_v26 }
 0x12e   : > { %v1077_v8 = vmul.f32 0.7978846, %v1061_v36  ;;  %v1014_v44 = vmul.f32 %v2762_v57, %v2762_v57  ;;  %v2073_v4 = vpop.eup %2072  ;;  %v644_v23 = vmul.f32 0.044715, %v612_v55 }
 0x12f   : > { %v2075_v53 = vpop.eup %2074  ;;  %v642_v13 = vmul.f32 0.044715, %v610_v60  ;;  %v1108_v19 = vadd.f32 1.0, %v2073_v4  ;;  %v546_v46 = vpop.f32.mrf.mxu3 }
 0x130   : > { %2078 = vtanh.f32 %v1077_v8  ;;  %v1030_v9 = vmul.f32 %v1014_v44, %v2762_v57  ;;  %v764_v18 = vadd.f32 1.0, %v2075_v53  ;;  %v2077_v32 = vpop.eup %2076  ;;  %v2803_v56 = vadd.f32 %v546_v46, %v2546_v49 }
 0x131   : > { %v766_v25 = vadd.f32 1.0, %v2077_v32  ;;  %v674_v30 = vadd.f32 %v642_v13, %v2765_v1  ;;  %v1124_v38 = vmul.f32 0.5, %v1108_v19  ;;  %v676_v22 = vadd.f32 %v644_v23, %v2783_v48 }
 0x132   : > { %v1046_v10 = vmul.f32 0.044715, %v1030_v9  ;;  %v796_v31 = vmul.f32 0.5, %v764_v18 }
 0x133   : > { %v979_v20 = vpop.f32.mrf.mxu2  ;;  %v798_v35 = vmul.f32 0.5, %v766_v25  ;;  %v706_v27 = vmul.f32 0.7978846, %v674_v30  ;;  %v708_v45 = vmul.f32 0.7978846, %v676_v22 }
 0x134   : > { %v1062_v5 = vadd.f32 %v1046_v10, %v2762_v57  ;;  %v2778_v59 = vadd.f32 %v2713_v39, %v979_v20  ;;  %v828_v16 = vmul.f32 %v796_v31, %v2702_v28  ;;  %v1140_v28 = vmul.f32 %v1124_v38, %v2721_v62 }
 0x135   : > { %v830_v42 = vmul.f32 %v798_v35, %v2710_v15 }
 0x136   : > { %v2079_v34 = vpop.eup %2078  ;;  %v1015_v24 = vmul.f32 %v2778_v59, %v2778_v59  ;;  %v1078_v40 = vmul.f32 0.7978846, %v1062_v5 }
 0x137   : > { %v1109_v11 = vadd.f32 1.0, %v2079_v34  ;;  %v854_v51 = vpack.c.bf16 %v830_v42, %v828_v16  ;;  %v549_v19 = vpop.f32.mrf.mxu3 }
 0x138   : > { %v1031_v41 = vmul.f32 %v1015_v24, %v2778_v59  ;;  %2080 = vtanh.f32 %v1078_v40  ;;  %v2817_v25 = vadd.f32 %v549_v19, %v2546_v49 }
 0x139   : > { %1401 = vmatmul.bf16.gmra.mxu0 %v855_v47  ;;  %v1125_v43 = vmul.f32 0.5, %v1109_v11  ;;  %2082 = vtanh.f32 %v704_v17  ;;  %1445 = vmatmul.bf16.gmra.mxu1 %v854_v51 }
 0x13a   : > { %v1047_v50 = vmul.f32 0.044715, %v1031_v41  ;;  %2084 = vtanh.f32 %v706_v27  ;;  %v584_v42 = vmul.f32 %v2817_v25, %v2817_v25 }
 0x13b   : > { %v982_v52 = vpop.f32.mrf.mxu2  ;;  %v1141_v54 = vmul.f32 %v1125_v43, %v2740_v33  ;;  %v582_v33 = vmul.f32 %v2803_v56, %v2803_v56 }
 0x13c   : > { %v1063_v15 = vadd.f32 %v1047_v50, %v2778_v59  ;;  %v2799_v14 = vadd.f32 %v2713_v39, %v982_v52  ;;  %v616_v52 = vmul.f32 %v584_v42, %v2817_v25 }
 0x13d   : > { %v1156_v47 = vpack.c.bf16 %v1141_v54, %v1140_v28  ;;  %v614_v4 = vmul.f32 %v582_v33, %v2803_v56 }
 0x13e   : > { %v1016_v62 = vmul.f32 %v2799_v14, %v2799_v14  ;;  %v1079_v36 = vmul.f32 0.7978846, %v1063_v15  ;;  %v2081_v2 = vpop.eup %2080  ;;  %v648_v55 = vmul.f32 0.044715, %v616_v52 }
 0x13f   : > { %1236 = vmatmul.bf16.vlgmr.msrb.gmra.mxu3 %v1156_v47  ;;  %v2083_v44 = vpop.eup %2082  ;;  %v1110_v10 = vadd.f32 1.0, %v2081_v2  ;;  %v646_v13 = vmul.f32 0.044715, %v614_v4  ;;  %v551_v21 = vpop.f32.mrf.mxu3 }
 0x140   : > { %v1032_v8 = vmul.f32 %v1016_v62, %v2799_v14  ;;  %2086 = vtanh.f32 %v1079_v36  ;;  %v2085_v9 = vpop.eup %2084  ;;  %v768_v53 = vadd.f32 1.0, %v2083_v44  ;;  %v2838_v28 = vadd.f32 %v551_v21, %v2546_v49 }
 0x141   : > { %v770_v18 = vadd.f32 1.0, %v2085_v9  ;;  %v678_v34 = vadd.f32 %v646_v13, %v2803_v56  ;;  %v1126_v11 = vmul.f32 0.5, %v1110_v10  ;;  %v680_v10 = vadd.f32 %v648_v55, %v2817_v25 }
 0x142   : > { %v1048_v60 = vmul.f32 0.044715, %v1032_v8  ;;  %v800_v5 = vmul.f32 0.5, %v768_v53 }
 0x143   : > { %v984_v12 = vpop.f32.mrf.mxu2  ;;  %v802_v26 = vmul.f32 0.5, %v770_v18  ;;  %v710_v27 = vmul.f32 0.7978846, %v678_v34  ;;  %v1142_v50 = vmul.f32 %v1126_v11, %v2762_v57 }
 0x144   : > { %v1064_v32 = vadd.f32 %v1048_v60, %v2799_v14  ;;  %v2813_v20 = vadd.f32 %v2713_v39, %v984_v12  ;;  %v832_v40 = vmul.f32 %v800_v5, %v2747_v37 }
 0x145   : > { %v834_v38 = vmul.f32 %v802_v26, %v2765_v1 }
 0x146   : > { %v2087_v30 = vpop.eup %2086  ;;  %v1017_v31 = vmul.f32 %v2813_v20, %v2813_v20  ;;  %v1080_v24 = vmul.f32 0.7978846, %v1064_v32 }
 0x147   : > { %v1111_v35 = vadd.f32 1.0, %v2087_v30  ;;  %v856_v43 = vpack.c.bf16 %v834_v38, %v832_v40  ;;  %v554_v53 = vpop.f32.mrf.mxu3  ;;  %v712_v38 = vmul.f32 0.7978846, %v680_v10 }
 0x148   : > { %v1033_v16 = vmul.f32 %v1017_v31, %v2813_v20  ;;  %2088 = vtanh.f32 %v1080_v24  ;;  %v2852_v13 = vadd.f32 %v554_v53, %v2546_v49 }
 0x149   : > { %1406 = vmatmul.bf16.gmra.mxu0 %v857_v29  ;;  %v1127_v41 = vmul.f32 0.5, %v1111_v35  ;;  %2090 = vtanh.f32 %v708_v45  ;;  %1450 = vmatmul.bf16.gmra.mxu1 %v856_v43 }
 0x14a   : > { %v1049_v17 = vmul.f32 0.044715, %v1033_v16  ;;  %2092 = vtanh.f32 %v710_v27  ;;  %v588_v35 = vmul.f32 %v2852_v13, %v2852_v13 }
 0x14b   : > { %v987_v37 = vpop.f32.mrf.mxu2  ;;  %v1143_v1 = vmul.f32 %v1127_v41, %v2778_v59  ;;  %v586_v59 = vmul.f32 %v2838_v28, %v2838_v28 }
 0x14c   : > { %v1065_v51 = vadd.f32 %v1049_v17, %v2813_v20  ;;  %v2834_v58 = vadd.f32 %v2713_v39, %v987_v37  ;;  %v620_v45 = vmul.f32 %v588_v35, %v2852_v13 }
 0x14d   : > { %v1157_v29 = vpack.c.bf16 %v1143_v1, %v1142_v50  ;;  %v618_v62 = vmul.f32 %v586_v59, %v2838_v28 }
 0x14e   : > { %v1018_v57 = vmul.f32 %v2834_v58, %v2834_v58  ;;  %v1081_v54 = vmul.f32 0.7978846, %v1065_v51  ;;  %v2089_v15 = vpop.eup %2088  ;;  %v652_v51 = vmul.f32 0.044715, %v620_v45 }
 0x14f   : > { %1241 = vmatmul.bf16.gmra.mxu3 %v1157_v29  ;;  %v2091_v47 = vpop.eup %2090  ;;  %v1112_v44 = vadd.f32 1.0, %v2089_v15  ;;  %v650_v23 = vmul.f32 0.044715, %v618_v62  ;;  %v556_v6 = vpop.f32.mrf.mxu3 }
 0x150   : > { %v1034_v46 = vmul.f32 %v1018_v57, %v2834_v58  ;;  %2094 = vtanh.f32 %v1081_v54  ;;  %v2093_v36 = vpop.eup %2092  ;;  %v772_v2 = vadd.f32 1.0, %v2091_v47  ;;  %v2873_v17 = vadd.f32 %v556_v6, %v2546_v49 }
 0x151   : > { %v774_v4 = vadd.f32 1.0, %v2093_v36  ;;  %v682_v5 = vadd.f32 %v650_v23, %v2838_v28  ;;  %v1128_v31 = vmul.f32 0.5, %v1112_v44  ;;  %v684_v62 = vadd.f32 %v652_v51, %v2852_v13 }
 0x152   : > { %v1050_v33 = vmul.f32 0.044715, %v1034_v46  ;;  %v804_v12 = vmul.f32 0.5, %v772_v2 }
 0x153   : > { %v989_v8 = vpop.f32.mrf.mxu2  ;;  %v806_v18 = vmul.f32 0.5, %v774_v4  ;;  %v714_v41 = vmul.f32 0.7978846, %v682_v5  ;;  %v1144_v42 = vmul.f32 %v1128_v31, %v2799_v14 }
 0x154   : > { %v1066_v9 = vadd.f32 %v1050_v33, %v2834_v58  ;;  %v2848_v60 = vadd.f32 %v2713_v39, %v989_v8  ;;  %v836_v26 = vmul.f32 %v804_v12, %v2783_v48 }
 0x155   : > { %v838_v34 = vmul.f32 %v806_v18, %v2803_v56 }
 0x156   : > { %v2095_v32 = vpop.eup %2094  ;;  %v1019_v19 = vmul.f32 %v2848_v60, %v2848_v60  ;;  %v1082_v22 = vmul.f32 0.7978846, %v1066_v9 }
 0x157   : > { %v1113_v30 = vadd.f32 1.0, %v2095_v32  ;;  %v858_v11 = vpack.c.bf16 %v838_v34, %v836_v26  ;;  %v716_v32 = vmul.f32 0.7978846, %v684_v62 }
 0x158   : > { %v1035_v24 = vmul.f32 %v1019_v19, %v2848_v60  ;;  %2096 = vtanh.f32 %v1082_v22 }
 0x159   : > { %1411 = vmatmul.bf16.gmra.mxu0 %v859_v0  ;;  %v1129_v40 = vmul.f32 0.5, %v1113_v30  ;;  %2098 = vtanh.f32 %v712_v38  ;;  %1455 = vmatmul.bf16.gmra.mxu1 %v858_v11 }
 0x15a   : > { %v1051_v16 = vmul.f32 0.044715, %v1035_v24  ;;  %2100 = vtanh.f32 %v714_v41 }
 0x15b   : > { %v992_v48 = vpop.f32.mrf.mxu2  ;;  %v1145_v56 = vmul.f32 %v1129_v40, %v2813_v20  ;;  %v590_v20 = vmul.f32 %v2873_v17, %v2873_v17 }
 0x15c   : > { %v1067_v43 = vadd.f32 %v1051_v16, %v2848_v60  ;;  %v2869_v3 = vadd.f32 %v2713_v39, %v992_v48 }
 0x15d   : > { %v1158_v0 = vpack.c.bf16 %v1145_v56, %v1144_v42  ;;  %v622_v21 = vmul.f32 %v590_v20, %v2873_v17 }
 0x15e   : > { %v1020_v14 = vmul.f32 %v2869_v3, %v2869_v3  ;;  %v1083_v27 = vmul.f32 0.7978846, %v1067_v43  ;;  %v2097_v37 = vpop.eup %2096 }
 0x15f   : > { %1246 = vmatmul.bf16.gmra.mxu3 %v1158_v0  ;;  %v2099_v1 = vpop.eup %2098  ;;  %v1114_v54 = vadd.f32 1.0, %v2097_v37  ;;  %v654_v59 = vmul.f32 0.044715, %v622_v21 }
 0x160   : > { %v1036_v50 = vmul.f32 %v1020_v14, %v2869_v3  ;;  %2102 = vtanh.f32 %v1083_v27  ;;  %v2101_v29 = vpop.eup %2100  ;;  %v776_v49 = vadd.f32 1.0, %v2099_v1 }
 0x161   : > { %v778_v15 = vadd.f32 1.0, %v2101_v29  ;;  %v686_v36 = vadd.f32 %v654_v59, %v2873_v17  ;;  %v1130_v9 = vmul.f32 0.5, %v1114_v54 }
 0x162   : > { %v1052_v52 = vmul.f32 0.044715, %v1036_v50  ;;  %v808_v55 = vmul.f32 0.5, %v776_v49 }
 0x163   : > { %v994_v57 = vpop.f32.mrf.mxu2  ;;  %v810_v33 = vmul.f32 0.5, %v778_v15  ;;  %v718_v19 = vmul.f32 0.7978846, %v686_v36  ;;  %v1146_v26 = vmul.f32 %v1130_v9, %v2834_v58 }
 0x164   : > { %v1068_v46 = vadd.f32 %v1052_v52, %v2869_v3  ;;  %v995_v47 = vadd.f32 %v2713_v39, %v994_v57  ;;  %v840_v23 = vmul.f32 %v808_v55, %v2817_v25 }
 0x165   : > { %v842_v53 = vmul.f32 %v810_v33, %v2838_v28 }
 0x166   : > { %v2103_v2 = vpop.eup %2102  ;;  %v1021_v8 = vmul.f32 %v995_v47, %v995_v47  ;;  %v1084_v44 = vmul.f32 0.7978846, %v1068_v46 }
 0x167   : > { %v1115_v4 = vadd.f32 1.0, %v2103_v2  ;;  %v860_v18 = vpack.c.bf16 %v842_v53, %v840_v23 }
 0x168   : > { %v1037_v12 = vmul.f32 %v1021_v8, %v995_v47  ;;  %2104 = vtanh.f32 %v1084_v44 }
 0x169   : > { %1416 = vmatmul.bf16.gmra.mxu0 %v861_v7  ;;  %v1131_v10 = vmul.f32 0.5, %v1115_v4  ;;  %2106 = vtanh.f32 %v716_v32  ;;  %1460 = vmatmul.bf16.gmra.mxu1 %v860_v18 }
 0x16a   : > { %v1053_v5 = vmul.f32 0.044715, %v1037_v12  ;;  %2108 = vtanh.f32 %v718_v19 }
 0x16b   : > { %v997_v22 = vpop.f32.mrf.mxu2  ;;  %v1147_v25 = vmul.f32 %v1131_v10, %v2848_v60 }
 0x16c   : > { %v1069_v30 = vadd.f32 %v1053_v5, %v995_v47  ;;  %v998_v28 = vadd.f32 %v2713_v39, %v997_v22 }
 0x16d   : > { %v1159_v31 = vpack.c.bf16 %v1147_v25, %v1146_v26 }
 0x16e   : > { %v1022_v61 = vmul.f32 %v998_v28, %v998_v28  ;;  %v1085_v63 = vmul.f32 0.7978846, %v1069_v30  ;;  %v2105_v7 = vpop.eup %2104 }
 0x16f   : > { %1251 = vmatmul.bf16.gmra.mxu3 %v1159_v31  ;;  %v2107_v24 = vpop.eup %2106  ;;  %v1116_v38 = vadd.f32 1.0, %v2105_v7 }
 0x170   : > { %v1038_v34 = vmul.f32 %v1022_v61, %v998_v28  ;;  %2110 = vtanh.f32 %v1085_v63  ;;  %v2109_v40 = vpop.eup %2108  ;;  %v780_v11 = vadd.f32 1.0, %v2107_v24 }
 0x171   : > { %v782_v60 = vadd.f32 1.0, %v2109_v40  ;;  %v1132_v14 = vmul.f32 0.5, %v1116_v38 }
 0x172   : > { %v1054_v35 = vmul.f32 0.044715, %v1038_v34  ;;  %v812_v48 = vmul.f32 0.5, %v780_v11 }
 0x173   : > { %v999_v58 = vpop.f32.mrf.mxu2  ;;  %v814_v42 = vmul.f32 0.5, %v782_v60  ;;  %v1148_v21 = vmul.f32 %v1132_v14, %v2869_v3 }
 0x174   : > { %v1070_v16 = vadd.f32 %v1054_v35, %v998_v28  ;;  %v1000_v41 = vadd.f32 %v2713_v39, %v999_v58  ;;  %v844_v0 = vmul.f32 %v812_v48, %v2852_v13 }
 0x175   : > { %v846_v27 = vmul.f32 %v814_v42, %v2873_v17 }
 0x176   : > { %v2111_v56 = vpop.eup %2110  ;;  %v1023_v43 = vmul.f32 %v1000_v41, %v1000_v41  ;;  %v1086_v6 = vmul.f32 0.7978846, %v1070_v16 }
 0x177   : > { %v1117_v45 = vadd.f32 1.0, %v2111_v56  ;;  %v862_v50 = vpack.c.bf16 %v846_v27, %v844_v0 }
 0x178   : > { %v1039_v20 = vmul.f32 %v1023_v43, %v1000_v41  ;;  %2112 = vtanh.f32 %v1086_v6  ;;  %v1382_v43 = vpop.f32.mrf.mxu0 }
 0x179   : > { %v1133_v37 = vmul.f32 0.5, %v1117_v45  ;;  %1465 = vmatmul.bf16.gmra.mxu1 %v862_v50 }
 0x17a   : > { %v1055_v1 = vmul.f32 0.044715, %v1039_v20 }
 0x17b   : > { %v1002_v51 = vpop.f32.mrf.mxu2  ;;  %v1149_v29 = vmul.f32 %v1133_v37, %v995_v47 }
 0x17c   : > { %v1071_v52 = vadd.f32 %v1055_v1, %v1000_v41  ;;  %v1003_v49 = vadd.f32 %v2713_v39, %v1002_v51 }
 0x17d   : > { %v1160_v57 = vpack.c.bf16 %v1149_v29, %v1148_v21 }
 0x17e   : > { %v1024_v54 = vmul.f32 %v1003_v49, %v1003_v49  ;;  %v1087_v13 = vmul.f32 0.7978846, %v1071_v52  ;;  %v2113_v59 = vpop.eup %2112 }
 0x17f   : > { %1256 = vmatmul.bf16.gmra.mxu3 %v1160_v57  ;;  %v1118_v55 = vadd.f32 1.0, %v2113_v59  ;;  %v2905_v57 = vld [vmem:[%s2978_s4] ss:$0 sm:$0xff] }
 0x180   : > { %v1040_v15 = vmul.f32 %v1024_v54, %v1003_v49  ;;  %2114 = vtanh.f32 %v1087_v13  ;;  %v1431_v6 = vpop.f32.mrf.mxu1  ;;  %v1384_v50 = vpop.f32.mrf.mxu0 }
 0x181   : > { %v1134_v8 = vmul.f32 0.5, %v1118_v55 }
 0x182   : > { %v1056_v17 = vmul.f32 0.044715, %v1040_v15 }
 0x183   : > { %v1004_v46 = vpop.f32.mrf.mxu2  ;;  %v1150_v53 = vmul.f32 %v1134_v8, %v998_v28 }
 0x184   : > { %v1072_v62 = vadd.f32 %v1056_v17, %v1003_v49  ;;  %v1005_v36 = vadd.f32 %v2713_v39, %v1004_v46 }
 0x186   : > { %v2115_v33 = vpop.eup %2114  ;;  %v1025_v3 = vmul.f32 %v1005_v36, %v1005_v36  ;;  %v1088_v47 = vmul.f32 0.7978846, %v1072_v62 }
 0x187   : > { %v1119_v2 = vadd.f32 1.0, %v2115_v33 }
 0x188   : > { %v1041_v44 = vmul.f32 %v1025_v3, %v1005_v36  ;;  %2116 = vtanh.f32 %v1088_v47  ;;  %v1433_v1 = vpop.f32.mrf.mxu1  ;;  %v1387_v51 = vpop.f32.mrf.mxu0 }
 0x189   : > { %v1135_v23 = vmul.f32 0.5, %v1119_v2 }
 0x18a   : > { %v1057_v4 = vmul.f32 0.044715, %v1041_v44 }
 0x18b   : > { %v1007_v9 = vpop.f32.mrf.mxu2  ;;  %v1151_v12 = vmul.f32 %v1135_v23, %v1000_v41 }
 0x18c   : > { %v1073_v10 = vadd.f32 %v1057_v4, %v1005_v36  ;;  %v1008_v18 = vadd.f32 %v2713_v39, %v1007_v9 }
 0x18d   : > { %v1161_v32 = vpack.c.bf16 %v1151_v12, %v1150_v53 }
 0x18e   : > { %v1026_v19 = vmul.f32 %v1008_v18, %v1008_v18  ;;  %v1089_v5 = vmul.f32 0.7978846, %v1073_v10  ;;  %v2117_v22 = vpop.eup %2116 }
 0x18f   : > { %1261 = vmatmul.bf16.gmra.mxu3 %v1161_v32  ;;  %v1120_v31 = vadd.f32 1.0, %v2117_v22 }
 0x190   : > { %v1042_v26 = vmul.f32 %v1026_v19, %v1008_v18  ;;  %2118 = vtanh.f32 %v1089_v5  ;;  %v1436_v21 = vpop.f32.mrf.mxu1  ;;  %v1389_v29 = vpop.f32.mrf.mxu0 }
 0x191   : > { %v1136_v40 = vmul.f32 0.5, %v1120_v31 }
 0x192   : > { %v1058_v25 = vmul.f32 0.044715, %v1042_v26 }
 0x193   : > { %v1009_v30 = vpop.f32.mrf.mxu2  ;;  %v1152_v38 = vmul.f32 %v1136_v40, %v1003_v49 }
 0x194   : > { %v1074_v61 = vadd.f32 %v1058_v25, %v1008_v18  ;;  %v1010_v63 = vadd.f32 %v2713_v39, %v1009_v30 }
 0x196   : > { %v2119_v7 = vpop.eup %2118  ;;  %v1027_v34 = vmul.f32 %v1010_v63, %v1010_v63  ;;  %v1090_v28 = vmul.f32 0.7978846, %v1074_v61 }
 0x197   : > { %v1121_v24 = vadd.f32 1.0, %v2119_v7 }
 0x198   : > { %v1043_v35 = vmul.f32 %v1027_v34, %v1010_v63  ;;  %2120 = vtanh.f32 %v1090_v28  ;;  %v1438_v54 = vpop.f32.mrf.mxu1  ;;  %v1392_v46 = vpop.f32.mrf.mxu0 }
 0x199   : > { %v1137_v11 = vmul.f32 0.5, %v1121_v24 }
 0x19a   : > { %v1059_v58 = vmul.f32 0.044715, %v1043_v35 }
 0x19b   : > { %v1153_v60 = vmul.f32 %v1137_v11, %v1005_v36 }
 0x19c   : > { %v1075_v16 = vadd.f32 %v1059_v58, %v1010_v63 }
 0x19d   : > { %v1162_v41 = vpack.c.bf16 %v1153_v60, %v1152_v38 }
 0x19e   : > { %v1091_v48 = vmul.f32 0.7978846, %v1075_v16  ;;  %v2121_v42 = vpop.eup %2120 }
 0x19f   : > { %1266 = vmatmul.bf16.gmra.mxu3 %v1162_v41  ;;  %v1122_v56 = vadd.f32 1.0, %v2121_v42 }
 0x1a0   : > { %2122 = vtanh.f32 %v1091_v48  ;;  %v1394_v2 = vpop.f32.mrf.mxu0 }
 0x1a1   : > { %v1138_v45 = vmul.f32 0.5, %v1122_v56 }
 0x1a3   : > { %v1154_v27 = vmul.f32 %v1138_v45, %v1008_v18  ;;  %v1441_v62 = vpop.f32.mrf.mxu1 }
 0x1a6   : > { %v2123_v39 = vpop.eup %2122 }
 0x1a7   : > { %v1123_v0 = vadd.f32 1.0, %v2123_v39 }
 0x1a8   : > { %v1397_v12 = vpop.f32.mrf.mxu0 }
 0x1a9   : > { %v1139_v14 = vmul.f32 0.5, %v1123_v0 }
 0x1ab   : > { %v1155_v20 = vmul.f32 %v1139_v14, %v1010_v63  ;;  %v1443_v44 = vpop.f32.mrf.mxu1 }
 0x1ad   : > { %v1163_v37 = vpack.c.bf16 %v1155_v20, %v1154_v27 }
 0x1af   : > { %1271 = vmatmul.bf16.gmra.mxu3 %v1163_v37 }
 0x1b0   : > { %v1399_v22 = vpop.f32.mrf.mxu0 }
 0x1b6   : > { %v1446_v10 = vpop.f32.mrf.mxu1 }
 0x1b8   : > { %v1402_v34 = vpop.f32.mrf.mxu0 }
 0x1be   : > { %v1448_v30 = vpop.f32.mrf.mxu1 }
 0x1c0   : > { %v1404_v38 = vpop.f32.mrf.mxu0 }
 0x1c2   : > { %v1237_v52 = vpop.f32.mrf.mxu3 }
 0x1c3   : > { %v1383_v49 = vadd.f32 %v1382_v43, %v1237_v52 }
 0x1c5   : > { %v1432_v13 = vadd.f32 %v1431_v6, %v1383_v49 }
 0x1c6   : > { %v1451_v24 = vpop.f32.mrf.mxu1 }
 0x1c7   : > { %v1475_v59 = vadd.f32 %v2905_v57, %v1432_v13 }
 0x1c8   : > { %v1407_v43 = vpop.f32.mrf.mxu0 }
 0x1c9   : > { %1491 = vst [vmem:[%s2908_s16] sm:$0xff] %v1475_v59 }
 0x1ca   : > { %v1239_v15 = vpop.f32.mrf.mxu3 }
 0x1cb   : > { %v1385_v17 = vadd.f32 %v1384_v50, %v1239_v15 }
 0x1cd   : > { %v1434_v55 = vadd.f32 %v1433_v1, %v1385_v17 }
 0x1ce   : > { %v1453_v16 = vpop.f32.mrf.mxu1 }
 0x1cf   : > { %v1476_v36 = vadd.f32 %v2905_v57, %v1434_v55 }
 0x1d0   : > { %v1409_v27 = vpop.f32.mrf.mxu0 }
 0x1d1   : > { %1492 = vst [vmem:[%s2908_s16 + $0x8] sm:$0xff] %v1476_v36 }
 0x1d2   : > { %v1242_v33 = vpop.f32.mrf.mxu3 }
 0x1d3   : > { %v1388_v3 = vadd.f32 %v1387_v51, %v1242_v33 }
 0x1d5   : > { %v1437_v47 = vadd.f32 %v1436_v21, %v1388_v3 }
 0x1d6   : > { %v1456_v39 = vpop.f32.mrf.mxu1 }
 0x1d7   : > { %v1477_v8 = vadd.f32 %v2905_v57, %v1437_v47 }
 0x1d8   : > { %v1412_v52 = vpop.f32.mrf.mxu0 }
 0x1d9   : > { %1493 = vst [vmem:[%s2908_s16 + $0x10] sm:$0xff] %v1477_v8 }
 0x1da   : > { %v1244_v23 = vpop.f32.mrf.mxu3 }
 0x1db   : > { %v1390_v4 = vadd.f32 %v1389_v29, %v1244_v23 }
 0x1dd   : > { %v1439_v9 = vadd.f32 %v1438_v54, %v1390_v4 }
 0x1de   : > { %v1458_v50 = vpop.f32.mrf.mxu1 }
 0x1df   : > { %v1478_v53 = vadd.f32 %v2905_v57, %v1439_v9 }
 0x1e1   : > { %1494 = vst [vmem:[%s2908_s16 + $0x18] sm:$0xff] %v1478_v53 }
 0x1e2   : > { %v1247_v18 = vpop.f32.mrf.mxu3 }
 0x1e3   : > { %v1393_v32 = vadd.f32 %v1392_v46, %v1247_v18  ;;  %v1414_v46 = vpop.f32.mrf.mxu0 }
 0x1e5   : > { %v1442_v19 = vadd.f32 %v1441_v62, %v1393_v32 }
 0x1e6   : > { %v1461_v54 = vpop.f32.mrf.mxu1 }
 0x1e7   : > { %v1479_v5 = vadd.f32 %v2905_v57, %v1442_v19 }
 0x1e9   : > { %1495 = vst [vmem:[%s2908_s16 + $0x20] sm:$0xff] %v1479_v5 }
 0x1ea   : > { %v1249_v26 = vpop.f32.mrf.mxu3 }
 0x1eb   : > { %v1395_v25 = vadd.f32 %v1394_v2, %v1249_v26  ;;  %v1417_v2 = vpop.f32.mrf.mxu0 }
 0x1ed   : > { %v1444_v31 = vadd.f32 %v1443_v44, %v1395_v25 }
 0x1ee   : > { %v1463_v62 = vpop.f32.mrf.mxu1 }
 0x1ef   : > { %v1480_v61 = vadd.f32 %v2905_v57, %v1444_v31 }
 0x1f1   : > { %1496 = vst [vmem:[%s2908_s16 + $0x28] sm:$0xff] %v1480_v61 }
 0x1f2   : > { %v1252_v63 = vpop.f32.mrf.mxu3 }
 0x1f3   : > { %v1398_v7 = vadd.f32 %v1397_v12, %v1252_v63  ;;  %v1419_v53 = vpop.f32.mrf.mxu0 }
 0x1f5   : > { %v1447_v28 = vadd.f32 %v1446_v10, %v1398_v7 }
 0x1f6   : > { %v1466_v8 = vpop.f32.mrf.mxu1 }
 0x1f7   : > { %v1481_v40 = vadd.f32 %v2905_v57, %v1447_v28 }
 0x1f9   : > { %1497 = vst [vmem:[%s2908_s16 + $0x30] sm:$0xff] %v1481_v40 }
 0x1fa   : > { %v1254_v35 = vpop.f32.mrf.mxu3 }
 0x1fb   : > { %v1400_v11 = vadd.f32 %v1399_v22, %v1254_v35 }
 0x1fd   : > { %v1449_v58 = vadd.f32 %v1448_v30, %v1400_v11 }
 0x1fe   : > { %v1468_v18 = vpop.f32.mrf.mxu1 }
 0x1ff   : > { %v1482_v60 = vadd.f32 %v2905_v57, %v1449_v58 }
 0x201   : > { %1498 = vst [vmem:[%s2908_s16 + $0x38] sm:$0xff] %v1482_v60 }
 0x202   : > { %v1257_v41 = vpop.f32.mrf.mxu3 }
 0x203   : > { %v1403_v48 = vadd.f32 %v1402_v34, %v1257_v41 }
 0x205   : > { %v1452_v42 = vadd.f32 %v1451_v24, %v1403_v48 }
 0x207   : > { %v1483_v56 = vadd.f32 %v2905_v57, %v1452_v42 }
 0x209   : > { %1499 = vst [vmem:[%s2908_s16 + $0x40] sm:$0xff] %v1483_v56 }
 0x20a   : > { %v1259_v6 = vpop.f32.mrf.mxu3 }
 0x20b   : > { %v1405_v0 = vadd.f32 %v1404_v38, %v1259_v6 }
 0x20d   : > { %v1454_v45 = vadd.f32 %v1453_v16, %v1405_v0 }
 0x20f   : > { %v1484_v14 = vadd.f32 %v2905_v57, %v1454_v45 }
 0x211   : > { %1500 = vst [vmem:[%s2908_s16 + $0x48] sm:$0xff] %v1484_v14 }
 0x212   : > { %v1262_v20 = vpop.f32.mrf.mxu3 }
 0x213   : > { %v1408_v37 = vadd.f32 %v1407_v43, %v1262_v20 }
 0x215   : > { %v1457_v1 = vadd.f32 %v1456_v39, %v1408_v37 }
 0x217   : > { %v1485_v51 = vadd.f32 %v2905_v57, %v1457_v1 }
 0x219   : > { %1501 = vst [vmem:[%s2908_s16 + $0x50] sm:$0xff] %v1485_v51 }
 0x21a   : > { %v1264_v21 = vpop.f32.mrf.mxu3 }
 0x21b   : > { %v1410_v29 = vadd.f32 %v1409_v27, %v1264_v21 }
 0x21d   : > { %v1459_v49 = vadd.f32 %v1458_v50, %v1410_v29 }
 0x21f   : > { %v1486_v13 = vadd.f32 %v2905_v57, %v1459_v49 }
 0x221   : > { %1502 = vst [vmem:[%s2908_s16 + $0x58] sm:$0xff] %v1486_v13 }
 0x222   : > { %v1267_v59 = vpop.f32.mrf.mxu3 }
 0x223   : > { %v1413_v15 = vadd.f32 %v1412_v52, %v1267_v59 }
 0x225   : > { %v1462_v17 = vadd.f32 %v1461_v54, %v1413_v15 }
 0x227   : > { %v1487_v55 = vadd.f32 %v2905_v57, %v1462_v17 }
 0x229   : > { %1503 = vst [vmem:[%s2908_s16 + $0x60] sm:$0xff] %v1487_v55 }
 0x22a   : > { %v1269_v36 = vpop.f32.mrf.mxu3 }
 0x22b   : > { %v1415_v33 = vadd.f32 %v1414_v46, %v1269_v36 }
 0x22d   : > { %v1464_v3 = vadd.f32 %v1463_v62, %v1415_v33 }
 0x22f   : > { %v1488_v47 = vadd.f32 %v2905_v57, %v1464_v3 }
 0x231   : > { %1504 = vst [vmem:[%s2908_s16 + $0x68] sm:$0xff] %v1488_v47 }
 0x232   : > { %v1272_v44 = vpop.f32.mrf.mxu3 }
 0x233   : > { %v1418_v23 = vadd.f32 %v1417_v2, %v1272_v44 }
 0x235   : > { %v1467_v4 = vadd.f32 %v1466_v8, %v1418_v23 }
 0x237   : > { %v1489_v9 = vadd.f32 %v2905_v57, %v1467_v4 }
 0x239   : > { %1505 = vst [vmem:[%s2908_s16 + $0x70] sm:$0xff] %v1489_v9 }
 0x23a   : > { %v1274_v12 = vpop.f32.mrf.mxu3 }
 0x23b   : > { %v1420_v10 = vadd.f32 %v1419_v53, %v1274_v12 }
 0x23d   : > { %v1469_v32 = vadd.f32 %v1468_v18, %v1420_v10 }
 0x23f   : > { %v1490_v19 = vadd.f32 %v2905_v57, %v1469_v32 }
 0x241   : > { %1506 = vst [vmem:[%s2908_s16 + $0x78] sm:$0xff] %v1490_v19 }
 0x242   : > { %2271 = shalt.err (!%p2268_p10)
}
 0x243   : > { %s2327_s17 = smov 128   ;;  %s2328_s28 = smov 8  }
 0x244   : > { %1957 = dma.vmem_to_hbm [thread:$0]  (%p2443_p0), %s1521_s12, 2048, %s1523_s14, %s1508_s22, %s2327_s17, %s2327_s17, %s2328_s28  }
 0x245 PF: > { %p1984_p11 = scmp.ge.s32.totalorder %s2318_s21, 2  ;;  %s1537_s16 = sand.u32 1, %s2306_s18  }
 0x246   : > { %s1538_s23 = scalar_lea.sflag [#allocation4], %s1537_s16 }
 0x247   : > { %p1974_p12 = pnand %p1984_p11, %p2394_p6 }
 0x249   : > { %p1975_p13 = pneg %p1974_p12 }
 0x24b   : > { %2301 = dma.done.wait (%p1975_p13), %s1538_s23, 2048  }
 0x24c   : > { %2303 = vsyncadd (%p1975_p13), %s1538_s23, 4294965248  ;;  %p20_p3 = scmp.ge.s32.totalorder %s2430_s30, 6   ;;  %s2988_s18 = smov %s2310_s19 }
 0x24d   : > { %s2989_s19 = smov %s2314_s20  ;;  %s2990_s20 = smov %s2439_s9 }
 0x24e   : > { %s2991_s21 = smov %s2430_s30  ;;  %22 = sbr.rel (!%p20_p3) target bundleno = 7 (0x7), region = 97 }
 0x253   :  { %1544 = vsyncpa [#allocation3], 1 }
 0x254   :  { %1546 = vsyncpa [#allocation3 + $0x1], 1 }
 0x255   :  { %1547 = vsyncpa [#allocation6], 1 }
 0x256   :  { %1548 = vsyncpa [#allocation9], 1 }
 0x257   :  { %1549 = vsyncpa [#allocation4], 1 }
 0x258   :  { %1551 = vsyncpa [#allocation4 + $0x1], 1 }

</bundles_post_ra>
